<compile_context>
chip_gen: v6e
topology: v6e:2x2x1
jax: 0.10.0
libtpu: 0.0.40
codegen_flags: <defaults>
</compile_context>

<pallas_src>
import functools
import math

import jax
import jax.numpy as jnp
from jax.experimental import pallas as pl
from jax.experimental.pallas import tpu as pltpu

PACK = 4  # lane-packing factor: PACK * latent_dim(32) = 128 lanes (one vreg row)


def _rup(x, m):
    return ((x + m - 1) // m) * m


# ----------------------------------------------------------------------------
# Kernel
# ----------------------------------------------------------------------------
def _pixelnerf_kernel(V, R, L, Ddir, outw, q, offs,
                      xt_ref, dirs_ref, wtr_ref, wres_ref, wtail_ref, bias_ref,
                      out_ref, unpack_ref):
    f32 = jnp.float32
    D3 = L + Ddir
    LP = PACK * L
    o_w1, o_w2, o_w3a, o_w3b, o_wo = offs

    # ---- hoisted bias rows (each read once; broadcast happens in the add) ---
    b_trunk = bias_ref[0:1, 0:LP * (1 + R)]
    b1 = bias_ref[1 + 2 * R:2 + 2 * R, 0:L + 1]
    b2 = bias_ref[2 + 2 * R:3 + 2 * R, 0:L]
    b3a = bias_ref[3 + 2 * R:4 + 2 * R, 0:D3]
    b3b = bias_ref[4 + 2 * R:5 + 2 * R, 0:D3]
    b_out = bias_ref[5 + 2 * R:6 + 2 * R, 0:outw]

    # ---- lane-packed trunk ---------------------------------------------------
    # xt: (V*q, PACK*(Din0+L)); ONE matmul gives input_linear(points) and every
    # residual_linear[r](enc) for all PACK packed points per row.
    x = xt_ref[...]
    t = jnp.dot(x, wtr_ref[...], preferred_element_type=f32) + b_trunk
    out_p = t[:, 0:LP]                                    # packed input_linear
    for r in range(R):
        out_p = out_p + t[:, LP * (1 + r):LP * (2 + r)]   # + residual_linear[r]
        # LinearResnetBlock (standard pixelNeRF block) on packed activations
        h = jnp.maximum(out_p, 0.0)
        h = (jnp.dot(h, wres_ref[2 * r], preferred_element_type=f32)
             + bias_ref[1 + 2 * r:2 + 2 * r, 0:LP])
        h = jnp.maximum(h, 0.0)
        h = (jnp.dot(h, wres_ref[2 * r + 1], preferred_element_type=f32)
             + bias_ref[2 + 2 * r:3 + 2 * r, 0:LP])
        out_p = out_p + h

    # ---- mean over views: sum of per-view row slices (still lane-packed) ----
    acc = out_p[0:q, :]
    for v in range(1, V):
        acc = acc + out_p[v * q:(v + 1) * q, :]
    mean_p = acc * f32(1.0 / V)                           # (q, PACK*L)

    # ---- unpack the 4x lane packing -> (tm, L) via scratch stores ------------
    for j in range(PACK):
        unpack_ref[j * q:(j + 1) * q, :] = mean_p[:, j * L:(j + 1) * L]
    out = unpack_ref[...]                                 # (tm, L)

    # ---- per-point tail -------------------------------------------------------
    w1 = wtail_ref[o_w1:o_w1 + L, 0:L + 1]
    w2 = wtail_ref[o_w2:o_w2 + L + 1, 0:L]
    w3a = wtail_ref[o_w3a:o_w3a + L, 0:D3]                # hidden rows only
    w3b = wtail_ref[o_w3b:o_w3b + D3, 0:D3]
    w_out = wtail_ref[o_wo:o_wo + D3, 0:outw]
    w_out_top = wtail_ref[o_wo:o_wo + L, 0:outw]

    out1 = jnp.dot(jnp.maximum(out, 0.0), w1, preferred_element_type=f32) + b1
    density = jnp.maximum(out1[:, 0:1], 0.0)
    out1b = (jnp.dot(jnp.maximum(out1, 0.0), w2, preferred_element_type=f32)
             + b2 + out)

    dirs = dirs_ref[...]                                  # (tm, Ddir)
    rdirs = jnp.maximum(dirs, 0.0)
    # linear_3 on concat(out1b, dirs): hidden part on the MXU; the K=Ddir dirs
    # part as VPU multiply-adds (no lane concat, no tiny MXU round-trips).
    h3 = jnp.dot(jnp.maximum(out1b, 0.0), w3a, preferred_element_type=f32) + b3a
    for k in range(Ddir):
        h3 = h3 + rdirs[:, k:k + 1] * wtail_ref[o_w3a + L + k:o_w3a + L + k + 1, 0:D3]
    h3 = jnp.maximum(h3, 0.0)
    h3 = jnp.dot(h3, w3b, preferred_element_type=f32) + b3b

    # output_linear on (linear_3(final_in) + final_in), skip split exactly
    logits = (jnp.dot(h3, w_out, preferred_element_type=f32)
              + jnp.dot(out1b, w_out_top, preferred_element_type=f32)
              + b_out)
    for k in range(Ddir):
        logits = logits + dirs[:, k:k + 1] * wtail_ref[o_wo + L + k:o_wo + L + k + 1, 0:outw]
    rgb = jax.nn.sigmoid(logits)

    # single fused store: column 0 = density, columns 1: = rgb
    out_ref[...] = jnp.concatenate([density, rgb], axis=-1)


# ----------------------------------------------------------------------------
# One-time parameter preprocessing (hoisted out of the forward)
# ----------------------------------------------------------------------------
def prepare_params(params):
    f32 = jnp.float32
    w_in = jnp.asarray(params["w_in"], f32)
    Din0, L = w_in.shape
    res_w0 = jnp.asarray(params["res_w0"], f32)
    res_b0 = jnp.asarray(params["res_b0"], f32)
    res_w1 = jnp.asarray(params["res_w1"], f32)
    res_b1 = jnp.asarray(params["res_b1"], f32)
    R = res_w0.shape[0]
    assert R >= 1
    rw = jnp.asarray(params["rw"], f32)
    assert rw.shape[0] >= R
    rw = rw[:R]
    rb = jnp.asarray(params["rb"], f32)[:R]
    w1 = jnp.asarray(params["w1"], f32)
    w2 = jnp.asarray(params["w2"], f32)
    w3a = jnp.asarray(params["w3a"], f32)
    w3b = jnp.asarray(params["w3b"], f32)
    w_out = jnp.asarray(params["w_out"], f32)
    D3 = w3a.shape[0]
    Ddir = D3 - L
    outw = w_out.shape[1]
    Dcat = Din0 + L
    LP = PACK * L

    # fused + lane-packed trunk weight: (PACK*Dcat, PACK*L*(1+R))
    #   output cols [0:LP)              = packed input_linear(points)
    #   output cols [LP*(1+r), LP*(2+r)) = packed residual_linear[r](enc)
    wtr = jnp.zeros((PACK * Dcat, LP * (1 + R)), f32)
    for j in range(PACK):
        wtr = wtr.at[j * Dcat:j * Dcat + Din0, j * L:(j + 1) * L].set(w_in)
        for r in range(R):
            wtr = wtr.at[j * Dcat + Din0:(j + 1) * Dcat,
                         LP * (1 + r) + j * L:LP * (1 + r) + (j + 1) * L].set(rw[r])

    # lane-packed (block-diagonal 4x) resnet inner weights: [2r]=fc0, [2r+1]=fc1
    eye = jnp.eye(PACK, dtype=f32)
    blocks = []
    for r in range(R):
        blocks.append(jnp.kron(eye, res_w0[r]))
        blocks.append(jnp.kron(eye, res_w1[r]))
    wres = jnp.stack(blocks)                               # (2R, PACK*L, PACK*L)

    # tail-weight pack (one input stream; row offsets padded to sublane mult.)
    o_w1 = 0
    o_w2 = o_w1 + _rup(L, 8)
    o_w3a = o_w2 + _rup(L + 1, 8)
    o_w3b = o_w3a + _rup(D3, 8)
    o_wo = o_w3b + _rup(D3, 8)
    rows = o_wo + _rup(D3, 8)
    width = max(L + 1, D3, outw)
    wtail = jnp.zeros((rows, width), f32)
    wtail = wtail.at[o_w1:o_w1 + L, 0:L + 1].set(w1)
    wtail = wtail.at[o_w2:o_w2 + L + 1, 0:L].set(w2)
    wtail = wtail.at[o_w3a:o_w3a + D3, 0:D3].set(w3a)
    wtail = wtail.at[o_w3b:o_w3b + D3, 0:D3].set(w3b)
    wtail = wtail.at[o_wo:o_wo + D3, 0:outw].set(w_out)

    # bias table (one input stream)
    NB = 6 + 2 * R
    BW = max(LP * (1 + R), 128)
    bias = jnp.zeros((NB, BW), f32)

    def setrow(tbl, i, vec):
        vec = jnp.asarray(vec, f32).reshape(-1)
        return tbl.at[i, :vec.shape[0]].set(vec)

    b_trunk = jnp.concatenate(
        [jnp.tile(jnp.asarray(params["b_in"], f32), PACK)]
        + [jnp.tile(rb[r], PACK) for r in range(R)])
    bias = setrow(bias, 0, b_trunk)
    for r in range(R):
        bias = setrow(bias, 1 + 2 * r, jnp.tile(res_b0[r], PACK))
        bias = setrow(bias, 2 + 2 * r, jnp.tile(res_b1[r], PACK))
    bias = setrow(bias, 1 + 2 * R, params["b1"])
    bias = setrow(bias, 2 + 2 * R, params["b2"])
    bias = setrow(bias, 3 + 2 * R, params["b3a"])
    bias = setrow(bias, 4 + 2 * R, params["b3b"])
    bias = setrow(bias, 5 + 2 * R, params["b_out"])

    return dict(
        wtr=wtr, wres=wres, wtail=wtail, bias=bias,
        dims=dict(Din0=Din0, L=L, R=R, Ddir=Ddir, D3=D3, outw=outw, Dcat=Dcat),
        offs=(o_w1, o_w2, o_w3a, o_w3b, o_wo),
    )


# ----------------------------------------------------------------------------
# Wrapper
# ----------------------------------------------------------------------------
def _pick_tm(M, target_steps=4, cap=512):
    # Big row tiles, but >= target_steps grid steps when possible so both v7x
    # TensorCores get >= 2 pipelined steps; per-step overhead stays amortised
    # on single-core v5e/v6e.  VMEM is never the constraint for this kernel.
    step = 8 * PACK  # q = tm / PACK must be a sublane multiple
    cands = [t for t in range(step, min(cap, M) + 1, step) if M % t == 0]
    assert cands, "M (rows after the view mean) must be a multiple of 32"
    good = [t for t in cands if M // t >= target_steps]
    return max(good) if good else max(cands)


def pixelnerf_forward(points, dirs, enc, prepared, *, num_in_views, tm=None):
    d = prepared["dims"]
    Din0, L, R, Ddir, outw, Dcat = (d["Din0"], d["L"], d["R"], d["Ddir"],
                                    d["outw"], d["Dcat"])
    V = num_in_views
    N = points.shape[0]
    assert N % V == 0
    M = N // V
    assert points.shape[1] == Din0 and enc.shape == (N, L)
    assert dirs.shape == (M, Ddir)

    if tm is None:
        tm = _pick_tm(M)
    assert M % tm == 0 and tm % (8 * PACK) == 0, "pad M to a multiple of 32"
    q = tm // PACK
    G = M // tm

    # View-major, 4x lane-packed trunk input:
    #   x_trunk[i, v*q + p, j*Dcat + c] = [points|enc][(i*tm + j*q + p)*V + v, c]
    # TODO(synk): have the producer emit this layout directly to avoid the
    # extra HBM pass over points/enc when M is large.
    x_cat = jnp.concatenate([points.astype(jnp.float32),
                             enc.astype(jnp.float32)], axis=-1)
    x_trunk = (x_cat.reshape(G, PACK, q, V, Dcat)
               .transpose(0, 3, 2, 1, 4)
               .reshape(G, V * q, PACK * Dcat))

    kernel = functools.partial(_pixelnerf_kernel, V, R, L, Ddir, outw, q,
                               prepared["offs"])

    def _full(shape):
        nd = len(shape)
        return pl.BlockSpec(shape, lambda i, nd=nd: (0,) * nd)

    fused = pl.pallas_call(
        kernel,
        out_shape=jax.ShapeDtypeStruct((M, 1 + outw), jnp.float32),
        grid=(G,),
        in_specs=[
            pl.BlockSpec((None, V * q, PACK * Dcat), lambda i: (i, 0, 0)),
            pl.BlockSpec((tm, Ddir), lambda i: (i, 0)),
            _full(prepared["wtr"].shape),
            _full(prepared["wres"].shape),
            _full(prepared["wtail"].shape),
            _full(prepared["bias"].shape),
        ],
        out_specs=pl.BlockSpec((tm, 1 + outw), lambda i: (i, 0)),
        scratch_shapes=[pltpu.VMEM((tm, L), jnp.float32)],
        compiler_params=pltpu.CompilerParams(
            dimension_semantics=("parallel",)),
    )(x_trunk, dirs.astype(jnp.float32), prepared["wtr"], prepared["wres"],
      prepared["wtail"], prepared["bias"])

    return fused[:, 0], fused[:, 1:]


# ----------------------------------------------------------------------------
# Deterministic parameter init (mirrors the nn.init calls in __init__)
# ----------------------------------------------------------------------------
def init_params(key, arch, *, dense_init_for_test=False):
    Din0, Ddir = arch["inpt"]
    L = arch["latent_dim"]
    outpt = arch["out"]
    R = arch["res_blocks"] - 2
    ML = arch["mean_layer"]
    D3 = L + Ddir

    def kaiming(k, shape):  # shape = (fan_in, fan_out); kaiming_normal_(fan_in)
        std = math.sqrt(2.0 / shape[0])
        return (std * jax.random.normal(k, shape)).astype(jnp.float32)

    # nn.init.zeros_ on linear_2 / linear_3[3]; optionally replaced by small
    # random values so the correctness check exercises every code path.
    def zeros_or_small(k, shape):
        if dense_init_for_test:
            return (0.05 * jax.random.normal(k, shape)).astype(jnp.float32)
        return jnp.zeros(shape, jnp.float32)

    keys = jax.random.split(key, 6 + 2 * R + ML)
    ki = iter(keys)
    params = {
        "w_in": kaiming(next(ki), (Din0, L)),
        "b_in": jnp.zeros((L,), jnp.float32),
        "res_w0": jnp.stack([kaiming(next(ki), (L, L)) for _ in range(R)]),
        "res_b0": jnp.zeros((R, L), jnp.float32),
        "res_w1": jnp.stack([kaiming(next(ki), (L, L)) for _ in range(R)]),
        "res_b1": jnp.zeros((R, L), jnp.float32),
        "rw": jnp.stack([kaiming(next(ki), (L, L)) for _ in range(ML)]),
        "rb": jnp.zeros((ML, L), jnp.float32),
        "w1": kaiming(next(ki), (L, L + 1)),
        "b1": jnp.zeros((L + 1,), jnp.float32),
        "w2": zeros_or_small(next(ki), (L + 1, L)),
        "b2": jnp.zeros((L,), jnp.float32),
        "w3a": kaiming(next(ki), (D3, D3)),
        "b3a": jnp.zeros((D3,), jnp.float32),
        "w3b": zeros_or_small(next(ki), (D3, D3)),
        "b3b": jnp.zeros((D3,), jnp.float32),
        "w_out": kaiming(next(ki), (D3, outpt)),
        "b_out": jnp.zeros((outpt,), jnp.float32),
    }
    return params


# ----------------------------------------------------------------------------
# Pure-JAX reference (same math, no Pallas) for the correctness check
# ----------------------------------------------------------------------------
def reference_forward(points, dirs, enc, params, *, num_in_views):
    V = num_in_views
    out = points @ params["w_in"] + params["b_in"]
    R = params["res_w0"].shape[0]
    for r in range(R):
        residual = enc @ params["rw"][r] + params["rb"][r]
        out = out + residual
        h = jnp.maximum(out, 0.0) @ params["res_w0"][r] + params["res_b0"][r]
        h = jnp.maximum(h, 0.0) @ params["res_w1"][r] + params["res_b1"][r]
        out = out + h
    if V > 1:
        out = jnp.mean(out.reshape(out.shape[0] // V, V, out.shape[1]), axis=1)
    out1 = jnp.maximum(out, 0.0) @ params["w1"] + params["b1"]
    density = jnp.maximum(out1[..., 0], 0.0)
    out1b = jnp.maximum(out1, 0.0) @ params["w2"] + params["b2"] + out
    final_in = jnp.concatenate([out1b, dirs], axis=-1)
    h3 = jnp.maximum(final_in, 0.0) @ params["w3a"] + params["b3a"]
    h3 = jnp.maximum(h3, 0.0) @ params["w3b"] + params["b3b"]
    out2 = h3 + final_in
    rgb = jax.nn.sigmoid(out2 @ params["w_out"] + params["b_out"])
    return density, rgb


# ----------------------------------------------------------------------------
if __name__ == "__main__":
    arch = dict(inpt=(9, 3), out=3, latent_dim=32,
                res_blocks=4, mean_layer=2, num_in_views=2)
    V = arch["num_in_views"]
    M = 1024              # rows after the view mean (== dirs rows)
    N = M * V             # rows of points / encoder_vectors

    key = jax.random.PRNGKey(0)
    kp, kd, ke, kw = jax.random.split(key, 4)
    points = jax.random.normal(kp, (N, arch["inpt"][0]), jnp.float32)
    dirs = jax.random.normal(kd, (M, arch["inpt"][1]), jnp.float32)
    enc = jax.random.normal(ke, (N, arch["latent_dim"]), jnp.float32)
    params = init_params(kw, arch, dense_init_for_test=True)

    prepared = prepare_params(params)   # one-time preprocessing (fb #11)

    @jax.jit
    def run(points, dirs, enc):
        return pixelnerf_forward(points, dirs, enc, prepared, num_in_views=V)

    density, rgb = run(points, dirs, enc)
    jax.block_until_ready((density, rgb))

    d_ref, r_ref = reference_forward(points, dirs, enc, params, num_in_views=V)
    assert density.shape == (M,) and rgb.shape == (M, arch["out"])
    assert jnp.allclose(density, d_ref, atol=2e-3, rtol=2e-3), \
        float(jnp.max(jnp.abs(density - d_ref)))
    assert jnp.allclose(rgb, r_ref, atol=2e-3, rtol=2e-3), \
        float(jnp.max(jnp.abs(rgb - r_ref)))
    print("KERNEL_OK")
</pallas_src>

<mosaic_0001>
module attributes {stable_mosaic.version = 11 : i64} {
  func.func @_pixelnerf_kernel(%arg0: i32, %arg1: memref<1x128x164xf32, #tpu.memory_space<vmem>>, %arg2: memref<256x3xf32, #tpu.memory_space<vmem>>, %arg3: memref<164x384xf32, #tpu.memory_space<vmem>>, %arg4: memref<4x128x128xf32, #tpu.memory_space<vmem>>, %arg5: memref<192x35xf32, #tpu.memory_space<vmem>>, %arg6: memref<10x384xf32, #tpu.memory_space<vmem>>, %arg7: memref<256x4xf32, #tpu.memory_space<vmem>>, %arg8: memref<256x32xf32, #tpu.memory_space<vmem>>) attributes {dimension_semantics = [#tpu.dimension_semantics<parallel>], iteration_bounds = array<i64: 4>, scalar_prefetch = 0 : i64, scratch_operands = 1 : i64, tpu.core_type = #tpu.core_type<tc>, window_params = [{transform_indices = @transform_0, window_bounds = array<i64: 1, 128, 164>}, {transform_indices = @transform_1, window_bounds = array<i64: 256, 3>}, {pipeline_mode = #tpu.pipeline_mode<synchronous>, transform_indices = @transform_2, window_bounds = array<i64: 164, 384>}, {pipeline_mode = #tpu.pipeline_mode<synchronous>, transform_indices = @transform_3, window_bounds = array<i64: 4, 128, 128>}, {pipeline_mode = #tpu.pipeline_mode<synchronous>, transform_indices = @transform_4, window_bounds = array<i64: 192, 35>}, {pipeline_mode = #tpu.pipeline_mode<synchronous>, transform_indices = @transform_5, window_bounds = array<i64: 10, 384>}, {transform_indices = @transform_6, window_bounds = array<i64: 256, 4>}]} {
    %c0 = arith.constant 0 : index
    %c0_0 = arith.constant 0 : index
    %0 = vector.load %arg6[%c0, %c0_0] : memref<10x384xf32, #tpu.memory_space<vmem>>, vector<1x384xf32>
    %c5 = arith.constant 5 : index
    %c0_1 = arith.constant 0 : index
    %1 = vector.load %arg6[%c5, %c0_1] : memref<10x384xf32, #tpu.memory_space<vmem>>, vector<1x33xf32>
    %c6 = arith.constant 6 : index
    %c0_2 = arith.constant 0 : index
    %2 = vector.load %arg6[%c6, %c0_2] : memref<10x384xf32, #tpu.memory_space<vmem>>, vector<1x32xf32>
    %c7 = arith.constant 7 : index
    %c0_3 = arith.constant 0 : index
    %3 = vector.load %arg6[%c7, %c0_3] : memref<10x384xf32, #tpu.memory_space<vmem>>, vector<1x35xf32>
    %c8 = arith.constant 8 : index
    %c0_4 = arith.constant 0 : index
    %4 = vector.load %arg6[%c8, %c0_4] : memref<10x384xf32, #tpu.memory_space<vmem>>, vector<1x35xf32>
    %c9 = arith.constant 9 : index
    %c0_5 = arith.constant 0 : index
    %5 = vector.load %arg6[%c9, %c0_5] : memref<10x384xf32, #tpu.memory_space<vmem>>, vector<1x3xf32>
    %c0_6 = arith.constant 0 : index
    %c0_7 = arith.constant 0 : index
    %c0_8 = arith.constant 0 : index
    %6 = vector.load %arg1[%c0_6, %c0_7, %c0_8] : memref<1x128x164xf32, #tpu.memory_space<vmem>>, vector<1x128x164xf32>
    %7 = vector.shape_cast %6 : vector<1x128x164xf32> to vector<128x164xf32>
    %c0_9 = arith.constant 0 : index
    %c0_10 = arith.constant 0 : index
    %8 = vector.load %arg3[%c0_9, %c0_10] : memref<164x384xf32, #tpu.memory_space<vmem>>, vector<164x384xf32>
    %cst = arith.constant dense<0.000000e+00> : vector<128x384xf32>
    %9 = tpu.matmul %7, %8, %cst {dimension_numbers = #tpu.dot_dimension_numbers<[1], [0], [0], [1], [0, 0, 1, 1], [], []>} : vector<128x164xf32>, vector<164x384xf32>, vector<128x384xf32> -> vector<128x384xf32>
    %10 = vector.broadcast %0 : vector<1x384xf32> to vector<128x384xf32>
    %11 = arith.addf %9, %10 : vector<128x384xf32>
    %12 = vector.extract_strided_slice %11 {offsets = [0, 0], sizes = [128, 128], strides = [1, 1]} : vector<128x384xf32> to vector<128x128xf32>
    %13 = vector.extract_strided_slice %11 {offsets = [0, 128], sizes = [128, 128], strides = [1, 1]} : vector<128x384xf32> to vector<128x128xf32>
    %14 = arith.addf %12, %13 : vector<128x128xf32>
    %cst_11 = arith.constant 0.000000e+00 : f32
    %15 = vector.broadcast %cst_11 : f32 to vector<128x128xf32>
    %16 = arith.maximumf %14, %15 : vector<128x128xf32>
    %c0_12 = arith.constant 0 : index
    %c0_13 = arith.constant 0 : index
    %c0_14 = arith.constant 0 : index
    %17 = vector.load %arg4[%c0_12, %c0_13, %c0_14] : memref<4x128x128xf32, #tpu.memory_space<vmem>>, vector<1x128x128xf32>
    %18 = vector.shape_cast %17 : vector<1x128x128xf32> to vector<128x128xf32>
    %cst_15 = arith.constant dense<0.000000e+00> : vector<128x128xf32>
    %19 = tpu.matmul %16, %18, %cst_15 {dimension_numbers = #tpu.dot_dimension_numbers<[1], [0], [0], [1], [0, 0, 1, 1], [], []>} : vector<128x128xf32>, vector<128x128xf32>, vector<128x128xf32> -> vector<128x128xf32>
    %c1 = arith.constant 1 : index
    %c0_16 = arith.constant 0 : index
    %20 = vector.load %arg6[%c1, %c0_16] : memref<10x384xf32, #tpu.memory_space<vmem>>, vector<1x128xf32>
    %21 = vector.broadcast %20 : vector<1x128xf32> to vector<128x128xf32>
    %22 = arith.addf %19, %21 : vector<128x128xf32>
    %cst_17 = arith.constant 0.000000e+00 : f32
    %23 = vector.broadcast %cst_17 : f32 to vector<128x128xf32>
    %24 = arith.maximumf %22, %23 : vector<128x128xf32>
    %c1_18 = arith.constant 1 : index
    %c0_19 = arith.constant 0 : index
    %c0_20 = arith.constant 0 : index
    %25 = vector.load %arg4[%c1_18, %c0_19, %c0_20] : memref<4x128x128xf32, #tpu.memory_space<vmem>>, vector<1x128x128xf32>
    %26 = vector.shape_cast %25 : vector<1x128x128xf32> to vector<128x128xf32>
    %cst_21 = arith.constant dense<0.000000e+00> : vector<128x128xf32>
    %27 = tpu.matmul %24, %26, %cst_21 {dimension_numbers = #tpu.dot_dimension_numbers<[1], [0], [0], [1], [0, 0, 1, 1], [], []>} : vector<128x128xf32>, vector<128x128xf32>, vector<128x128xf32> -> vector<128x128xf32>
    %c2 = arith.constant 2 : index
    %c0_22 = arith.constant 0 : index
    %28 = vector.load %arg6[%c2, %c0_22] : memref<10x384xf32, #tpu.memory_space<vmem>>, vector<1x128xf32>
    %29 = vector.broadcast %28 : vector<1x128xf32> to vector<128x128xf32>
    %30 = arith.addf %27, %29 : vector<128x128xf32>
    %31 = arith.addf %14, %30 : vector<128x128xf32>
    %32 = vector.extract_strided_slice %11 {offsets = [0, 256], sizes = [128, 128], strides = [1, 1]} : vector<128x384xf32> to vector<128x128xf32>
    %33 = arith.addf %31, %32 : vector<128x128xf32>
    %cst_23 = arith.constant 0.000000e+00 : f32
    %34 = vector.broadcast %cst_23 : f32 to vector<128x128xf32>
    %35 = arith.maximumf %33, %34 : vector<128x128xf32>
    %c2_24 = arith.constant 2 : index
    %c0_25 = arith.constant 0 : index
    %c0_26 = arith.constant 0 : index
    %36 = vector.load %arg4[%c2_24, %c0_25, %c0_26] : memref<4x128x128xf32, #tpu.memory_space<vmem>>, vector<1x128x128xf32>
    %37 = vector.shape_cast %36 : vector<1x128x128xf32> to vector<128x128xf32>
    %cst_27 = arith.constant dense<0.000000e+00> : vector<128x128xf32>
    %38 = tpu.matmul %35, %37, %cst_27 {dimension_numbers = #tpu.dot_dimension_numbers<[1], [0], [0], [1], [0, 0, 1, 1], [], []>} : vector<128x128xf32>, vector<128x128xf32>, vector<128x128xf32> -> vector<128x128xf32>
    %c3 = arith.constant 3 : index
    %c0_28 = arith.constant 0 : index
    %39 = vector.load %arg6[%c3, %c0_28] : memref<10x384xf32, #tpu.memory_space<vmem>>, vector<1x128xf32>
    %40 = vector.broadcast %39 : vector<1x128xf32> to vector<128x128xf32>
    %41 = arith.addf %38, %40 : vector<128x128xf32>
    %cst_29 = arith.constant 0.000000e+00 : f32
    %42 = vector.broadcast %cst_29 : f32 to vector<128x128xf32>
    %43 = arith.maximumf %41, %42 : vector<128x128xf32>
    %c3_30 = arith.constant 3 : index
    %c0_31 = arith.constant 0 : index
    %c0_32 = arith.constant 0 : index
    %44 = vector.load %arg4[%c3_30, %c0_31, %c0_32] : memref<4x128x128xf32, #tpu.memory_space<vmem>>, vector<1x128x128xf32>
    %45 = vector.shape_cast %44 : vector<1x128x128xf32> to vector<128x128xf32>
    %cst_33 = arith.constant dense<0.000000e+00> : vector<128x128xf32>
    %46 = tpu.matmul %43, %45, %cst_33 {dimension_numbers = #tpu.dot_dimension_numbers<[1], [0], [0], [1], [0, 0, 1, 1], [], []>} : vector<128x128xf32>, vector<128x128xf32>, vector<128x128xf32> -> vector<128x128xf32>
    %c4 = arith.constant 4 : index
    %c0_34 = arith.constant 0 : index
    %47 = vector.load %arg6[%c4, %c0_34] : memref<10x384xf32, #tpu.memory_space<vmem>>, vector<1x128xf32>
    %48 = vector.broadcast %47 : vector<1x128xf32> to vector<128x128xf32>
    %49 = arith.addf %46, %48 : vector<128x128xf32>
    %50 = arith.addf %33, %49 : vector<128x128xf32>
    %51 = vector.extract_strided_slice %50 {offsets = [0, 0], sizes = [64, 128], strides = [1, 1]} : vector<128x128xf32> to vector<64x128xf32>
    %52 = vector.extract_strided_slice %50 {offsets = [64, 0], sizes = [64, 128], strides = [1, 1]} : vector<128x128xf32> to vector<64x128xf32>
    %53 = arith.addf %51, %52 : vector<64x128xf32>
    %cst_35 = arith.constant 5.000000e-01 : f32
    %54 = vector.broadcast %cst_35 : f32 to vector<64x128xf32>
    %55 = arith.mulf %53, %54 : vector<64x128xf32>
    %56 = vector.extract_strided_slice %55 {offsets = [0, 0], sizes = [64, 32], strides = [1, 1]} : vector<64x128xf32> to vector<64x32xf32>
    %c0_36 = arith.constant 0 : index
    %c0_37 = arith.constant 0 : index
    %57 = vector.load %arg8[%c0_36, %c0_37] : memref<256x32xf32, #tpu.memory_space<vmem>>, vector<64x32xf32>
    tpu.vector_store %arg8[%c0_36, %c0_37], %56 {strides = array<i32>} : memref<256x32xf32, #tpu.memory_space<vmem>>, vector<64x32xf32>,
    %58 = vector.extract_strided_slice %55 {offsets = [0, 32], sizes = [64, 32], strides = [1, 1]} : vector<64x128xf32> to vector<64x32xf32>
    %c64 = arith.constant 64 : index
    %c0_38 = arith.constant 0 : index
    %59 = vector.load %arg8[%c64, %c0_38] : memref<256x32xf32, #tpu.memory_space<vmem>>, vector<64x32xf32>
    tpu.vector_store %arg8[%c64, %c0_38], %58 {strides = array<i32>} : memref<256x32xf32, #tpu.memory_space<vmem>>, vector<64x32xf32>,
    %60 = vector.extract_strided_slice %55 {offsets = [0, 64], sizes = [64, 32], strides = [1, 1]} : vector<64x128xf32> to vector<64x32xf32>
    %c128 = arith.constant 128 : index
    %c0_39 = arith.constant 0 : index
    %61 = vector.load %arg8[%c128, %c0_39] : memref<256x32xf32, #tpu.memory_space<vmem>>, vector<64x32xf32>
    tpu.vector_store %arg8[%c128, %c0_39], %60 {strides = array<i32>} : memref<256x32xf32, #tpu.memory_space<vmem>>, vector<64x32xf32>,
    %62 = vector.extract_strided_slice %55 {offsets = [0, 96], sizes = [64, 32], strides = [1, 1]} : vector<64x128xf32> to vector<64x32xf32>
    %c192 = arith.constant 192 : index
    %c0_40 = arith.constant 0 : index
    %63 = vector.load %arg8[%c192, %c0_40] : memref<256x32xf32, #tpu.memory_space<vmem>>, vector<64x32xf32>
    tpu.vector_store %arg8[%c192, %c0_40], %62 {strides = array<i32>} : memref<256x32xf32, #tpu.memory_space<vmem>>, vector<64x32xf32>,
    %c0_41 = arith.constant 0 : index
    %c0_42 = arith.constant 0 : index
    %64 = vector.load %arg8[%c0_41, %c0_42] : memref<256x32xf32, #tpu.memory_space<vmem>>, vector<256x32xf32>
    %c0_43 = arith.constant 0 : index
    %c0_44 = arith.constant 0 : index
    %65 = vector.load %arg5[%c0_43, %c0_44] : memref<192x35xf32, #tpu.memory_space<vmem>>, vector<32x33xf32>
    %c32 = arith.constant 32 : index
    %c0_45 = arith.constant 0 : index
    %66 = vector.load %arg5[%c32, %c0_45] : memref<192x35xf32, #tpu.memory_space<vmem>>, vector<33x32xf32>
    %c72 = arith.constant 72 : index
    %c0_46 = arith.constant 0 : index
    %67 = vector.load %arg5[%c72, %c0_46] : memref<192x35xf32, #tpu.memory_space<vmem>>, vector<32x35xf32>
    %c112 = arith.constant 112 : index
    %c0_47 = arith.constant 0 : index
    %68 = vector.load %arg5[%c112, %c0_47] : memref<192x35xf32, #tpu.memory_space<vmem>>, vector<35x35xf32>
    %c152 = arith.constant 152 : index
    %c0_48 = arith.constant 0 : index
    %69 = vector.load %arg5[%c152, %c0_48] : memref<192x35xf32, #tpu.memory_space<vmem>>, vector<35x3xf32>
    %c152_49 = arith.constant 152 : index
    %c0_50 = arith.constant 0 : index
    %70 = vector.load %arg5[%c152_49, %c0_50] : memref<192x35xf32, #tpu.memory_space<vmem>>, vector<32x3xf32>
    %cst_51 = arith.constant 0.000000e+00 : f32
    %71 = vector.broadcast %cst_51 : f32 to vector<256x32xf32>
    %72 = arith.maximumf %64, %71 : vector<256x32xf32>
    %cst_52 = arith.constant dense<0.000000e+00> : vector<256x33xf32>
    %73 = tpu.matmul %72, %65, %cst_52 {dimension_numbers = #tpu.dot_dimension_numbers<[1], [0], [0], [1], [0, 0, 1, 1], [], []>} : vector<256x32xf32>, vector<32x33xf32>, vector<256x33xf32> -> vector<256x33xf32>
    %74 = vector.broadcast %1 : vector<1x33xf32> to vector<256x33xf32>
    %75 = arith.addf %73, %74 : vector<256x33xf32>
    %76 = vector.extract_strided_slice %75 {offsets = [0, 0], sizes = [256, 1], strides = [1, 1]} : vector<256x33xf32> to vector<256x1xf32>
    %cst_53 = arith.constant 0.000000e+00 : f32
    %77 = vector.broadcast %cst_53 : f32 to vector<256x1xf32>
    %78 = arith.maximumf %76, %77 : vector<256x1xf32>
    %cst_54 = arith.constant 0.000000e+00 : f32
    %79 = vector.broadcast %cst_54 : f32 to vector<256x33xf32>
    %80 = arith.maximumf %75, %79 : vector<256x33xf32>
    %cst_55 = arith.constant dense<0.000000e+00> : vector<256x32xf32>
    %81 = tpu.matmul %80, %66, %cst_55 {dimension_numbers = #tpu.dot_dimension_numbers<[1], [0], [0], [1], [0, 0, 1, 1], [], []>} : vector<256x33xf32>, vector<33x32xf32>, vector<256x32xf32> -> vector<256x32xf32>
    %82 = vector.broadcast %2 : vector<1x32xf32> to vector<256x32xf32>
    %83 = arith.addf %81, %82 : vector<256x32xf32>
    %84 = arith.addf %83, %64 : vector<256x32xf32>
    %c0_56 = arith.constant 0 : index
    %c0_57 = arith.constant 0 : index
    %85 = vector.load %arg2[%c0_56, %c0_57] : memref<256x3xf32, #tpu.memory_space<vmem>>, vector<256x3xf32>
    %cst_58 = arith.constant 0.000000e+00 : f32
    %86 = vector.broadcast %cst_58 : f32 to vector<256x3xf32>
    %87 = arith.maximumf %85, %86 : vector<256x3xf32>
    %cst_59 = arith.constant 0.000000e+00 : f32
    %88 = vector.broadcast %cst_59 : f32 to vector<256x32xf32>
    %89 = arith.maximumf %84, %88 : vector<256x32xf32>
    %cst_60 = arith.constant dense<0.000000e+00> : vector<256x35xf32>
    %90 = tpu.matmul %89, %67, %cst_60 {dimension_numbers = #tpu.dot_dimension_numbers<[1], [0], [0], [1], [0, 0, 1, 1], [], []>} : vector<256x32xf32>, vector<32x35xf32>, vector<256x35xf32> -> vector<256x35xf32>
    %91 = vector.broadcast %3 : vector<1x35xf32> to vector<256x35xf32>
    %92 = arith.addf %90, %91 : vector<256x35xf32>
    %93 = vector.extract_strided_slice %87 {offsets = [0, 0], sizes = [256, 1], strides = [1, 1]} : vector<256x3xf32> to vector<256x1xf32>
    %c104 = arith.constant 104 : index
    %c0_61 = arith.constant 0 : index
    %94 = vector.load %arg5[%c104, %c0_61] : memref<192x35xf32, #tpu.memory_space<vmem>>, vector<1x35xf32>
    %95 = vector.broadcast %93 : vector<256x1xf32> to vector<256x35xf32>
    %96 = vector.broadcast %94 : vector<1x35xf32> to vector<256x35xf32>
    %97 = arith.mulf %95, %96 : vector<256x35xf32>
    %98 = arith.addf %92, %97 : vector<256x35xf32>
    %99 = vector.extract_strided_slice %87 {offsets = [0, 1], sizes = [256, 1], strides = [1, 1]} : vector<256x3xf32> to vector<256x1xf32>
    %c105 = arith.constant 105 : index
    %c0_62 = arith.constant 0 : index
    %100 = vector.load %arg5[%c105, %c0_62] : memref<192x35xf32, #tpu.memory_space<vmem>>, vector<1x35xf32>
    %101 = vector.broadcast %99 : vector<256x1xf32> to vector<256x35xf32>
    %102 = vector.broadcast %100 : vector<1x35xf32> to vector<256x35xf32>
    %103 = arith.mulf %101, %102 : vector<256x35xf32>
    %104 = arith.addf %98, %103 : vector<256x35xf32>
    %105 = vector.extract_strided_slice %87 {offsets = [0, 2], sizes = [256, 1], strides = [1, 1]} : vector<256x3xf32> to vector<256x1xf32>
    %c106 = arith.constant 106 : index
    %c0_63 = arith.constant 0 : index
    %106 = vector.load %arg5[%c106, %c0_63] : memref<192x35xf32, #tpu.memory_space<vmem>>, vector<1x35xf32>
    %107 = vector.broadcast %105 : vector<256x1xf32> to vector<256x35xf32>
    %108 = vector.broadcast %106 : vector<1x35xf32> to vector<256x35xf32>
    %109 = arith.mulf %107, %108 : vector<256x35xf32>
    %110 = arith.addf %104, %109 : vector<256x35xf32>
    %cst_64 = arith.constant 0.000000e+00 : f32
    %111 = vector.broadcast %cst_64 : f32 to vector<256x35xf32>
    %112 = arith.maximumf %110, %111 : vector<256x35xf32>
    %cst_65 = arith.constant dense<0.000000e+00> : vector<256x35xf32>
    %113 = tpu.matmul %112, %68, %cst_65 {dimension_numbers = #tpu.dot_dimension_numbers<[1], [0], [0], [1], [0, 0, 1, 1], [], []>} : vector<256x35xf32>, vector<35x35xf32>, vector<256x35xf32> -> vector<256x35xf32>
    %114 = vector.broadcast %4 : vector<1x35xf32> to vector<256x35xf32>
    %115 = arith.addf %113, %114 : vector<256x35xf32>
    %cst_66 = arith.constant dense<0.000000e+00> : vector<256x3xf32>
    %116 = tpu.matmul %115, %69, %cst_66 {dimension_numbers = #tpu.dot_dimension_numbers<[1], [0], [0], [1], [0, 0, 1, 1], [], []>} : vector<256x35xf32>, vector<35x3xf32>, vector<256x3xf32> -> vector<256x3xf32>
    %cst_67 = arith.constant dense<0.000000e+00> : vector<256x3xf32>
    %117 = tpu.matmul %84, %70, %cst_67 {dimension_numbers = #tpu.dot_dimension_numbers<[1], [0], [0], [1], [0, 0, 1, 1], [], []>} : vector<256x32xf32>, vector<32x3xf32>, vector<256x3xf32> -> vector<256x3xf32>
    %118 = arith.addf %116, %117 : vector<256x3xf32>
    %119 = vector.broadcast %5 : vector<1x3xf32> to vector<256x3xf32>
    %120 = arith.addf %118, %119 : vector<256x3xf32>
    %121 = vector.extract_strided_slice %85 {offsets = [0, 0], sizes = [256, 1], strides = [1, 1]} : vector<256x3xf32> to vector<256x1xf32>
    %c184 = arith.constant 184 : index
    %c0_68 = arith.constant 0 : index
    %122 = vector.load %arg5[%c184, %c0_68] : memref<192x35xf32, #tpu.memory_space<vmem>>, vector<1x3xf32>
    %123 = vector.broadcast %121 : vector<256x1xf32> to vector<256x3xf32>
    %124 = vector.broadcast %122 : vector<1x3xf32> to vector<256x3xf32>
    %125 = arith.mulf %123, %124 : vector<256x3xf32>
    %126 = arith.addf %120, %125 : vector<256x3xf32>
    %127 = vector.extract_strided_slice %85 {offsets = [0, 1], sizes = [256, 1], strides = [1, 1]} : vector<256x3xf32> to vector<256x1xf32>
    %c185 = arith.constant 185 : index
    %c0_69 = arith.constant 0 : index
    %128 = vector.load %arg5[%c185, %c0_69] : memref<192x35xf32, #tpu.memory_space<vmem>>, vector<1x3xf32>
    %129 = vector.broadcast %127 : vector<256x1xf32> to vector<256x3xf32>
    %130 = vector.broadcast %128 : vector<1x3xf32> to vector<256x3xf32>
    %131 = arith.mulf %129, %130 : vector<256x3xf32>
    %132 = arith.addf %126, %131 : vector<256x3xf32>
    %133 = vector.extract_strided_slice %85 {offsets = [0, 2], sizes = [256, 1], strides = [1, 1]} : vector<256x3xf32> to vector<256x1xf32>
    %c186 = arith.constant 186 : index
    %c0_70 = arith.constant 0 : index
    %134 = vector.load %arg5[%c186, %c0_70] : memref<192x35xf32, #tpu.memory_space<vmem>>, vector<1x3xf32>
    %135 = vector.broadcast %133 : vector<256x1xf32> to vector<256x3xf32>
    %136 = vector.broadcast %134 : vector<1x3xf32> to vector<256x3xf32>
    %137 = arith.mulf %135, %136 : vector<256x3xf32>
    %138 = arith.addf %132, %137 : vector<256x3xf32>
    %139 = arith.negf %138 : vector<256x3xf32>
    %140 = math.exp %139 : vector<256x3xf32>
    %cst_71 = arith.constant 1.000000e+00 : f32
    %141 = vector.broadcast %cst_71 : f32 to vector<256x3xf32>
    %142 = arith.addf %141, %140 : vector<256x3xf32>
    %143 = arith.divf %141, %142 : vector<256x3xf32>
    %144 = tpu.concatenate %78, %143 in 1 : vector<256x1xf32>, vector<256x3xf32> -> vector<256x4xf32>
    %c0_72 = arith.constant 0 : index
    %c0_73 = arith.constant 0 : index
    %145 = vector.load %arg7[%c0_72, %c0_73] : memref<256x4xf32, #tpu.memory_space<vmem>>, vector<256x4xf32>
    tpu.vector_store %arg7[%c0_72, %c0_73], %144 {strides = array<i32>} : memref<256x4xf32, #tpu.memory_space<vmem>>, vector<256x4xf32>,
    return
  }
  func.func @transform_0(%arg0: i32) -> (i32, i32, i32) {
    %c0_i32 = arith.constant 0 : i32
    %c0_i32_0 = arith.constant 0 : i32
    %c0_i32_1 = arith.constant 0 : i32
    return %arg0, %c0_i32, %c0_i32_0 : i32, i32, i32
  }
  func.func @transform_1(%arg0: i32) -> (i32, i32) {
    %c0_i32 = arith.constant 0 : i32
    %c0_i32_0 = arith.constant 0 : i32
    return %arg0, %c0_i32 : i32, i32
  }
  func.func @transform_2(%arg0: i32) -> (i32, i32) {
    %c0_i32 = arith.constant 0 : i32
    %c0_i32_0 = arith.constant 0 : i32
    %c0_i32_1 = arith.constant 0 : i32
    return %c0_i32, %c0_i32_0 : i32, i32
  }
  func.func @transform_3(%arg0: i32) -> (i32, i32, i32) {
    %c0_i32 = arith.constant 0 : i32
    %c0_i32_0 = arith.constant 0 : i32
    %c0_i32_1 = arith.constant 0 : i32
    %c0_i32_2 = arith.constant 0 : i32
    return %c0_i32, %c0_i32_0, %c0_i32_1 : i32, i32, i32
  }
  func.func @transform_4(%arg0: i32) -> (i32, i32) {
    %c0_i32 = arith.constant 0 : i32
    %c0_i32_0 = arith.constant 0 : i32
    %c0_i32_1 = arith.constant 0 : i32
    return %c0_i32, %c0_i32_0 : i32, i32
  }
  func.func @transform_5(%arg0: i32) -> (i32, i32) {
    %c0_i32 = arith.constant 0 : i32
    %c0_i32_0 = arith.constant 0 : i32
    %c0_i32_1 = arith.constant 0 : i32
    return %c0_i32, %c0_i32_0 : i32, i32
  }
  func.func @transform_6(%arg0: i32) -> (i32, i32) {
    %c0_i32 = arith.constant 0 : i32
    %c0_i32_0 = arith.constant 0 : i32
    return %arg0, %c0_i32 : i32, i32
  }
}

</mosaic_0001>

<bundles_post_ra>
// kernel: run.1
= control target key start
LH: loop header
LB: loop body
LE: loop exit
PB: predicated region body
PF: predicated region fallthrough
CT: control target
= control target key end

     0   :  { %s7140_s21 = smov 0   ;;  %s10356_s0 = inlined_call_operand.vmem [shape: f32[4,128,164], index: 0, kind: input, shape index: {}]   ;;  %s10357_s1 = inlined_call_operand.vmem [shape: f32[1024,3], index: 1, kind: input, shape index: {}]   ;;  %s10358_s2 = inlined_call_operand.vmem [shape: f32[164,384], index: 2, kind: input, shape index: {}]   ;;  %s10359_s3 = inlined_call_operand.vmem [shape: f32[4,128,128], index: 3, kind: input, shape index: {}]   ;;  %s10360_s4 = inlined_call_operand.vmem [shape: f32[192,35], index: 4, kind: input, shape index: {}]   ;;  %s10361_s5 = inlined_call_operand.vmem [shape: f32[10,384], index: 5, kind: input, shape index: {}]   ;;  %s10362_s6 = inlined_call_operand.vmem [shape: f32[1024,4], index: 6, kind: output, shape index: {}]  }
   0x1 LB: > { %s7146_s22 = sadd.s32 4294967295, %s7095_s21   ;;  %p5619_p0 = scmp.ge.s32.totalorder %s7095_s21, 1  ;;  %s7095_s21 = sphi %s7140_s21, %s16_s21  }
   0x2   : > { %p223_p1 = scmp.lt.s32.totalorder %s7095_s21, 5 }
   0x4   : > { %p224_p2 = pnand %p5619_p0, %p223_p1 }
   0x6   : > { %227 = sbr.rel (%p224_p2) target bundleno = 2448 (0x990), region = 44 }
   0xb   : > { %v359_v0 = vld [vmem:[%s10358_s2 + $0x170] sm:$0xff]  ;;  %v358_v1 = vld [vmem:[%s10358_s2 + $0x168] sm:$0xff]  ;;  %v356_v2 = vld [vmem:[%s10358_s2 + $0x158] sm:$0xff]  ;;  %p258_p3 = scmp.lt.s32.totalorder %s7146_s22, 3  ;;  %vm392_vm0 = vcmask 293888   ;;  %vm441_vm1 = vcmask 1043456  }
   0xc   : > { %451 = vmatprep.subr.mxu0 %v359_v0  ;;  %v355_v3 = vld [vmem:[%s10358_s2 + $0x150] sm:$0xff]  ;;  %v353_v4 = vld [vmem:[%s10358_s2 + $0x140] sm:$0xff]  ;;  %v352_v5 = vld [vmem:[%s10358_s2 + $0x138] sm:$0xff]  ;;  %vm1552_vm2 = vcmask 261120   ;;  %s7098_s15 = smov 96   ;;  %s7099_s16 = smov 64  }
   0xd   : > { %452 = vmatpush1.msra.mxu0 %v358_v1  ;;  %v350_v6 = vld [vmem:[%s10358_s2 + $0x128] sm:$0xff]  ;;  %s259_s13 = scalar_select %p258_p3, %s7146_s22, 3  ;;  %v349_v7 = vld [vmem:[%s10358_s2 + $0x120] sm:$0xff]  ;;  %v347_v8 = vld [vmem:[%s10358_s2 + $0x110] sm:$0xff]  ;;  %vm2202_vm3 = vcmask 1040384   ;;  %vm2105_vm4 = vcmask 269312  }
   0xe   : > { %453 = vmatprep.subr.mxu0 %v356_v2  ;;  %v346_v9 = vld [vmem:[%s10358_s2 + $0x108] sm:$0xff]  ;;  %v344_v10 = vld [vmem:[%s10358_s2 + $0xf8] sm:$0xff]  ;;  %v343_v11 = vld [vmem:[%s10358_s2 + $0xf0] sm:$0xff]  ;;  %s7100_s17 = smov 32   ;;  %s5622_s7 = sshll.u32 %s7146_s22, 5  ;;  %vm3632_vm5 = vcmask 1042432  }
   0xf   : > { %454 = vmatpush1.msra.mxu0 %v355_v3  ;;  %s5944_s24 = sshll.u32 %s259_s13, 8  ;;  %v341_v12 = vld [vmem:[%s10358_s2 + $0xe0] sm:$0xff]  ;;  %v340_v13 = vld [vmem:[%s10358_s2 + $0xd8] sm:$0xff]  ;;  %v338_v14 = vld [vmem:[%s10358_s2 + $0xc8] sm:$0xff]  ;;  %p264_p4 = scmp.lt.s32.totalorder %s5622_s7, 127  ;;  %vm3535_vm6 = vcmask 285696  }
  0x10   : > { %455 = vmatprep.subr.mxu0 %v353_v4  ;;  %s7197_s9 = scalar_lea.vmem %s10356_s0, %s5944_s24  ;;  %v337_v15 = vld [vmem:[%s10358_s2 + $0xc0] sm:$0xff]  ;;  %v335_v16 = vld [vmem:[%s10358_s2 + $0xb0] sm:$0xff]  ;;  %v334_v18 = vld [vmem:[%s10358_s2 + $0xa8] sm:$0xff]  ;;  %s7104_s19 = smov 1   ;;  %vm5481_vm7 = vcmask 7168   ;;  %vm5514_vm8 = vcmask 31744  }
  0x11   : > { %456 = vmatpush1.msra.mxu0 %v352_v5  ;;  %v282_v17 = vld [vmem:[%s7197_s9 + $0x8] sm:$0xff]  ;;  %v332_v19 = vld [vmem:[%s10358_s2 + $0x98] sm:$0xff]  ;;  %v331_v20 = vld [vmem:[%s10358_s2 + $0x90] sm:$0xff]  ;;  %s10730_s7 = smov (!%p264_p4, %s5622_s7), 127 }
  0x12   : > { %457 = vmatprep.subr.mxu0 %v350_v6  ;;  %5628 = vmatprep.mubr.msk.f32.mxu0 %vm392_vm0, %v282_v17  ;;  %v329_v21 = vld [vmem:[%s10358_s2 + $0x80] sm:$0xff]  ;;  %v328_v22 = vld [vmem:[%s10358_s2 + $0x78] sm:$0xff]  ;;  %v326_v23 = vld [vmem:[%s10358_s2 + $0x68] sm:$0xff]  ;;  %s5623_s8 = sshll.u32 %s10730_s7, 3 }
  0x13   : > { %458 = vmatpush1.msra.mxu0 %v349_v7  ;;  %5645 = vmatprep.mubr.msk.f32.mxu1 %vm392_vm0, %v282_v17  ;;  %v325_v24 = vld [vmem:[%s10358_s2 + $0x60] sm:$0xff]  ;;  %v323_v25 = vld [vmem:[%s10358_s2 + $0x50] sm:$0xff]  ;;  %v322_v26 = vld [vmem:[%s10358_s2 + $0x48] sm:$0xff]  ;;  %s8231_s22 = scalar_lea.vmem %s10357_s1, %s5623_s8  ;;  %s10112_s24 = scalar_lea.vmem %s10362_s6, %s5623_s8 }
  0x14   : > { %459 = vmatprep.subr.mxu0 %v347_v8  ;;  %v320_v27 = vld [vmem:[%s10358_s2 + $0x38] sm:$0xff]  ;;  %v319_v28 = vld [vmem:[%s10358_s2 + $0x30] sm:$0xff]  ;;  %v317_v29 = vld [vmem:[%s10358_s2 + $0x20] sm:$0xff] }
  0x15   : > { %460 = vmatpush1.msra.mxu0 %v346_v9  ;;  %v316_v30 = vld [vmem:[%s10358_s2 + $0x18] sm:$0xff]  ;;  %v314_v31 = vld [vmem:[%s10358_s2 + $0x8] sm:$0xff]  ;;  %v313_v32 = vld [vmem:[%s10358_s2] sm:$0xff] }
  0x16   : > { %461 = vmatprep.subr.mxu0 %v344_v10  ;;  %v374_v33 = vld [vmem:[%s10358_s2 + $0x1e8] sm:$0xf]  ;;  %v373_v34 = vld [vmem:[%s10358_s2 + $0x1e0] sm:$0xf]  ;;  %v371_v35 = vld [vmem:[%s10358_s2 + $0x1d0] sm:$0xff] }
  0x17   : > { %462 = vmatpush1.msra.mxu0 %v343_v11  ;;  %v370_v36 = vld [vmem:[%s10358_s2 + $0x1c8] sm:$0xff]  ;;  %v368_v37 = vld [vmem:[%s10358_s2 + $0x1b8] sm:$0xff]  ;;  %v367_v38 = vld [vmem:[%s10358_s2 + $0x1b0] sm:$0xff] }
  0x18   : > { %463 = vmatprep.subr.mxu0 %v341_v12  ;;  %v365_v39 = vld [vmem:[%s10358_s2 + $0x1a0] sm:$0xff]  ;;  %v364_v40 = vld [vmem:[%s10358_s2 + $0x198] sm:$0xff]  ;;  %v362_v41 = vld [vmem:[%s10358_s2 + $0x188] sm:$0xff] }
  0x19   : > { %464 = vmatpush1.msra.mxu0 %v340_v13  ;;  %v361_v42 = vld [vmem:[%s10358_s2 + $0x180] sm:$0xff]  ;;  %v804_v44 = vld [vmem:[%s10359_s3 + $0x78] sm:$0xff]  ;;  %v803_v46 = vld [vmem:[%s10359_s3 + $0x70] sm:$0xff] }
  0x1a   : > { %465 = vmatprep.subr.mxu0 %v338_v14  ;;  %v7289_v43 = vld [vmem:[%s7197_s9] sm:$0xff]  ;;  %v7295_v45 = vld [vmem:[%s7197_s9 + $0x18] sm:$0xff]  ;;  %v7304_v47 = vld [vmem:[%s7197_s9 + $0x10] sm:$0xff] }
  0x1b   : > { %466 = vmatpush1.msra.mxu0 %v337_v15  ;;  %v802_v48 = vld [vmem:[%s10359_s3 + $0x68] sm:$0xff]  ;;  %v801_v50 = vld [vmem:[%s10359_s3 + $0x60] sm:$0xff]  ;;  %v800_v52 = vld [vmem:[%s10359_s3 + $0x58] sm:$0xff] }
  0x1c   : > { %467 = vmatprep.subr.mxu0 %v335_v16  ;;  %v7310_v49 = vld [vmem:[%s7197_s9 + $0x28] sm:$0xff]  ;;  %v7319_v51 = vld [vmem:[%s7197_s9 + $0x20] sm:$0xff]  ;;  %v7325_v53 = vld [vmem:[%s7197_s9 + $0x38] sm:$0xff] }
  0x1d   : > { %468 = vmatpush1.msra.mxu0 %v334_v18  ;;  %v799_v54 = vld [vmem:[%s10359_s3 + $0x50] sm:$0xff]  ;;  %v798_v56 = vld [vmem:[%s10359_s3 + $0x48] sm:$0xff]  ;;  %v797_v58 = vld [vmem:[%s10359_s3 + $0x40] sm:$0xff] }
  0x1e   : > { %469 = vmatprep.subr.mxu0 %v332_v19  ;;  %v7334_v55 = vld [vmem:[%s7197_s9 + $0x30] sm:$0xff]  ;;  %v7340_v57 = vld [vmem:[%s7197_s9 + $0x48] sm:$0xff]  ;;  %v7349_v59 = vld [vmem:[%s7197_s9 + $0x40] sm:$0xff] }
  0x1f   : > { %470 = vmatpush1.msra.mxu0 %v331_v20  ;;  %v796_v60 = vld [vmem:[%s10359_s3 + $0x38] sm:$0xff]  ;;  %v795_v62 = vld [vmem:[%s10359_s3 + $0x30] sm:$0xff]  ;;  %v7367_v0 = vld [vmem:[%s7197_s9 + $0x68] sm:$0xff] }
  0x20   : > { %471 = vmatprep.subr.mxu0 %v329_v21  ;;  %v7355_v61 = vld [vmem:[%s7197_s9 + $0x58] sm:$0xff]  ;;  %v7364_v63 = vld [vmem:[%s7197_s9 + $0x50] sm:$0xff]  ;;  %v7373_v1 = vld [vmem:[%s7197_s9 + $0x60] sm:$0xff] }
  0x21   : > { %472 = vmatpush1.msra.mxu0 %v328_v22  ;;  %v7376_v2 = vld [vmem:[%s7197_s9 + $0x78] sm:$0xff]  ;;  %v7382_v3 = vld [vmem:[%s7197_s9 + $0x70] sm:$0xff]  ;;  %v7385_v4 = vld [vmem:[%s7197_s9 + $0x88] sm:$0xff] }
  0x22   : > { %473 = vmatprep.subr.mxu0 %v326_v23  ;;  %v7391_v5 = vld [vmem:[%s7197_s9 + $0x80] sm:$0xff]  ;;  %v7394_v6 = vld [vmem:[%s7197_s9 + $0x98] sm:$0xff]  ;;  %v7400_v7 = vld [vmem:[%s7197_s9 + $0x90] sm:$0xff] }
  0x23   : > { %474 = vmatpush1.msra.mxu0 %v325_v24  ;;  %v7403_v8 = vld [vmem:[%s7197_s9 + $0xa8] sm:$0xff]  ;;  %v7409_v9 = vld [vmem:[%s7197_s9 + $0xa0] sm:$0xff]  ;;  %v7412_v10 = vld [vmem:[%s7197_s9 + $0xb8] sm:$0xff] }
  0x24   : > { %475 = vmatprep.subr.mxu0 %v323_v25  ;;  %v7418_v11 = vld [vmem:[%s7197_s9 + $0xb0] sm:$0xff]  ;;  %v7421_v12 = vld [vmem:[%s7197_s9 + $0xc8] sm:$0xff]  ;;  %v7427_v13 = vld [vmem:[%s7197_s9 + $0xc0] sm:$0xff] }
  0x25   : > { %476 = vmatpush1.msra.mxu0 %v322_v26  ;;  %v7430_v14 = vld [vmem:[%s7197_s9 + $0xd8] sm:$0xff]  ;;  %v7436_v15 = vld [vmem:[%s7197_s9 + $0xd0] sm:$0xff]  ;;  %v7439_v16 = vld [vmem:[%s7197_s9 + $0xe8] sm:$0xff] }
  0x26   : > { %477 = vmatprep.subr.mxu0 %v320_v27  ;;  %v7445_v17 = vld [vmem:[%s7197_s9 + $0xe0] sm:$0xff]  ;;  %v7448_v18 = vld [vmem:[%s7197_s9 + $0xf8] sm:$0xff]  ;;  %v7454_v19 = vld [vmem:[%s7197_s9 + $0xf0] sm:$0xff]  ;;  %v7097_v27 = vmov 0.0  }
  0x27   : > { %478 = vmatpush1.msra.mxu0 %v319_v28  ;;  %v794_v20 = vld [vmem:[%s10359_s3 + $0x28] sm:$0xff]  ;;  %v793_v21 = vld [vmem:[%s10359_s3 + $0x20] sm:$0xff]  ;;  %v792_v22 = vld [vmem:[%s10359_s3 + $0x18] sm:$0xff]  ;;  %612 = vmatprep.subr.mxu1 %v7097_v27 }
  0x28   : > { %479 = vmatprep.subr.mxu0 %v317_v29  ;;  %v791_v23 = vld [vmem:[%s10359_s3 + $0x10] sm:$0xff]  ;;  %v790_v24 = vld [vmem:[%s10359_s3 + $0x8] sm:$0xff]  ;;  %v789_v25 = vld [vmem:[%s10359_s3] sm:$0xff] }
  0x29   : > { %480 = vmatpush1.msra.mxu0 %v316_v30  ;;  %v360_v26 = vld [vmem:[%s10358_s2 + $0x178] sm:$0xff]  ;;  %v357_v28 = vld [vmem:[%s10358_s2 + $0x160] sm:$0xff]  ;;  %v354_v29 = vld [vmem:[%s10358_s2 + $0x148] sm:$0xff] }
  0x2a   : > { %481 = vmatprep.subr.mxu0 %v314_v31  ;;  %613 = vmatpush1.msra.mxu1 %v360_v26  ;;  %v351_v30 = vld [vmem:[%s10358_s2 + $0x130] sm:$0xff]  ;;  %v348_v31 = vld [vmem:[%s10358_s2 + $0x118] sm:$0xff] }
  0x2b   : > { %482 = vmatpush1.msra.mxu0 %v313_v32  ;;  %614 = vmatprep.subr.mxu1 %v7097_v27  ;;  %v345_v32 = vld [vmem:[%s10358_s2 + $0x100] sm:$0xff] }
  0x2c   : > { %5626 = vmatprep.subr.msk.mxu0 %vm441_vm1, %v374_v33  ;;  %615 = vmatpush1.msra.mxu1 %v357_v28  ;;  %v342_v33 = vld [vmem:[%s10358_s2 + $0xe8] sm:$0xff] }
  0x2d   : > { %5627 = vmatpush2.msk.msra.mxu0 %vm441_vm1, %v373_v34  ;;  %616 = vmatprep.subr.mxu1 %v7097_v27  ;;  %v339_v34 = vld [vmem:[%s10358_s2 + $0xd0] sm:$0xff] }
  0x2e   : > { %507 = vmatprep.subr.mxu0 %v371_v35  ;;  %617 = vmatpush1.msra.mxu1 %v354_v29  ;;  %v336_v35 = vld [vmem:[%s10358_s2 + $0xb8] sm:$0xff] }
  0x2f   : > { %508 = vmatpush2.msra.mxu0 %v370_v36  ;;  %618 = vmatprep.subr.mxu1 %v7097_v27  ;;  %v333_v36 = vld [vmem:[%s10358_s2 + $0xa0] sm:$0xff] }
  0x30   : > { %509 = vmatprep.subr.mxu0 %v368_v37  ;;  %619 = vmatpush1.msra.mxu1 %v351_v30  ;;  %v330_v37 = vld [vmem:[%s10358_s2 + $0x88] sm:$0xff] }
  0x31   : > { %510 = vmatpush2.msra.mxu0 %v367_v38  ;;  %620 = vmatprep.subr.mxu1 %v7097_v27  ;;  %v327_v38 = vld [vmem:[%s10358_s2 + $0x70] sm:$0xff] }
  0x32   : > { %511 = vmatprep.subr.mxu0 %v365_v39  ;;  %621 = vmatpush1.msra.mxu1 %v348_v31  ;;  %v324_v39 = vld [vmem:[%s10358_s2 + $0x58] sm:$0xff] }
  0x33   : > { %512 = vmatpush2.msra.mxu0 %v364_v40  ;;  %622 = vmatprep.subr.mxu1 %v7097_v27  ;;  %v321_v40 = vld [vmem:[%s10358_s2 + $0x40] sm:$0xff] }
  0x34   : > { %513 = vmatprep.subr.mxu0 %v362_v41  ;;  %623 = vmatpush1.msra.mxu1 %v345_v32  ;;  %v318_v41 = vld [vmem:[%s10358_s2 + $0x28] sm:$0xff] }
  0x35   : > { %514 = vmatpush2.msra.mxu0 %v361_v42  ;;  %624 = vmatprep.subr.mxu1 %v7097_v27  ;;  %v315_v42 = vld [vmem:[%s10358_s2 + $0x10] sm:$0xff] }
  0x36   : > { %516 = vmatmul.mubr.f32.vlgmr.msra.gmra.mxu0 %v7289_v43  ;;  %6292 = vmatprep.subr.mxu0 %v804_v44 }
  0x37   : > { %5629 = vmatprep.mubr.msk.f32.mxu0 %vm392_vm0, %v7295_v45  ;;  %6293 = vmatpush3.msra.mxu0 %v804_v44  ;;  %v375_v44 = vld [vmem:[%s10358_s2 + $0x1f0] sm:$0xf] }
  0x38   : > { %6294 = vmatprep.subr.mxu0 %v803_v46  ;;  %625 = vmatpush1.msra.mxu1 %v342_v33 }
  0x39   : > { %6295 = vmatpush3.msra.mxu0 %v803_v46  ;;  %626 = vmatprep.subr.mxu1 %v7097_v27  ;;  %v372_v46 = vld [vmem:[%s10358_s2 + $0x1d8] sm:$0xff] }
  0x3a   : > { %522 = vmatmul.mubr.f32.gmra.mxu0 %v7304_v47  ;;  %6296 = vmatprep.subr.mxu0 %v802_v48 }
  0x3b   : > { %5630 = vmatprep.mubr.msk.f32.mxu0 %vm392_vm0, %v7310_v49  ;;  %6297 = vmatpush3.msra.mxu0 %v802_v48  ;;  %v369_v48 = vld [vmem:[%s10358_s2 + $0x1c0] sm:$0xff] }
  0x3c   : > { %6298 = vmatprep.subr.mxu0 %v801_v50  ;;  %627 = vmatpush1.msra.mxu1 %v339_v34 }
  0x3d   : > { %6299 = vmatpush3.msra.mxu0 %v801_v50  ;;  %628 = vmatprep.subr.mxu1 %v7097_v27  ;;  %v366_v50 = vld [vmem:[%s10358_s2 + $0x1a8] sm:$0xff] }
  0x3e   : > { %528 = vmatmul.mubr.f32.gmra.mxu0 %v7319_v51  ;;  %6300 = vmatprep.subr.mxu0 %v800_v52 }
  0x3f   : > { %5631 = vmatprep.mubr.msk.f32.mxu0 %vm392_vm0, %v7325_v53  ;;  %6301 = vmatpush3.msra.mxu0 %v800_v52  ;;  %v363_v52 = vld [vmem:[%s10358_s2 + $0x190] sm:$0xff] }
  0x40   : > { %6302 = vmatprep.subr.mxu0 %v799_v54  ;;  %629 = vmatpush1.msra.mxu1 %v336_v35 }
  0x41   : > { %6303 = vmatpush3.msra.mxu0 %v799_v54  ;;  %630 = vmatprep.subr.mxu1 %v7097_v27  ;;  %v5676_v54 = vld [vmem:[%s10359_s3 + $0xf8] sm:$0xff] }
  0x42   : > { %534 = vmatmul.mubr.f32.gmra.mxu0 %v7334_v55  ;;  %6304 = vmatprep.subr.mxu0 %v798_v56 }
  0x43   : > { %5632 = vmatprep.mubr.msk.f32.mxu0 %vm392_vm0, %v7340_v57  ;;  %6305 = vmatpush3.msra.mxu0 %v798_v56  ;;  %v5675_v56 = vld [vmem:[%s10359_s3 + $0xf0] sm:$0xff] }
  0x44   : > { %6306 = vmatprep.subr.mxu0 %v797_v58  ;;  %631 = vmatpush1.msra.mxu1 %v333_v36 }
  0x45   : > { %6307 = vmatpush3.msra.mxu0 %v797_v58  ;;  %632 = vmatprep.subr.mxu1 %v7097_v27  ;;  %v5674_v58 = vld [vmem:[%s10359_s3 + $0xe8] sm:$0xff] }
  0x46   : > { %540 = vmatmul.mubr.f32.gmra.mxu0 %v7349_v59  ;;  %6308 = vmatprep.subr.mxu0 %v796_v60 }
  0x47   : > { %5633 = vmatprep.mubr.msk.f32.mxu0 %vm392_vm0, %v7355_v61  ;;  %6309 = vmatpush3.msra.mxu0 %v796_v60  ;;  %v377_v60 = vlaneseq }
  0x48   : > { %6310 = vmatprep.subr.mxu0 %v795_v62  ;;  %633 = vmatpush1.msra.mxu1 %v330_v37 }
  0x49   : > { %6311 = vmatpush3.msra.mxu0 %v795_v62  ;;  %634 = vmatprep.subr.mxu1 %v7097_v27  ;;  %v5673_v62 = vld [vmem:[%s10359_s3 + $0xe0] sm:$0xff] }
  0x4a   : > { %546 = vmatmul.mubr.f32.gmra.mxu0 %v7364_v63  ;;  %6312 = vmatprep.subr.mxu0 %v794_v20 }
  0x4b   : > { %5634 = vmatprep.mubr.msk.f32.mxu0 %vm392_vm0, %v7367_v0  ;;  %6313 = vmatpush3.msra.mxu0 %v794_v20  ;;  %v5671_v20 = vld [vmem:[%s10359_s3 + $0xd0] sm:$0xff] }
  0x4c   : > { %6314 = vmatprep.subr.mxu0 %v793_v21  ;;  %635 = vmatpush1.msra.mxu1 %v327_v38 }
  0x4d   : > { %6315 = vmatpush3.msra.mxu0 %v793_v21  ;;  %636 = vmatprep.subr.mxu1 %v7097_v27 }
  0x4e   : > { %552 = vmatmul.mubr.f32.gmra.mxu0 %v7373_v1  ;;  %6316 = vmatprep.subr.mxu0 %v792_v22 }
  0x4f   : > { %5635 = vmatprep.mubr.msk.f32.mxu0 %vm392_vm0, %v7376_v2  ;;  %6317 = vmatpush3.msra.mxu0 %v792_v22  ;;  %v5669_v22 = vld [vmem:[%s10359_s3 + $0xc0] sm:$0xff] }
  0x50   : > { %6318 = vmatprep.subr.mxu0 %v791_v23  ;;  %637 = vmatpush1.msra.mxu1 %v324_v39 }
  0x51   : > { %6319 = vmatpush3.msra.mxu0 %v791_v23  ;;  %638 = vmatprep.subr.mxu1 %v7097_v27 }
  0x52   : > { %558 = vmatmul.mubr.f32.gmra.mxu0 %v7382_v3  ;;  %6320 = vmatprep.subr.mxu0 %v790_v24 }
  0x53   : > { %5636 = vmatprep.mubr.msk.f32.mxu0 %vm392_vm0, %v7385_v4  ;;  %6321 = vmatpush3.msra.mxu0 %v790_v24 }
  0x54   : > { %6322 = vmatprep.subr.mxu0 %v789_v25  ;;  %639 = vmatpush1.msra.mxu1 %v321_v40 }
  0x55   : > { %6323 = vmatpush3.msra.mxu0 %v789_v25  ;;  %640 = vmatprep.subr.mxu1 %v7097_v27 }
  0x56   : > { %564 = vmatmul.mubr.f32.gmra.mxu0 %v7391_v5  ;;  %641 = vmatpush1.msra.mxu1 %v318_v41 }
  0x57   : > { %5637 = vmatprep.mubr.msk.f32.mxu0 %vm392_vm0, %v7394_v6  ;;  %642 = vmatprep.subr.mxu1 %v7097_v27 }
  0x58   : > { %643 = vmatpush1.msra.mxu1 %v315_v42 }
  0x59   : > { %666 = vmatprep.subr.mxu1 %v7097_v27 }
  0x5a   : > { %570 = vmatmul.mubr.f32.gmra.mxu0 %v7400_v7  ;;  %5644 = vmatpush2.msk.msra.mxu1 %vm441_vm1, %v375_v44 }
  0x5b   : > { %5638 = vmatprep.mubr.msk.f32.mxu0 %vm392_vm0, %v7403_v8  ;;  %668 = vmatprep.subr.mxu1 %v7097_v27 }
  0x5c   : > { %669 = vmatpush2.msra.mxu1 %v372_v46 }
  0x5d   : > { %670 = vmatprep.subr.mxu1 %v7097_v27 }
  0x5e   : > { %576 = vmatmul.mubr.f32.gmra.mxu0 %v7409_v9  ;;  %671 = vmatpush2.msra.mxu1 %v369_v48 }
  0x5f   : > { %5639 = vmatprep.mubr.msk.f32.mxu0 %vm392_vm0, %v7412_v10  ;;  %672 = vmatprep.subr.mxu1 %v7097_v27 }
  0x60   : > { %673 = vmatpush2.msra.mxu1 %v366_v50 }
  0x61   : > { %674 = vmatprep.subr.mxu1 %v7097_v27 }
  0x62   : > { %582 = vmatmul.mubr.f32.gmra.mxu0 %v7418_v11  ;;  %675 = vmatpush2.msra.mxu1 %v363_v52 }
  0x63   : > { %5640 = vmatprep.mubr.msk.f32.mxu0 %vm392_vm0, %v7421_v12  ;;  %677 = vmatmul.mubr.f32.vlgmr.msra.gmra.mxu1 %v7289_v43  ;;  %v5672_v43 = vld [vmem:[%s10359_s3 + $0xd8] sm:$0xff] }
  0x64   : > { %6348 = vmatprep.subr.mxu1 %v5676_v54  ;;  %5646 = vmatprep.mubr.msk.f32.mxu1 %vm392_vm0, %v7295_v45  ;;  %v7560_v45 = vshrl.u32 %v377_v60, 7 }
  0x65   : > { %6349 = vmatpush3.msra.mxu1 %v5676_v54 }
  0x66   : > { %588 = vmatmul.mubr.f32.gmra.mxu0 %v7427_v13  ;;  %6350 = vmatprep.subr.mxu1 %v5675_v56  ;;  %v383_v21 = vsub.s32 1, %v7560_v45 }
  0x67   : > { %5641 = vmatprep.mubr.msk.f32.mxu0 %vm392_vm0, %v7430_v14  ;;  %6351 = vmatpush3.msra.mxu1 %v5675_v56 }
  0x68   : > { %682 = vmatmul.mubr.f32.gmra.mxu1 %v7304_v47  ;;  %6352 = vmatprep.subr.mxu1 %v5674_v58  ;;  %v5670_v47 = vld [vmem:[%s10359_s3 + $0xc8] sm:$0xff] }
  0x69   : > { %5647 = vmatprep.mubr.msk.f32.mxu1 %vm392_vm0, %v7310_v49  ;;  %6353 = vmatpush3.msra.mxu1 %v5674_v58  ;;  %v379_v49 = vsub.s32 0, %v7560_v45 }
  0x6a   : > { %594 = vmatmul.mubr.f32.gmra.mxu0 %v7436_v15  ;;  %6354 = vmatprep.subr.mxu1 %v5673_v62 }
  0x6b   : > { %5642 = vmatprep.mubr.msk.f32.mxu0 %vm392_vm0, %v7439_v16  ;;  %6355 = vmatpush3.msra.mxu1 %v5673_v62 }
  0x6c   : > { %687 = vmatmul.mubr.f32.gmra.mxu1 %v7319_v51  ;;  %6356 = vmatprep.subr.mxu1 %v5672_v43  ;;  %v7579_v51 = vld [vmem:[%s10361_s5] ss:$8 sm:$0x7] }
  0x6d   : > { %5648 = vmatprep.mubr.msk.f32.mxu1 %vm392_vm0, %v7325_v53  ;;  %6357 = vmatpush3.msra.mxu1 %v5672_v43  ;;  %v5668_v53 = vld [vmem:[%s10359_s3 + $0xb8] sm:$0xff]  ;;  %v7588_v23 = vrot.slane %v7579_v51, %v379_v49  ;;  %v7591_v24 = vrot.slane %v7579_v51, %v383_v21 }
  0x6e   : > { %600 = vmatmul.mubr.f32.gmra.mxu0 %v7445_v17  ;;  %6358 = vmatprep.subr.mxu1 %v5671_v20 }
  0x6f   : > { %5643 = vmatprep.mubr.msk.f32.mxu0 %vm392_vm0, %v7448_v18  ;;  %6359 = vmatpush3.msra.mxu1 %v5671_v20 }
  0x70   : > { %692 = vmatmul.mubr.f32.gmra.mxu1 %v7334_v55  ;;  %6360 = vmatprep.subr.mxu1 %v5670_v47  ;;  %v5667_v55 = vld [vmem:[%s10359_s3 + $0xb0] sm:$0xff] }
  0x71   : > { %5649 = vmatprep.mubr.msk.f32.mxu1 %vm392_vm0, %v7340_v57  ;;  %6361 = vmatpush3.msra.mxu1 %v5670_v47  ;;  %v5666_v57 = vld [vmem:[%s10359_s3 + $0xa8] sm:$0xff] }
  0x72   : > { %606 = vmatmul.mubr.f32.gmra.mxu0 %v7454_v19  ;;  %6362 = vmatprep.subr.mxu1 %v5669_v22 }
  0x73   : > { %6363 = vmatpush3.msra.mxu1 %v5669_v22 }
  0x74   : > { %697 = vmatmul.mubr.f32.gmra.mxu1 %v7349_v59  ;;  %6364 = vmatprep.subr.mxu1 %v5668_v53  ;;  %v5665_v59 = vld [vmem:[%s10359_s3 + $0xa0] sm:$0xff] }
  0x75   : > { %5650 = vmatprep.mubr.msk.f32.mxu1 %vm392_vm0, %v7355_v61  ;;  %6365 = vmatpush3.msra.mxu1 %v5668_v53 }
  0x76   : > { %6366 = vmatprep.subr.mxu1 %v5667_v55 }
  0x77   : > { %6367 = vmatpush3.msra.mxu1 %v5667_v55 }
  0x78   : > { %702 = vmatmul.mubr.f32.gmra.mxu1 %v7364_v63  ;;  %6368 = vmatprep.subr.mxu1 %v5666_v57 }
  0x79   : > { %5651 = vmatprep.mubr.msk.f32.mxu1 %vm392_vm0, %v7367_v0  ;;  %6369 = vmatpush3.msra.mxu1 %v5666_v57 }
  0x7a   : > { %6370 = vmatprep.subr.mxu1 %v5665_v59 }
  0x7b   : > { %6371 = vmatpush3.msra.mxu1 %v5665_v59 }
  0x7c   : > { %707 = vmatmul.mubr.f32.gmra.mxu1 %v7373_v1 }
  0x7d   : > { %5652 = vmatprep.mubr.msk.f32.mxu1 %vm392_vm0, %v7376_v2 }
  0x80   : > { %712 = vmatmul.mubr.f32.gmra.mxu1 %v7382_v3 }
  0x81   : > { %5653 = vmatprep.mubr.msk.f32.mxu1 %vm392_vm0, %v7385_v4 }
  0x84   : > { %717 = vmatmul.mubr.f32.gmra.mxu1 %v7391_v5 }
  0x85   : > { %5654 = vmatprep.mubr.msk.f32.mxu1 %vm392_vm0, %v7394_v6 }
  0x88   : > { %722 = vmatmul.mubr.f32.gmra.mxu1 %v7400_v7 }
  0x89   : > { %5655 = vmatprep.mubr.msk.f32.mxu1 %vm392_vm0, %v7403_v8 }
  0x8c   : > { %727 = vmatmul.mubr.f32.gmra.mxu1 %v7409_v9 }
  0x8d   : > { %5656 = vmatprep.mubr.msk.f32.mxu1 %vm392_vm0, %v7412_v10 }
  0x90   : > { %732 = vmatmul.mubr.f32.gmra.mxu1 %v7418_v11 }
  0x91   : > { %5657 = vmatprep.mubr.msk.f32.mxu1 %vm392_vm0, %v7421_v12 }
  0x94   : > { %737 = vmatmul.mubr.f32.gmra.mxu1 %v7427_v13 }
  0x95   : > { %5658 = vmatprep.mubr.msk.f32.mxu1 %vm392_vm0, %v7430_v14 }
  0x98   : > { %742 = vmatmul.mubr.f32.gmra.mxu1 %v7436_v15 }
  0x99   : > { %5659 = vmatprep.mubr.msk.f32.mxu1 %vm392_vm0, %v7439_v16 }
  0x9c   : > { %747 = vmatmul.mubr.f32.gmra.mxu1 %v7445_v17 }
  0x9d   : > { %5660 = vmatprep.mubr.msk.f32.mxu1 %vm392_vm0, %v7448_v18 }
  0xa0   : > { %752 = vmatmul.mubr.f32.gmra.mxu1 %v7454_v19 }
  0xf6   : > { %v517_v25 = vpop.f32.mrf.mxu0 }
  0xf7   : > { %v518_v27 = vadd.f32 %v517_v25, %v7588_v23 }
  0xf8   : > { %v519_v26 = vpop.f32.mrf.mxu0 }
  0xf9   : > { %v520_v28 = vadd.f32 %v519_v26, %v7591_v24 }
  0xfa   : > { %v523_v29 = vpop.f32.mrf.mxu0 }
  0xfb   : > { %v7608_v61 = vadd.f32 %v520_v28, %v518_v27  ;;  %v524_v31 = vadd.f32 %v523_v29, %v7588_v23 }
  0xfc   : > { %v525_v30 = vpop.f32.mrf.mxu0 }
  0xfd   : > { %v526_v32 = vadd.f32 %v525_v30, %v7591_v24  ;;  %v773_v33 = vmax.f32 %v7608_v61, 0.0 }
  0xfe   : > { %v529_v34 = vpop.f32.mrf.mxu0 }
  0xff   : > { %v7616_v63 = vadd.f32 %v526_v32, %v524_v31  ;;  %6324 = vmatprep.mubr.f32.mxu0 %v773_v33  ;;  %v530_v36 = vadd.f32 %v529_v34, %v7588_v23 }
 0x100   : > { %v531_v0 = vpop.f32.mrf.mxu0 }
 0x101   : > { %v774_v35 = vmax.f32 %v7616_v63, 0.0  ;;  %v532_v37 = vadd.f32 %v531_v0, %v7591_v24 }
 0x102   : > { %v535_v38 = vpop.f32.mrf.mxu0 }
 0x103   : > { %v7624_v39 = vadd.f32 %v532_v37, %v530_v36  ;;  %6325 = vmatmul.mubr.f32.vlgmr.msra.gmra.mxu0 %v774_v35  ;;  %v536_v40 = vadd.f32 %v535_v38, %v7588_v23 }
 0x104   : > { %v537_v1 = vpop.f32.mrf.mxu0 }
 0x105   : > { %v538_v2 = vadd.f32 %v537_v1, %v7591_v24  ;;  %v775_v41 = vmax.f32 %v7624_v39, 0.0 }
 0x106   : > { %v541_v42 = vpop.f32.mrf.mxu0 }
 0x107   : > { %v7632_v44 = vadd.f32 %v538_v2, %v536_v40  ;;  %6327 = vmatprep.mubr.f32.mxu0 %v775_v41  ;;  %v542_v46 = vadd.f32 %v541_v42, %v7588_v23 }
 0x108   : > { %v543_v3 = vpop.f32.mrf.mxu0 }
 0x109   : > { %v544_v4 = vadd.f32 %v543_v3, %v7591_v24  ;;  %v776_v48 = vmax.f32 %v7632_v44, 0.0 }
 0x10a   : > { %v547_v50 = vpop.f32.mrf.mxu0 }
 0x10b   : > { %v7640_v52 = vadd.f32 %v544_v4, %v542_v46  ;;  %6328 = vmatmul.mubr.f32.gmra.mxu0 %v776_v48  ;;  %v548_v54 = vadd.f32 %v547_v50, %v7588_v23 }
 0x10c   : > { %v549_v5 = vpop.f32.mrf.mxu0 }
 0x10d   : > { %v550_v6 = vadd.f32 %v549_v5, %v7591_v24  ;;  %v777_v56 = vmax.f32 %v7640_v52, 0.0 }
 0x10e   : > { %v553_v58 = vpop.f32.mrf.mxu0 }
 0x10f   : > { %v7648_v60 = vadd.f32 %v550_v6, %v548_v54  ;;  %6330 = vmatprep.mubr.f32.mxu0 %v777_v56  ;;  %v554_v62 = vadd.f32 %v553_v58, %v7588_v23 }
 0x110   : > { %v555_v7 = vpop.f32.mrf.mxu0 }
 0x111   : > { %v556_v8 = vadd.f32 %v555_v7, %v7591_v24  ;;  %v778_v43 = vmax.f32 %v7648_v60, 0.0 }
 0x112   : > { %v559_v20 = vpop.f32.mrf.mxu0 }
 0x113   : > { %v7656_v47 = vadd.f32 %v556_v8, %v554_v62  ;;  %6331 = vmatmul.mubr.f32.gmra.mxu0 %v778_v43  ;;  %v560_v49 = vadd.f32 %v559_v20, %v7588_v23 }
 0x114   : > { %v561_v9 = vpop.f32.mrf.mxu0 }
 0x115   : > { %v562_v10 = vadd.f32 %v561_v9, %v7591_v24  ;;  %v779_v21 = vmax.f32 %v7656_v47, 0.0 }
 0x116   : > { %v565_v22 = vpop.f32.mrf.mxu0 }
 0x117   : > { %v7664_v53 = vadd.f32 %v562_v10, %v560_v49  ;;  %6333 = vmatprep.mubr.f32.mxu0 %v779_v21  ;;  %v566_v55 = vadd.f32 %v565_v22, %v7588_v23  ;;  %v5664_v49 = vld [vmem:[%s10359_s3 + $0x98] sm:$0xff]  ;;  %v5661_v10 = vld [vmem:[%s10359_s3 + $0x80] sm:$0xff]  ;;  %v5691_v22 = vld [vmem:[%s10359_s3 + $0x170] sm:$0xff] }
 0x118   : > { %v567_v11 = vpop.f32.mrf.mxu0  ;;  %6372 = vmatprep.subr.mxu1 %v5664_v49  ;;  %v5692_v21 = vld [vmem:[%s10359_s3 + $0x178] sm:$0xff] }
 0x119   : > { %v568_v12 = vadd.f32 %v567_v11, %v7591_v24  ;;  %v780_v25 = vmax.f32 %v7664_v53, 0.0  ;;  %6373 = vmatpush3.msra.mxu1 %v5664_v49  ;;  %6404 = vmatprep.subr.mxu0 %v5692_v21  ;;  %v5690_v11 = vld [vmem:[%s10359_s3 + $0x168] sm:$0xff] }
 0x11a   : > { %v571_v57 = vpop.f32.mrf.mxu0  ;;  %6405 = vmatpush3.msra.mxu0 %v5692_v21 }
 0x11b   : > { %v7672_v26 = vadd.f32 %v568_v12, %v566_v55  ;;  %6334 = vmatmul.mubr.f32.gmra.mxu0 %v780_v25  ;;  %v572_v27 = vadd.f32 %v571_v57, %v7588_v23  ;;  %6406 = vmatprep.subr.mxu0 %v5691_v22  ;;  %v5689_v55 = vld [vmem:[%s10359_s3 + $0x160] sm:$0xff]  ;;  %v5688_v12 = vld [vmem:[%s10359_s3 + $0x158] sm:$0xff]  ;;  %v5687_v25 = vld [vmem:[%s10359_s3 + $0x150] sm:$0xff] }
 0x11c   : > { %v573_v13 = vpop.f32.mrf.mxu0  ;;  %6407 = vmatpush3.msra.mxu0 %v5691_v22  ;;  %v5686_v57 = vld [vmem:[%s10359_s3 + $0x148] sm:$0xff] }
 0x11d   : > { %v574_v14 = vadd.f32 %v573_v13, %v7591_v24  ;;  %v781_v28 = vmax.f32 %v7672_v26, 0.0  ;;  %6408 = vmatprep.subr.mxu0 %v5690_v11  ;;  %v5685_v13 = vld [vmem:[%s10359_s3 + $0x140] sm:$0xff] }
 0x11e   : > { %v577_v59 = vpop.f32.mrf.mxu0  ;;  %6409 = vmatpush3.msra.mxu0 %v5690_v11 }
 0x11f   : > { %v7680_v29 = vadd.f32 %v574_v14, %v572_v27  ;;  %6336 = vmatprep.mubr.f32.mxu0 %v781_v28  ;;  %v578_v30 = vadd.f32 %v577_v59, %v7588_v23  ;;  %6410 = vmatprep.subr.mxu0 %v5689_v55  ;;  %v5684_v27 = vld [vmem:[%s10359_s3 + $0x138] sm:$0xff]  ;;  %v5683_v14 = vld [vmem:[%s10359_s3 + $0x130] sm:$0xff] }
 0x120   : > { %v579_v15 = vpop.f32.mrf.mxu0  ;;  %6411 = vmatpush3.msra.mxu0 %v5689_v55 }
 0x121   : > { %v580_v16 = vadd.f32 %v579_v15, %v7591_v24  ;;  %v782_v31 = vmax.f32 %v7680_v29, 0.0  ;;  %6412 = vmatprep.subr.mxu0 %v5688_v12 }
 0x122   : > { %v583_v32 = vpop.f32.mrf.mxu0  ;;  %6413 = vmatpush3.msra.mxu0 %v5688_v12 }
 0x123   : > { %v7688_v33 = vadd.f32 %v580_v16, %v578_v30  ;;  %6337 = vmatmul.mubr.f32.gmra.mxu0 %v782_v31  ;;  %v584_v34 = vadd.f32 %v583_v32, %v7588_v23  ;;  %6414 = vmatprep.subr.mxu0 %v5687_v25  ;;  %v7758_v28 = vpop.f32.mrf.mxu1 }
 0x124   : > { %v585_v17 = vpop.f32.mrf.mxu0  ;;  %6415 = vmatpush3.msra.mxu0 %v5687_v25 }
 0x125   : > { %v586_v0 = vadd.f32 %v585_v17, %v7591_v24  ;;  %v783_v18 = vmax.f32 %v7688_v33, 0.0  ;;  %6416 = vmatprep.subr.mxu0 %v5686_v57  ;;  %v680_v59 = vpop.f32.mrf.mxu1 }
 0x126   : > { %v589_v35 = vpop.f32.mrf.mxu0  ;;  %6417 = vmatpush3.msra.mxu0 %v5686_v57 }
 0x127   : > { %v7693_v36 = vadd.f32 %v586_v0, %v584_v34  ;;  %6339 = vmatprep.mubr.f32.mxu0 %v783_v18  ;;  %v590_v38 = vadd.f32 %v589_v35, %v7588_v23  ;;  %6418 = vmatprep.subr.mxu0 %v5685_v13 }
 0x128   : > { %v591_v37 = vpop.f32.mrf.mxu0  ;;  %6419 = vmatpush3.msra.mxu0 %v5685_v13  ;;  %v7760_v15 = vpop.f32.mrf.mxu1 }
 0x129   : > { %v592_v1 = vadd.f32 %v591_v37, %v7591_v24  ;;  %v784_v19 = vmax.f32 %v7693_v36, 0.0  ;;  %6420 = vmatprep.subr.mxu0 %v5684_v27 }
 0x12a   : > { %v595_v40 = vpop.f32.mrf.mxu0  ;;  %6421 = vmatpush3.msra.mxu0 %v5684_v27  ;;  %v685_v30 = vpop.f32.mrf.mxu1 }
 0x12b   : > { %v7698_v2 = vadd.f32 %v592_v1, %v590_v38  ;;  %6340 = vmatmul.mubr.f32.gmra.mxu0 %v784_v19  ;;  %v596_v42 = vadd.f32 %v595_v40, %v7588_v23  ;;  %6422 = vmatprep.subr.mxu0 %v5683_v14  ;;  %v7775_v1 = vld [vmem:[%s10361_s5 + $0x1] ss:$0 sm:$0xff] }
 0x12c   : > { %v597_v41 = vpop.f32.mrf.mxu0  ;;  %6423 = vmatpush3.msra.mxu0 %v5683_v14  ;;  %v7762_v16 = vpop.f32.mrf.mxu1 }
 0x12d   : > { %v598_v3 = vadd.f32 %v597_v41, %v7591_v24  ;;  %v785_v46 = vmax.f32 %v7698_v2, 0.0 }
 0x12e   : > { %v601_v4 = vpop.f32.mrf.mxu0  ;;  %v690_v31 = vpop.f32.mrf.mxu1 }
 0x12f   : > { %v7703_v48 = vadd.f32 %v598_v3, %v596_v42  ;;  %6342 = vmatprep.mubr.f32.mxu0 %v785_v46  ;;  %v602_v5 = vadd.f32 %v601_v4, %v7588_v23 }
 0x130   : > { %v603_v50 = vpop.f32.mrf.mxu0  ;;  %v7764_v32 = vpop.f32.mrf.mxu1 }
 0x131   : > { %v604_v54 = vadd.f32 %v603_v50, %v7591_v24  ;;  %v786_v6 = vmax.f32 %v7703_v48, 0.0 }
 0x132   : > { %v607_v56 = vpop.f32.mrf.mxu0  ;;  %v695_v17 = vpop.f32.mrf.mxu1 }
 0x133   : > { %v7708_v58 = vadd.f32 %v604_v54, %v602_v5  ;;  %6343 = vmatmul.mubr.f32.gmra.mxu0 %v786_v6  ;;  %v608_v62 = vadd.f32 %v607_v56, %v7588_v23  ;;  %v5663_v23 = vld [vmem:[%s10359_s3 + $0x90] sm:$0xff] }
 0x134   : > { %v609_v7 = vpop.f32.mrf.mxu0  ;;  %6374 = vmatprep.subr.mxu1 %v5663_v23  ;;  %v7766_v34 = vpop.f32.mrf.mxu1 }
 0x135   : > { %v610_v8 = vadd.f32 %v609_v7, %v7591_v24  ;;  %v787_v43 = vmax.f32 %v7708_v58, 0.0  ;;  %6375 = vmatpush3.msra.mxu1 %v5663_v23  ;;  %v5662_v24 = vld [vmem:[%s10359_s3 + $0x88] sm:$0xff] }
 0x136   : > { %6376 = vmatprep.subr.mxu1 %v5662_v24  ;;  %v700_v0 = vpop.f32.mrf.mxu1 }
 0x137   : > { %v7713_v20 = vadd.f32 %v610_v8, %v608_v62  ;;  %6345 = vmatprep.mubr.f32.mxu0 %v787_v43  ;;  %6377 = vmatpush3.msra.mxu1 %v5662_v24 }
 0x138   : > { %6378 = vmatprep.subr.mxu1 %v5661_v10  ;;  %v7768_v18 = vpop.f32.mrf.mxu1 }
 0x139   : > { %v788_v9 = vmax.f32 %v7713_v20, 0.0  ;;  %6379 = vmatpush3.msra.mxu1 %v5661_v10 }
 0x13a   : > { %v705_v35 = vpop.f32.mrf.mxu1 }
 0x13b   : > { %6346 = vmatmul.mubr.f32.gmra.mxu0 %v788_v9 }
 0x13c   : > { %v7770_v37 = vpop.f32.mrf.mxu1 }
 0x13e   : > { %v710_v38 = vpop.f32.mrf.mxu1 }
 0x140   : > { %v7777_v19 = vpop.f32.mrf.mxu1 }
 0x142   : > { %v715_v41 = vpop.f32.mrf.mxu1 }
 0x144   : > { %v7781_v4 = vpop.f32.mrf.mxu1 }
 0x146   : > { %v720_v5 = vpop.f32.mrf.mxu1 }
 0x148   : > { %v7783_v6 = vpop.f32.mrf.mxu1 }
 0x14a   : > { %v725_v7 = vpop.f32.mrf.mxu1 }
 0x14c   : > { %v7787_v9 = vpop.f32.mrf.mxu1 }
 0x14e   : > { %v730_v23 = vpop.f32.mrf.mxu1 }
 0x150   : > { %v7789_v10 = vpop.f32.mrf.mxu1 }
 0x152   : > { %v735_v22 = vpop.f32.mrf.mxu1 }
 0x154   : > { %v7793_v25 = vpop.f32.mrf.mxu1 }
 0x156   : > { %v740_v13 = vpop.f32.mrf.mxu1 }
 0x158   : > { %v7795_v14 = vpop.f32.mrf.mxu1 }
 0x15a   : > { %v745_v30 = vpop.f32.mrf.mxu1 }
 0x15c   : > { %v7799_v35 = vpop.f32.mrf.mxu1 }
 0x1c3   : > { %v6326_v40 = vpop.f32.mrf.mxu0 }
 0x1c4   : > { %v878_v42 = vadd.f32 %v6326_v40, %v7775_v1  ;;  %v750_v40 = vpop.f32.mrf.mxu1 }
 0x1c5   : > { %v872_v3 = vpop.f32.mrf.mxu0  ;;  %v5679_v40 = vld [vmem:[%s10359_s3 + $0x110] sm:$0xff] }
 0x1c6   : > { %v873_v46 = vadd.f32 %v872_v3, %v7775_v1  ;;  %v952_v54 = vmax.f32 %v878_v42, 0.0  ;;  %v7801_v42 = vpop.f32.mrf.mxu1 }
 0x1c8   : > { %v951_v50 = vmax.f32 %v873_v46, 0.0  ;;  %v755_v46 = vpop.f32.mrf.mxu1 }
 0x1c9   : > { %v5708_v46 = vld [vmem:[%s10359_s3 + $0x1f8] sm:$0xff] }
 0x1ca   : > { %6380 = vmatprep.mubr.f32.mxu1 %v951_v50  ;;  %6460 = vmatprep.subr.mxu1 %v5708_v46 }
 0x1cb   : > { %v6329_v56 = vpop.f32.mrf.mxu0  ;;  %6381 = vmatmul.mubr.f32.vlgmr.msra.gmra.mxu1 %v952_v54 }
 0x1cc   : > { %v888_v62 = vadd.f32 %v6329_v56, %v7775_v1  ;;  %6461 = vmatpush3.msra.mxu1 %v5708_v46 }
 0x1cd   : > { %v882_v8 = vpop.f32.mrf.mxu0 }
 0x1ce   : > { %v883_v43 = vadd.f32 %v882_v8, %v7775_v1  ;;  %v954_v24 = vmax.f32 %v888_v62, 0.0 }
 0x1d0   : > { %v953_v49 = vmax.f32 %v883_v43, 0.0 }
 0x1d2   : > { %6383 = vmatprep.mubr.f32.mxu1 %v953_v49 }
 0x1d3   : > { %v6332_v21 = vpop.f32.mrf.mxu0  ;;  %6384 = vmatmul.mubr.f32.gmra.mxu1 %v954_v24 }
 0x1d4   : > { %v898_v11 = vadd.f32 %v6332_v21, %v7775_v1 }
 0x1d5   : > { %v892_v55 = vpop.f32.mrf.mxu0 }
 0x1d6   : > { %v893_v12 = vadd.f32 %v892_v55, %v7775_v1  ;;  %v956_v27 = vmax.f32 %v898_v11, 0.0 }
 0x1d8   : > { %v955_v57 = vmax.f32 %v893_v12, 0.0 }
 0x1da   : > { %6386 = vmatprep.mubr.f32.mxu1 %v955_v57 }
 0x1db   : > { %v6335_v59 = vpop.f32.mrf.mxu0  ;;  %6387 = vmatmul.mubr.f32.gmra.mxu1 %v956_v27 }
 0x1dc   : > { %v908_v31 = vadd.f32 %v6335_v59, %v7775_v1 }
 0x1dd   : > { %v902_v17 = vpop.f32.mrf.mxu0 }
 0x1de   : > { %v903_v0 = vadd.f32 %v902_v17, %v7775_v1  ;;  %v958_v41 = vmax.f32 %v908_v31, 0.0 }
 0x1e0   : > { %v957_v38 = vmax.f32 %v903_v0, 0.0  ;;  %v5682_v0 = vld [vmem:[%s10359_s3 + $0x128] sm:$0xff] }
 0x1e1   : > { %6424 = vmatprep.subr.mxu0 %v5682_v0 }
 0x1e2   : > { %6389 = vmatprep.mubr.f32.mxu1 %v957_v38  ;;  %6425 = vmatpush3.msra.mxu0 %v5682_v0  ;;  %v5681_v38 = vld [vmem:[%s10359_s3 + $0x120] sm:$0xff] }
 0x1e3   : > { %v6338_v3 = vpop.f32.mrf.mxu0  ;;  %6390 = vmatmul.mubr.f32.gmra.mxu1 %v958_v41  ;;  %6426 = vmatprep.subr.mxu0 %v5681_v38  ;;  %v5678_v41 = vld [vmem:[%s10359_s3 + $0x108] sm:$0xff] }
 0x1e4   : > { %v918_v50 = vadd.f32 %v6338_v3, %v7775_v1  ;;  %6427 = vmatpush3.msra.mxu0 %v5681_v38  ;;  %v5677_v3 = vld [vmem:[%s10359_s3 + $0x100] sm:$0xff] }
 0x1e5   : > { %v912_v5 = vpop.f32.mrf.mxu0 }
 0x1e6   : > { %v913_v54 = vadd.f32 %v912_v5, %v7775_v1  ;;  %v960_v7 = vmax.f32 %v918_v50, 0.0  ;;  %v5707_v50 = vld [vmem:[%s10359_s3 + $0x1f0] sm:$0xff]  ;;  %v5706_v5 = vld [vmem:[%s10359_s3 + $0x1e8] sm:$0xff] }
 0x1e7   : > { %6462 = vmatprep.subr.mxu1 %v5707_v50 }
 0x1e8   : > { %v959_v56 = vmax.f32 %v913_v54, 0.0  ;;  %6463 = vmatpush3.msra.mxu1 %v5707_v50  ;;  %v5705_v54 = vld [vmem:[%s10359_s3 + $0x1e0] sm:$0xff] }
 0x1e9   : > { %6464 = vmatprep.subr.mxu1 %v5706_v5 }
 0x1ea   : > { %6392 = vmatprep.mubr.f32.mxu1 %v959_v56  ;;  %6465 = vmatpush3.msra.mxu1 %v5706_v5  ;;  %v5704_v56 = vld [vmem:[%s10359_s3 + $0x1d8] sm:$0xff] }
 0x1eb   : > { %v6341_v62 = vpop.f32.mrf.mxu0  ;;  %6393 = vmatmul.mubr.f32.gmra.mxu1 %v960_v7  ;;  %6466 = vmatprep.subr.mxu1 %v5705_v54  ;;  %v5703_v7 = vld [vmem:[%s10359_s3 + $0x1d0] sm:$0xff] }
 0x1ec   : > { %v928_v8 = vadd.f32 %v6341_v62, %v7775_v1  ;;  %6467 = vmatpush3.msra.mxu1 %v5705_v54  ;;  %v5702_v62 = vld [vmem:[%s10359_s3 + $0x1c8] sm:$0xff] }
 0x1ed   : > { %v922_v43 = vpop.f32.mrf.mxu0  ;;  %6468 = vmatprep.subr.mxu1 %v5704_v56 }
 0x1ee   : > { %v923_v49 = vadd.f32 %v922_v43, %v7775_v1  ;;  %v962_v24 = vmax.f32 %v928_v8, 0.0  ;;  %6469 = vmatpush3.msra.mxu1 %v5704_v56  ;;  %v5701_v8 = vld [vmem:[%s10359_s3 + $0x1c0] sm:$0xff]  ;;  %v5700_v43 = vld [vmem:[%s10359_s3 + $0x1b8] sm:$0xff] }
 0x1ef   : > { %6470 = vmatprep.subr.mxu1 %v5703_v7 }
 0x1f0   : > { %v961_v23 = vmax.f32 %v923_v49, 0.0  ;;  %6471 = vmatpush3.msra.mxu1 %v5703_v7  ;;  %v5699_v49 = vld [vmem:[%s10359_s3 + $0x1b0] sm:$0xff] }
 0x1f1   : > { %6472 = vmatprep.subr.mxu1 %v5702_v62 }
 0x1f2   : > { %6395 = vmatprep.mubr.f32.mxu1 %v961_v23  ;;  %6473 = vmatpush3.msra.mxu1 %v5702_v62  ;;  %v5698_v23 = vld [vmem:[%s10359_s3 + $0x1a8] sm:$0xff] }
 0x1f3   : > { %v6344_v21 = vpop.f32.mrf.mxu0  ;;  %6396 = vmatmul.mubr.f32.gmra.mxu1 %v962_v24  ;;  %6474 = vmatprep.subr.mxu1 %v5701_v8  ;;  %v5697_v24 = vld [vmem:[%s10359_s3 + $0x1a0] sm:$0xff] }
 0x1f4   : > { %v938_v22 = vadd.f32 %v6344_v21, %v7775_v1  ;;  %6475 = vmatpush3.msra.mxu1 %v5701_v8  ;;  %v387_v21 = vsub.s32 2, %v7560_v45 }
 0x1f5   : > { %v932_v11 = vpop.f32.mrf.mxu0  ;;  %6476 = vmatprep.subr.mxu1 %v5700_v43 }
 0x1f6   : > { %v933_v55 = vadd.f32 %v932_v11, %v7775_v1  ;;  %v964_v57 = vmax.f32 %v938_v22, 0.0  ;;  %6477 = vmatpush3.msra.mxu1 %v5700_v43  ;;  %v7869_v22 = vld [vmem:[%s10361_s5 + $0x2] ss:$0 sm:$0xff] }
 0x1f7   : > { %6478 = vmatprep.subr.mxu1 %v5699_v49 }
 0x1f8   : > { %v963_v12 = vmax.f32 %v933_v55, 0.0  ;;  %6479 = vmatpush3.msra.mxu1 %v5699_v49  ;;  %v7872_v55 = vrot.slane %v7579_v51, %v387_v21 }
 0x1f9   : > { %6480 = vmatprep.subr.mxu1 %v5698_v23 }
 0x1fa   : > { %6398 = vmatprep.mubr.f32.mxu1 %v963_v12  ;;  %6481 = vmatpush3.msra.mxu1 %v5698_v23  ;;  %v679_v45 = vadd.f32 %v7758_v28, %v7872_v55  ;;  %v689_v28 = vadd.f32 %v7762_v16, %v7872_v55  ;;  %v699_v16 = vadd.f32 %v7766_v34, %v7872_v55 }
 0x1fb   : > { %v6347_v13 = vpop.f32.mrf.mxu0  ;;  %6399 = vmatmul.mubr.f32.gmra.mxu1 %v964_v57  ;;  %6482 = vmatprep.subr.mxu1 %v5697_v24  ;;  %v709_v34 = vadd.f32 %v7770_v37, %v7872_v55  ;;  %v719_v37 = vadd.f32 %v7781_v4, %v7872_v55  ;;  %v729_v4 = vadd.f32 %v7787_v9, %v7872_v55 }
 0x1fc   : > { %v948_v27 = vadd.f32 %v6347_v13, %v7775_v1  ;;  %6483 = vmatpush3.msra.mxu1 %v5697_v24  ;;  %v739_v9 = vadd.f32 %v7793_v25, %v7872_v55  ;;  %v749_v25 = vadd.f32 %v7799_v35, %v7872_v55  ;;  %v5694_v35 = vld [vmem:[%s10359_s3 + $0x188] sm:$0xff] }
 0x1fd   : > { %v942_v59 = vpop.f32.mrf.mxu0 }
 0x1fe   : > { %v943_v30 = vadd.f32 %v942_v59, %v7775_v1  ;;  %v966_v17 = vmax.f32 %v948_v27, 0.0  ;;  %v5680_v1 = vld [vmem:[%s10359_s3 + $0x118] sm:$0xff]  ;;  %v684_v59 = vadd.f32 %v7760_v15, %v7872_v55 }
 0x1ff   : > { %6428 = vmatprep.subr.mxu0 %v5680_v1 }
 0x200   : > { %v965_v31 = vmax.f32 %v943_v30, 0.0  ;;  %6429 = vmatpush3.msra.mxu0 %v5680_v1 }
 0x201   : > { %6430 = vmatprep.subr.mxu0 %v5679_v40 }
 0x202   : > { %6401 = vmatprep.mubr.f32.mxu1 %v965_v31  ;;  %6431 = vmatpush3.msra.mxu0 %v5679_v40 }
 0x203   : > { %6402 = vmatmul.mubr.f32.gmra.mxu1 %v966_v17  ;;  %6432 = vmatprep.subr.mxu0 %v5678_v41 }
 0x204   : > { %6433 = vmatpush3.msra.mxu0 %v5678_v41 }
 0x205   : > { %6434 = vmatprep.subr.mxu0 %v5677_v3 }
 0x206   : > { %6435 = vmatpush3.msra.mxu0 %v5677_v3 }
 0x28b   : > { %v6382_v11 = vpop.f32.mrf.mxu1 }
 0x28c   : > { %v1057_v12 = vadd.f32 %v6382_v11, %v7869_v22 }
 0x28d   : > { %v1051_v57 = vpop.f32.mrf.mxu1 }
 0x28e   : > { %v1131_v13 = vadd.f32 %v1057_v12, %v7616_v63  ;;  %v1052_v27 = vadd.f32 %v1051_v57, %v7869_v22 }
 0x290   : > { %v1130_v30 = vadd.f32 %v1052_v27, %v7608_v61  ;;  %v7882_v31 = vadd.f32 %v1131_v13, %v684_v59  ;;  %v694_v61 = vadd.f32 %v7764_v32, %v7872_v55 }
 0x292   : > { %v7884_v17 = vadd.f32 %v1130_v30, %v679_v45  ;;  %v1163_v63 = vmax.f32 %v7882_v31, 0.0 }
 0x293   : > { %v6385_v51 = vpop.f32.mrf.mxu1 }
 0x294   : > { %v1067_v0 = vadd.f32 %v6385_v51, %v7869_v22  ;;  %v1162_v38 = vmax.f32 %v7884_v17, 0.0 }
 0x295   : > { %v1061_v1 = vpop.f32.mrf.mxu1 }
 0x296   : > { %v1133_v40 = vadd.f32 %v1067_v0, %v7632_v44  ;;  %v1062_v15 = vadd.f32 %v1061_v1, %v7869_v22  ;;  %6436 = vmatprep.mubr.f32.mxu0 %v1162_v38 }
 0x297   : > { %6437 = vmatmul.mubr.f32.vlgmr.msra.gmra.mxu0 %v1163_v63 }
 0x298   : > { %v1132_v41 = vadd.f32 %v1062_v15, %v7624_v39  ;;  %v7896_v3 = vadd.f32 %v1133_v40, %v694_v61  ;;  %v704_v39 = vadd.f32 %v7768_v18, %v7872_v55 }
 0x29a   : > { %v7898_v46 = vadd.f32 %v1132_v41, %v689_v28  ;;  %v1165_v56 = vmax.f32 %v7896_v3, 0.0 }
 0x29b   : > { %v6388_v50 = vpop.f32.mrf.mxu1 }
 0x29c   : > { %v1077_v5 = vadd.f32 %v6388_v50, %v7869_v22  ;;  %v1164_v44 = vmax.f32 %v7898_v46, 0.0 }
 0x29d   : > { %v1071_v54 = vpop.f32.mrf.mxu1 }
 0x29e   : > { %v1135_v32 = vadd.f32 %v1077_v5, %v7648_v60  ;;  %v1072_v7 = vadd.f32 %v1071_v54, %v7869_v22  ;;  %6439 = vmatprep.mubr.f32.mxu0 %v1164_v44 }
 0x29f   : > { %6440 = vmatmul.mubr.f32.gmra.mxu0 %v1165_v56 }
 0x2a0   : > { %v1134_v62 = vadd.f32 %v1072_v7, %v7640_v52  ;;  %v7910_v8 = vadd.f32 %v1135_v32, %v704_v39  ;;  %v714_v52 = vadd.f32 %v7777_v19, %v7872_v55 }
 0x2a2   : > { %v7912_v43 = vadd.f32 %v1134_v62, %v699_v16  ;;  %v1167_v21 = vmax.f32 %v7910_v8, 0.0 }
 0x2a3   : > { %v6391_v49 = vpop.f32.mrf.mxu1 }
 0x2a4   : > { %v1087_v23 = vadd.f32 %v6391_v49, %v7869_v22  ;;  %v1166_v60 = vmax.f32 %v7912_v43, 0.0 }
 0x2a5   : > { %v1081_v24 = vpop.f32.mrf.mxu1 }
 0x2a6   : > { %v1137_v18 = vadd.f32 %v1087_v23, %v7664_v53  ;;  %v1082_v11 = vadd.f32 %v1081_v24, %v7869_v22  ;;  %6442 = vmatprep.mubr.f32.mxu0 %v1166_v60 }
 0x2a7   : > { %6443 = vmatmul.mubr.f32.gmra.mxu0 %v1167_v21 }
 0x2a8   : > { %v1136_v12 = vadd.f32 %v1082_v11, %v7656_v47  ;;  %v7924_v57 = vadd.f32 %v1137_v18, %v714_v52  ;;  %v724_v47 = vadd.f32 %v7783_v6, %v7872_v55 }
 0x2aa   : > { %v7926_v13 = vadd.f32 %v1136_v12, %v709_v34  ;;  %v1169_v30 = vmax.f32 %v7924_v57, 0.0 }
 0x2ab   : > { %v6394_v27 = vpop.f32.mrf.mxu1 }
 0x2ac   : > { %v1097_v59 = vadd.f32 %v6394_v27, %v7869_v22  ;;  %v1168_v53 = vmax.f32 %v7926_v13, 0.0 }
 0x2ad   : > { %v1091_v45 = vpop.f32.mrf.mxu1 }
 0x2ae   : > { %v1139_v19 = vadd.f32 %v1097_v59, %v7680_v29  ;;  %v1092_v51 = vadd.f32 %v1091_v45, %v7869_v22  ;;  %6445 = vmatprep.mubr.f32.mxu0 %v1168_v53 }
 0x2af   : > { %6446 = vmatmul.mubr.f32.gmra.mxu0 %v1169_v30 }
 0x2b0   : > { %v1138_v0 = vadd.f32 %v1092_v51, %v7672_v26  ;;  %v7938_v38 = vadd.f32 %v1139_v19, %v724_v47  ;;  %v734_v26 = vadd.f32 %v7789_v10, %v7872_v55 }
 0x2b2   : > { %v7940_v63 = vadd.f32 %v1138_v0, %v719_v37  ;;  %v1171_v61 = vmax.f32 %v7938_v38, 0.0 }
 0x2b3   : > { %v6397_v1 = vpop.f32.mrf.mxu1 }
 0x2b4   : > { %v1107_v40 = vadd.f32 %v6397_v1, %v7869_v22  ;;  %v1170_v29 = vmax.f32 %v7940_v63, 0.0 }
 0x2b5   : > { %v1101_v15 = vpop.f32.mrf.mxu1 }
 0x2b6   : > { %v1141_v6 = vadd.f32 %v1107_v40, %v7693_v36  ;;  %v1102_v28 = vadd.f32 %v1101_v15, %v7869_v22  ;;  %6448 = vmatprep.mubr.f32.mxu0 %v1170_v29 }
 0x2b7   : > { %6449 = vmatmul.mubr.f32.gmra.mxu0 %v1171_v61 }
 0x2b8   : > { %v1140_v41 = vadd.f32 %v1102_v28, %v7688_v33  ;;  %v7952_v50 = vadd.f32 %v1141_v6, %v734_v26  ;;  %v744_v33 = vadd.f32 %v7795_v14, %v7872_v55 }
 0x2ba   : > { %v7954_v5 = vadd.f32 %v1140_v41, %v729_v4  ;;  %v1173_v32 = vmax.f32 %v7952_v50, 0.0 }
 0x2bb   : > { %v6400_v44 = vpop.f32.mrf.mxu1 }
 0x2bc   : > { %v1117_v54 = vadd.f32 %v6400_v44, %v7869_v22  ;;  %v1172_v36 = vmax.f32 %v7954_v5, 0.0 }
 0x2bd   : > { %v1111_v56 = vpop.f32.mrf.mxu1 }
 0x2be   : > { %v1143_v10 = vadd.f32 %v1117_v54, %v7703_v48  ;;  %v1112_v7 = vadd.f32 %v1111_v56, %v7869_v22  ;;  %6451 = vmatprep.mubr.f32.mxu0 %v1172_v36 }
 0x2bf   : > { %6452 = vmatmul.mubr.f32.gmra.mxu0 %v1173_v32 }
 0x2c0   : > { %v1142_v39 = vadd.f32 %v1112_v7, %v7698_v2  ;;  %v7966_v16 = vadd.f32 %v1143_v10, %v744_v33  ;;  %v754_v2 = vadd.f32 %v7801_v42, %v7872_v55  ;;  %v5696_v42 = vld [vmem:[%s10359_s3 + $0x198] sm:$0xff]  ;;  %v1195_v55 = vld [vmem:[%s10361_s5 + $0x3] ss:$0 sm:$0xff] }
 0x2c1   : > { %6484 = vmatprep.subr.mxu1 %v5696_v42 }
 0x2c2   : > { %v7968_v62 = vadd.f32 %v1142_v39, %v739_v9  ;;  %v1175_v24 = vmax.f32 %v7966_v16, 0.0  ;;  %6485 = vmatpush3.msra.mxu1 %v5696_v42 }
 0x2c3   : > { %v6403_v49 = vpop.f32.mrf.mxu1 }
 0x2c4   : > { %v1127_v23 = vadd.f32 %v6403_v49, %v7869_v22  ;;  %v1174_v48 = vmax.f32 %v7968_v62, 0.0 }
 0x2c5   : > { %v1121_v60 = vpop.f32.mrf.mxu1 }
 0x2c6   : > { %v1145_v14 = vadd.f32 %v1127_v23, %v7713_v20  ;;  %v1122_v21 = vadd.f32 %v1121_v60, %v7869_v22  ;;  %6454 = vmatprep.mubr.f32.mxu0 %v1174_v48  ;;  %v5693_v22 = vld [vmem:[%s10359_s3 + $0x180] sm:$0xff] }
 0x2c7   : > { %6455 = vmatmul.mubr.f32.gmra.mxu0 %v1175_v24 }
 0x2c8   : > { %v1144_v18 = vadd.f32 %v1122_v21, %v7708_v58  ;;  %v7980_v11 = vadd.f32 %v1145_v14, %v754_v2  ;;  %v5695_v58 = vld [vmem:[%s10359_s3 + $0x190] sm:$0xff] }
 0x2c9   : > { %6486 = vmatprep.subr.mxu1 %v5695_v58 }
 0x2ca   : > { %v7982_v52 = vadd.f32 %v1144_v18, %v749_v25  ;;  %v1177_v20 = vmax.f32 %v7980_v11, 0.0  ;;  %6487 = vmatpush3.msra.mxu1 %v5695_v58 }
 0x2cb   : > { %6488 = vmatprep.subr.mxu1 %v5694_v35 }
 0x2cc   : > { %v1176_v34 = vmax.f32 %v7982_v52, 0.0  ;;  %6489 = vmatpush3.msra.mxu1 %v5694_v35 }
 0x2cd   : > { %6490 = vmatprep.subr.mxu1 %v5693_v22 }
 0x2ce   : > { %6457 = vmatprep.mubr.f32.mxu0 %v1176_v34  ;;  %6491 = vmatpush3.msra.mxu1 %v5693_v22 }
 0x2cf   : > { %6458 = vmatmul.mubr.f32.gmra.mxu0 %v1177_v20 }
 0x357   : > { %v6438_v12 = vpop.f32.mrf.mxu0 }
 0x358   : > { %v1268_v27 = vadd.f32 %v6438_v12, %v1195_v55 }
 0x359   : > { %v1262_v59 = vpop.f32.mrf.mxu0 }
 0x35a   : > { %v1263_v53 = vadd.f32 %v1262_v59, %v1195_v55  ;;  %v1342_v30 = vmax.f32 %v1268_v27, 0.0  ;;  %v1700_v27 = vld [vmem:[%s10360_s4 + $0x18] sm:$0xff]  ;;  %v1699_v59 = vld [vmem:[%s10360_s4 + $0x10] sm:$0xff] }
 0x35b   : > { %6516 = vmatprep.subr.mxu0 %v1700_v27 }
 0x35c   : > { %v1341_v45 = vmax.f32 %v1263_v53, 0.0  ;;  %6517 = vmatpush3.msra.mxu0 %v1700_v27  ;;  %v1697_v53 = vld [vmem:[%s10360_s4] sm:$0xff] }
 0x35d   : > { %6518 = vmatprep.subr.mxu0 %v1699_v59 }
 0x35e   : > { %6492 = vmatprep.mubr.f32.mxu1 %v1341_v45  ;;  %6519 = vmatpush3.msra.mxu0 %v1699_v59 }
 0x35f   : > { %v6441_v19 = vpop.f32.mrf.mxu0  ;;  %6493 = vmatmul.mubr.f32.vlgmr.msra.gmra.mxu1 %v1342_v30 }
 0x360   : > { %v1278_v51 = vadd.f32 %v6441_v19, %v1195_v55 }
 0x361   : > { %v1272_v47 = vpop.f32.mrf.mxu0 }
 0x362   : > { %v1273_v37 = vadd.f32 %v1272_v47, %v1195_v55  ;;  %v1344_v1 = vmax.f32 %v1278_v51, 0.0 }
 0x364   : > { %v1343_v0 = vmax.f32 %v1273_v37, 0.0 }
 0x366   : > { %6495 = vmatprep.mubr.f32.mxu1 %v1343_v0 }
 0x367   : > { %v6444_v40 = vpop.f32.mrf.mxu0  ;;  %6496 = vmatmul.mubr.f32.gmra.mxu1 %v1344_v1  ;;  %v8016_v1 = vld [vmem:[%s10361_s5 + $0x4] ss:$0 sm:$0xff] }
 0x368   : > { %v1288_v29 = vadd.f32 %v6444_v40, %v1195_v55 }
 0x369   : > { %v1282_v15 = vpop.f32.mrf.mxu0 }
 0x36a   : > { %v1283_v61 = vadd.f32 %v1282_v15, %v1195_v55  ;;  %v1346_v28 = vmax.f32 %v1288_v29, 0.0 }
 0x36c   : > { %v1345_v6 = vmax.f32 %v1283_v61, 0.0 }
 0x36e   : > { %6498 = vmatprep.mubr.f32.mxu1 %v1345_v6 }
 0x36f   : > { %v6447_v26 = vpop.f32.mrf.mxu0  ;;  %6499 = vmatmul.mubr.f32.gmra.mxu1 %v1346_v28 }
 0x370   : > { %v1298_v4 = vadd.f32 %v6447_v26, %v1195_v55 }
 0x371   : > { %v1292_v41 = vpop.f32.mrf.mxu0 }
 0x372   : > { %v1293_v44 = vadd.f32 %v1292_v41, %v1195_v55  ;;  %v1348_v36 = vmax.f32 %v1298_v4, 0.0 }
 0x374   : > { %v1347_v54 = vmax.f32 %v1293_v44, 0.0 }
 0x376   : > { %6501 = vmatprep.mubr.f32.mxu1 %v1347_v54 }
 0x377   : > { %v6450_v56 = vpop.f32.mrf.mxu0  ;;  %6502 = vmatmul.mubr.f32.gmra.mxu1 %v1348_v36 }
 0x378   : > { %v1308_v32 = vadd.f32 %v6450_v56, %v1195_v55 }
 0x379   : > { %v1302_v10 = vpop.f32.mrf.mxu0 }
 0x37a   : > { %v1303_v7 = vadd.f32 %v1302_v10, %v1195_v55  ;;  %v1350_v9 = vmax.f32 %v1308_v32, 0.0 }
 0x37c   : > { %v1349_v33 = vmax.f32 %v1303_v7, 0.0 }
 0x37e   : > { %6504 = vmatprep.mubr.f32.mxu1 %v1349_v33 }
 0x37f   : > { %v6453_v39 = vpop.f32.mrf.mxu0  ;;  %6505 = vmatmul.mubr.f32.gmra.mxu1 %v1350_v9 }
 0x380   : > { %v1318_v49 = vadd.f32 %v6453_v39, %v1195_v55 }
 0x381   : > { %v1312_v23 = vpop.f32.mrf.mxu0 }
 0x382   : > { %v1313_v48 = vadd.f32 %v1312_v23, %v1195_v55  ;;  %v1352_v24 = vmax.f32 %v1318_v49, 0.0 }
 0x384   : > { %v1351_v60 = vmax.f32 %v1313_v48, 0.0 }
 0x386   : > { %6507 = vmatprep.mubr.f32.mxu1 %v1351_v60 }
 0x387   : > { %v6456_v14 = vpop.f32.mrf.mxu0  ;;  %6508 = vmatmul.mubr.f32.gmra.mxu1 %v1352_v24 }
 0x388   : > { %v1328_v21 = vadd.f32 %v6456_v14, %v1195_v55 }
 0x389   : > { %v1322_v2 = vpop.f32.mrf.mxu0 }
 0x38a   : > { %v1323_v25 = vadd.f32 %v1322_v2, %v1195_v55  ;;  %v1354_v34 = vmax.f32 %v1328_v21, 0.0 }
 0x38c   : > { %v1353_v18 = vmax.f32 %v1323_v25, 0.0 }
 0x38e   : > { %6510 = vmatprep.mubr.f32.mxu1 %v1353_v18 }
 0x38f   : > { %v6459_v20 = vpop.f32.mrf.mxu0  ;;  %6511 = vmatmul.mubr.f32.gmra.mxu1 %v1354_v34 }
 0x390   : > { %v1338_v42 = vadd.f32 %v6459_v20, %v1195_v55 }
 0x391   : > { %v1332_v58 = vpop.f32.mrf.mxu0 }
 0x392   : > { %v1333_v35 = vadd.f32 %v1332_v58, %v1195_v55  ;;  %v1356_v12 = vmax.f32 %v1338_v42, 0.0  ;;  %v1698_v55 = vld [vmem:[%s10360_s4 + $0x8] sm:$0xff] }
 0x393   : > { %6520 = vmatprep.subr.mxu0 %v1698_v55 }
 0x394   : > { %v1355_v22 = vmax.f32 %v1333_v35, 0.0  ;;  %6521 = vmatpush3.msra.mxu0 %v1698_v55 }
 0x395   : > { %6522 = vmatprep.subr.mxu0 %v1697_v53 }
 0x396   : > { %6513 = vmatprep.mubr.f32.mxu1 %v1355_v22  ;;  %6523 = vmatpush3.msra.mxu0 %v1697_v53 }
 0x397   : > { %6514 = vmatmul.mubr.f32.gmra.mxu1 %v1356_v12 }
 0x41f   : > { %v6494_v45 = vpop.f32.mrf.mxu1 }
 0x420   : > { %v1447_v29 = vadd.f32 %v6494_v45, %v8016_v1 }
 0x421   : > { %v1441_v30 = vpop.f32.mrf.mxu1 }
 0x422   : > { %v1442_v61 = vadd.f32 %v1441_v30, %v8016_v1  ;;  %v1521_v26 = vadd.f32 %v1447_v29, %v7882_v31 }
 0x424   : > { %v1520_v44 = vadd.f32 %v1442_v61, %v7884_v17 }
 0x427   : > { %v6497_v19 = vpop.f32.mrf.mxu1 }
 0x428   : > { %v1457_v56 = vadd.f32 %v6497_v19, %v8016_v1 }
 0x429   : > { %v1451_v51 = vpop.f32.mrf.mxu1 }
 0x42a   : > { %v1452_v33 = vadd.f32 %v1451_v51, %v8016_v1  ;;  %v1523_v9 = vadd.f32 %v1457_v56, %v7896_v3  ;;  %v1702_v56 = vld [vmem:[%s10360_s4 + $0x28] sm:$0xff] }
 0x42c   : > { %v1522_v49 = vadd.f32 %v1452_v33, %v7898_v46 }
 0x42f   : > { %v6500_v47 = vpop.f32.mrf.mxu1 }
 0x430   : > { %v1467_v60 = vadd.f32 %v6500_v47, %v8016_v1 }
 0x431   : > { %v1461_v37 = vpop.f32.mrf.mxu1 }
 0x432   : > { %v1462_v14 = vadd.f32 %v1461_v37, %v8016_v1  ;;  %v1525_v18 = vadd.f32 %v1467_v60, %v7910_v8 }
 0x434   : > { %v1524_v35 = vadd.f32 %v1462_v14, %v7912_v43 }
 0x437   : > { %v6503_v0 = vpop.f32.mrf.mxu1 }
 0x438   : > { %v1477_v8 = vadd.f32 %v6503_v0, %v8016_v1 }
 0x439   : > { %v1471_v40 = vpop.f32.mrf.mxu1 }
 0x43a   : > { %v1472_v55 = vadd.f32 %v1471_v40, %v8016_v1  ;;  %v1527_v19 = vadd.f32 %v1477_v8, %v7924_v57 }
 0x43c   : > { %v1526_v40 = vadd.f32 %v1472_v55, %v7926_v13 }
 0x43f   : > { %v6506_v15 = vpop.f32.mrf.mxu1 }
 0x440   : > { %v1487_v6 = vadd.f32 %v6506_v15, %v8016_v1 }
 0x441   : > { %v1481_v28 = vpop.f32.mrf.mxu1 }
 0x442   : > { %v1529_v4 = vadd.f32 %v1487_v6, %v7938_v38  ;;  %v1482_v41 = vadd.f32 %v1481_v28, %v8016_v1 }
 0x444   : > { %v1537_v54 = vadd.f32 %v1529_v4, %v1521_v26  ;;  %v1528_v36 = vadd.f32 %v1482_v41, %v7940_v63 }
 0x446   : > { %v8027_v32 = vmul.f32 0.5, %v1537_v54  ;;  %v1536_v10 = vadd.f32 %v1528_v36, %v1520_v44  ;;  %v1705_v44 = vld [vmem:[%s10360_s4 + $0x40] sm:$0x1]  ;;  %v1704_v54 = vld [vmem:[%s10360_s4 + $0x38] sm:$0xff]  ;;  %v1703_v36 = vld [vmem:[%s10360_s4 + $0x30] sm:$0xff] }
 0x447   : > { %v6509_v7 = vpop.f32.mrf.mxu1  ;;  %6572 = vmatprep.subr.msk.mxu1 %vm2202_vm3, %v1705_v44 }
 0x448   : > { %1554 = vst.msk [vmem:[#allocation2 + $0x8] sm:$0xff] %vm1552_vm2, %v8027_v32  ;;  %v8032_v31 = vmul.f32 0.5, %v1536_v10  ;;  %v1497_v38 = vadd.f32 %v6509_v7, %v8016_v1  ;;  %6573 = vmatpush3.msk.msra.mxu1 %vm2202_vm3, %v1705_v44 }
 0x449   : > { %v1491_v17 = vpop.f32.mrf.mxu1  ;;  %6574 = vmatprep.subr.mxu1 %v1704_v54 }
 0x44a   : > { %1553 = vst.msk [vmem:[#allocation2] sm:$0xff] %vm1552_vm2, %v8032_v31  ;;  %v1531_v63 = vadd.f32 %v1497_v38, %v7952_v50  ;;  %v1492_v39 = vadd.f32 %v1491_v17, %v8016_v1  ;;  %1569 = vrot.lane.b32.xlu0 %v8032_v31, %s7098_s15  ;;  %6575 = vmatpush3.msra.mxu1 %v1704_v54 }
 0x44b   : > { %6576 = vmatprep.subr.mxu1 %v1703_v36 }
 0x44c   : > { %v1539_v23 = vadd.f32 %v1531_v63, %v1523_v9  ;;  %v1530_v48 = vadd.f32 %v1492_v39, %v7954_v5  ;;  %6577 = vmatpush3.msra.mxu1 %v1703_v36 }
 0x44d   : > { %6578 = vmatprep.subr.mxu1 %v1702_v56 }
 0x44e   : > { %v8045_v24 = vmul.f32 0.5, %v1539_v23  ;;  %v1538_v3 = vadd.f32 %v1530_v48, %v1522_v49  ;;  %1571 = vrot.lane.b32.xlu0 %v8027_v32, %s7098_s15  ;;  %6579 = vmatpush3.msra.mxu1 %v1702_v56 }
 0x44f   : > { %v6512_v50 = vpop.f32.mrf.mxu1  ;;  %v1666_v2 = vld [vmem:[#allocation2 + $0x8] sm:$0xff] }
 0x450   : > { %1556 = vst.msk [vmem:[#allocation2 + $0x18] sm:$0xff] %vm1552_vm2, %v8045_v24  ;;  %v8052_v21 = vmul.f32 0.5, %v1538_v3  ;;  %v1507_v46 = vadd.f32 %v6512_v50, %v8016_v1  ;;  %v1721_v58 = vmax.f32 %v1666_v2, 0.0 }
 0x451   : > { %v1501_v5 = vpop.f32.mrf.mxu1  ;;  %v1665_v25 = vld [vmem:[#allocation2] sm:$0xff] }
 0x452   : > { %1555 = vst.msk [vmem:[#allocation2 + $0x10] sm:$0xff] %vm1552_vm2, %v8052_v21  ;;  %v1533_v34 = vadd.f32 %v1507_v46, %v7966_v16  ;;  %v1502_v20 = vadd.f32 %v1501_v5, %v8016_v1  ;;  %1573 = vrot.lane.b32.xlu1 %v8052_v21, %s7098_s15  ;;  %v1720_v42 = vmax.f32 %v1665_v25, 0.0 }
 0x454   : > { %v1541_v22 = vadd.f32 %v1533_v34, %v1525_v18  ;;  %v1532_v12 = vadd.f32 %v1502_v20, %v7968_v62  ;;  %6524 = vmatprep.mubr.msk.f32.mxu0 %vm1552_vm2, %v1720_v42 }
 0x455   : > { %6525 = vmatmul.mubr.msk.f32.vlgmr.msra.gmra.mxu0 %vm1552_vm2, %v1721_v58 }
 0x456   : > { %v1549_v27 = vmul.f32 0.5, %v1541_v22  ;;  %v1540_v16 = vadd.f32 %v1532_v12, %v1524_v35  ;;  %1575 = vrot.lane.b32.xlu1 %v8045_v24, %s7098_s15 }
 0x457   : > { %v6515_v59 = vpop.f32.mrf.mxu1  ;;  %v1668_v62 = vld [vmem:[#allocation2 + $0x18] sm:$0xff] }
 0x458   : > { %1558 = vst.msk [vmem:[#allocation2 + $0x28] sm:$0xff] %vm1552_vm2, %v1549_v27  ;;  %v1548_v43 = vmul.f32 0.5, %v1540_v16  ;;  %v1517_v53 = vadd.f32 %v6515_v59, %v8016_v1  ;;  %v1723_v0 = vmax.f32 %v1668_v62, 0.0 }
 0x459   : > { %v1511_v45 = vpop.f32.mrf.mxu1  ;;  %v1667_v30 = vld [vmem:[#allocation2 + $0x10] sm:$0xff] }
 0x45a   : > { %1557 = vst.msk [vmem:[#allocation2 + $0x20] sm:$0xff] %vm1552_vm2, %v1548_v43  ;;  %v1535_v51 = vadd.f32 %v1517_v53, %v7980_v11  ;;  %v1512_v47 = vadd.f32 %v1511_v45, %v8016_v1  ;;  %1579 = vrot.lane.b32.xlu1 %v1549_v27, %s7098_s15  ;;  %1577 = vrot.lane.b32.xlu0 %v1548_v43, %s7098_s15  ;;  %v1722_v37 = vmax.f32 %v1667_v30, 0.0 }
 0x45c   : > { %v1543_v29 = vadd.f32 %v1535_v51, %v1527_v19  ;;  %v1534_v15 = vadd.f32 %v1512_v47, %v7982_v52  ;;  %6527 = vmatprep.mubr.msk.f32.mxu0 %vm1552_vm2, %v1722_v37 }
 0x45d   : > { %6528 = vmatmul.mubr.msk.f32.gmra.mxu0 %vm1552_vm2, %v1723_v0 }
 0x45e   : > { %v1551_v57 = vmul.f32 0.5, %v1543_v29  ;;  %v1542_v61 = vadd.f32 %v1534_v15, %v1526_v40 }
 0x45f   : > { %v1670_v1 = vld [vmem:[#allocation2 + $0x28] sm:$0xff] }
 0x460   : > { %1560 = vst.msk [vmem:[#allocation2 + $0x38] sm:$0xff] %vm1552_vm2, %v1551_v57  ;;  %v1550_v11 = vmul.f32 0.5, %v1542_v61  ;;  %1583 = vrot.lane.b32.xlu1 %v1551_v57, %s7098_s15  ;;  %v1725_v28 = vmax.f32 %v1670_v1, 0.0 }
 0x461   : > { %v1669_v6 = vld [vmem:[#allocation2 + $0x20] sm:$0xff] }
 0x462   : > { %1559 = vst.msk [vmem:[#allocation2 + $0x30] sm:$0xff] %vm1552_vm2, %v1550_v11  ;;  %1581 = vrot.lane.b32.xlu0 %v1550_v11, %s7098_s15  ;;  %v1724_v13 = vmax.f32 %v1669_v6, 0.0 }
 0x464   : > { %1603 = vrot.lane.b32.xlu1 %v8027_v32, %s7099_s16  ;;  %6530 = vmatprep.mubr.msk.f32.mxu0 %vm1552_vm2, %v1724_v13 }
 0x465   : > { %6531 = vmatmul.mubr.msk.f32.gmra.mxu0 %vm1552_vm2, %v1725_v28 }
 0x466   : > { %1601 = vrot.lane.b32.xlu0 %v8032_v31, %s7099_s16 }
 0x467   : > { %v1672_v52 = vld [vmem:[#allocation2 + $0x38] sm:$0xff] }
 0x468   : > { %1607 = vrot.lane.b32.xlu1 %v8045_v24, %s7099_s16  ;;  %v1727_v41 = vmax.f32 %v1672_v52, 0.0 }
 0x469   : > { %v1671_v26 = vld [vmem:[#allocation2 + $0x30] sm:$0xff] }
 0x46a   : > { %1605 = vrot.lane.b32.xlu0 %v8052_v21, %s7099_s16  ;;  %v1726_v4 = vmax.f32 %v1671_v26, 0.0 }
 0x46c   : > { %1611 = vrot.lane.b32.xlu1 %v1549_v27, %s7099_s16  ;;  %6533 = vmatprep.mubr.msk.f32.mxu0 %vm1552_vm2, %v1726_v4 }
 0x46d   : > { %6534 = vmatmul.mubr.msk.f32.gmra.mxu0 %vm1552_vm2, %v1727_v41 }
 0x46e   : > { %1609 = vrot.lane.b32.xlu0 %v1548_v43, %s7099_s16 }
 0x470   : > { %1615 = vrot.lane.b32.xlu1 %v1551_v57, %s7099_s16 }
 0x472   : > { %1613 = vrot.lane.b32.xlu0 %v1550_v11, %s7099_s16 }
 0x474   : > { %1635 = vrot.lane.b32.xlu1 %v8027_v32, %s7100_s17  ;;  %v1701_v32 = vld [vmem:[%s10360_s4 + $0x20] sm:$0xff] }
 0x475   : > { %6580 = vmatprep.subr.mxu1 %v1701_v32 }
 0x476   : > { %1633 = vrot.lane.b32.xlu0 %v8032_v31, %s7100_s17  ;;  %6581 = vmatpush3.msra.mxu1 %v1701_v32 }
 0x478   : > { %1639 = vrot.lane.b32.xlu1 %v8045_v24, %s7100_s17 }
 0x47a   : > { %1637 = vrot.lane.b32.xlu0 %v8052_v21, %s7100_s17 }
 0x47c   : > { %1643 = vrot.lane.b32.xlu1 %v1549_v27, %s7100_s17 }
 0x47e   : > { %1641 = vrot.lane.b32.xlu0 %v1548_v43, %s7100_s17 }
 0x480   : > { %1647 = vrot.lane.b32.xlu1 %v1551_v57, %s7100_s17 }
 0x482   : > { %1645 = vrot.lane.b32.xlu0 %v1550_v11, %s7100_s17 }
 0x4bc   : > { %v1570_v10 = vpop.permute.xlu0 %1569 }
 0x4bd   : > { %1593 = vst.msk [vmem:[#allocation2 + $0x40] sm:$0xff] %vm1552_vm2, %v1570_v10 }
 0x4c0   : > { %v1572_v7 = vpop.permute.xlu0 %1571 }
 0x4c1   : > { %1594 = vst.msk [vmem:[#allocation2 + $0x48] sm:$0xff] %vm1552_vm2, %v1572_v7 }
 0x4c4   : > { %v1574_v33 = vpop.permute.xlu1 %1573  ;;  %v1673_v31 = vld [vmem:[#allocation2 + $0x40] sm:$0xff] }
 0x4c5   : > { %1595 = vst.msk [vmem:[#allocation2 + $0x50] sm:$0xff] %vm1552_vm2, %v1574_v33  ;;  %v1728_v38 = vmax.f32 %v1673_v31, 0.0 }
 0x4c7   : > { %6536 = vmatprep.mubr.msk.f32.mxu0 %vm1552_vm2, %v1728_v38 }
 0x4c8   : > { %v1576_v17 = vpop.permute.xlu1 %1575  ;;  %v1674_v9 = vld [vmem:[#allocation2 + $0x48] sm:$0xff] }
 0x4c9   : > { %1596 = vst.msk [vmem:[#allocation2 + $0x58] sm:$0xff] %vm1552_vm2, %v1576_v17  ;;  %v1729_v63 = vmax.f32 %v1674_v9, 0.0 }
 0x4cb   : > { %6537 = vmatmul.mubr.msk.f32.gmra.mxu0 %vm1552_vm2, %v1729_v63 }
 0x4cc   : > { %v1580_v39 = vpop.permute.xlu1 %1579  ;;  %v1578_v49 = vpop.permute.xlu0 %1577  ;;  %v1675_v23 = vld [vmem:[#allocation2 + $0x50] sm:$0xff] }
 0x4cd   : > { %1598 = vst.msk [vmem:[#allocation2 + $0x68] sm:$0xff] %vm1552_vm2, %v1580_v39  ;;  %1597 = vst.msk [vmem:[#allocation2 + $0x60] sm:$0xff] %vm1552_vm2, %v1578_v49  ;;  %v1730_v48 = vmax.f32 %v1675_v23, 0.0  ;;  %v8164_v39 = vld [vmem:[%s10361_s5 + $0x5] ss:$0 sm:$0xff] }
 0x4cf   : > { %6539 = vmatprep.mubr.msk.f32.mxu0 %vm1552_vm2, %v1730_v48 }
 0x4d0   : > { %v1676_v60 = vld [vmem:[#allocation2 + $0x58] sm:$0xff] }
 0x4d1   : > { %v1731_v24 = vmax.f32 %v1676_v60, 0.0 }
 0x4d2   : > { %v1584_v3 = vpop.permute.xlu1 %1583 }
 0x4d3   : > { %1600 = vst.msk [vmem:[#allocation2 + $0x78] sm:$0xff] %vm1552_vm2, %v1584_v3  ;;  %6540 = vmatmul.mubr.msk.f32.gmra.mxu0 %vm1552_vm2, %v1731_v24 }
 0x4d4   : > { %v1582_v50 = vpop.permute.xlu0 %1581  ;;  %v1677_v14 = vld [vmem:[#allocation2 + $0x60] sm:$0xff]  ;;  %v1678_v21 = vld [vmem:[#allocation2 + $0x68] sm:$0xff] }
 0x4d5   : > { %1599 = vst.msk [vmem:[#allocation2 + $0x70] sm:$0xff] %vm1552_vm2, %v1582_v50  ;;  %v1732_v46 = vmax.f32 %v1677_v14, 0.0  ;;  %v1733_v2 = vmax.f32 %v1678_v21, 0.0 }
 0x4d6   : > { %v1604_v5 = vpop.permute.xlu1 %1603 }
 0x4d7   : > { %1626 = vst.msk [vmem:[#allocation2 + $0x88] sm:$0xff] %vm1552_vm2, %v1604_v5  ;;  %6542 = vmatprep.mubr.msk.f32.mxu0 %vm1552_vm2, %v1732_v46 }
 0x4d8   : > { %v1602_v25 = vpop.permute.xlu0 %1601  ;;  %6543 = vmatmul.mubr.msk.f32.gmra.mxu0 %vm1552_vm2, %v1733_v2 }
 0x4d9   : > { %1625 = vst.msk [vmem:[#allocation2 + $0x80] sm:$0xff] %vm1552_vm2, %v1602_v25 }
 0x4da   : > { %v1608_v18 = vpop.permute.xlu1 %1607  ;;  %v1680_v34 = vld [vmem:[#allocation2 + $0x78] sm:$0xff] }
 0x4db   : > { %1628 = vst.msk [vmem:[#allocation2 + $0x98] sm:$0xff] %vm1552_vm2, %v1608_v18  ;;  %v1735_v22 = vmax.f32 %v1680_v34, 0.0 }
 0x4dc   : > { %v1606_v20 = vpop.permute.xlu0 %1605  ;;  %v1679_v42 = vld [vmem:[#allocation2 + $0x70] sm:$0xff] }
 0x4dd   : > { %1627 = vst.msk [vmem:[#allocation2 + $0x90] sm:$0xff] %vm1552_vm2, %v1606_v20  ;;  %v1734_v58 = vmax.f32 %v1679_v42, 0.0 }
 0x4de   : > { %v1612_v35 = vpop.permute.xlu1 %1611  ;;  %v1682_v12 = vld [vmem:[#allocation2 + $0x88] sm:$0xff] }
 0x4df   : > { %1630 = vst.msk [vmem:[#allocation2 + $0xa8] sm:$0xff] %vm1552_vm2, %v1612_v35  ;;  %6545 = vmatprep.mubr.msk.f32.mxu0 %vm1552_vm2, %v1734_v58  ;;  %v1737_v55 = vmax.f32 %v1682_v12, 0.0 }
 0x4e0   : > { %v1610_v8 = vpop.permute.xlu0 %1609  ;;  %6546 = vmatmul.mubr.msk.f32.gmra.mxu0 %vm1552_vm2, %v1735_v22  ;;  %v1681_v27 = vld [vmem:[#allocation2 + $0x80] sm:$0xff] }
 0x4e1   : > { %1629 = vst.msk [vmem:[#allocation2 + $0xa0] sm:$0xff] %vm1552_vm2, %v1610_v8  ;;  %v1736_v16 = vmax.f32 %v1681_v27, 0.0 }
 0x4e2   : > { %v1616_v59 = vpop.permute.xlu1 %1615  ;;  %v1684_v43 = vld [vmem:[#allocation2 + $0x98] sm:$0xff] }
 0x4e3   : > { %1632 = vst.msk [vmem:[#allocation2 + $0xb8] sm:$0xff] %vm1552_vm2, %v1616_v59  ;;  %6548 = vmatprep.mubr.msk.f32.mxu0 %vm1552_vm2, %v1736_v16  ;;  %v1739_v19 = vmax.f32 %v1684_v43, 0.0  ;;  %v8234_v59 = vld [vmem:[%s8231_s22] sm:$0xff]  ;;  %v10371_v43 = vmov 0  }
 0x4e4   : > { %v1614_v53 = vpop.permute.xlu0 %1613  ;;  %6549 = vmatmul.mubr.msk.f32.gmra.mxu0 %vm1552_vm2, %v1737_v55  ;;  %v1683_v62 = vld [vmem:[#allocation2 + $0x90] sm:$0xff]  ;;  %v8237_v55 = vmax.f32 %v8234_v59, 0.0  ;;  %6874 = vset.pattern.permute.xlu0 %v10371_v43 }
 0x4e5   : > { %1631 = vst.msk [vmem:[#allocation2 + $0xb0] sm:$0xff] %vm1552_vm2, %v1614_v53  ;;  %v1738_v45 = vmax.f32 %v1683_v62, 0.0  ;;  %6875 = vset.pattern.permute.xlu1 %v10371_v43  ;;  %v8243_v53 = vld [vmem:[%s8231_s22 + $0x18] sm:$0xff]  ;;  %v8436_v43 = vld [vmem:[%s8231_s22 + $0xe8] sm:$0xff] }
 0x4e6   : > { %v1636_v30 = vpop.permute.xlu1 %1635  ;;  %v1686_v51 = vld [vmem:[#allocation2 + $0xa8] sm:$0xff]  ;;  %2883 = vperm.xlu0 %6874, %v8237_v55   ;;  %v8246_v62 = vmax.f32 %v8243_v53, 0.0  ;;  %10468 = vst [vmem:[#allocation15_spill] sm:$0xff] %v8436_v43 }
 0x4e7   : > { %1658 = vst.msk [vmem:[#allocation2 + $0xc8] sm:$0xff] %vm1552_vm2, %v1636_v30  ;;  %6551 = vmatprep.mubr.msk.f32.mxu0 %vm1552_vm2, %v1738_v45  ;;  %v1741_v29 = vmax.f32 %v1686_v51, 0.0  ;;  %v8249_v45 = vld [vmem:[%s8231_s22 + $0x8] sm:$0xff] }
 0x4e8   : > { %v1634_v47 = vpop.permute.xlu0 %1633  ;;  %6552 = vmatmul.mubr.msk.f32.gmra.mxu0 %vm1552_vm2, %v1739_v19  ;;  %v1685_v37 = vld [vmem:[#allocation2 + $0xa0] sm:$0xff]  ;;  %v8253_v30 = vmax.f32 %v8249_v45, 0.0  ;;  %v8256_v19 = vld [vmem:[%s8231_s22 + $0x28] sm:$0xff] }
 0x4e9   : > { %1657 = vst.msk [vmem:[#allocation2 + $0xc0] sm:$0xff] %vm1552_vm2, %v1634_v47  ;;  %v1740_v0 = vmax.f32 %v1685_v37, 0.0  ;;  %v8260_v51 = vmax.f32 %v8256_v19, 0.0  ;;  %v8263_v47 = vld [vmem:[%s8231_s22 + $0x10] sm:$0xff] }
 0x4ea   : > { %v1640_v40 = vpop.permute.xlu1 %1639  ;;  %v1688_v15 = vld [vmem:[#allocation2 + $0xb8] sm:$0xff]  ;;  %2898 = vperm.xlu0 %6874, %v8246_v62   ;;  %2888 = vperm.xlu1 %6875, %v8253_v30   ;;  %v8267_v37 = vmax.f32 %v8263_v47, 0.0 }
 0x4eb   : > { %1660 = vst.msk [vmem:[#allocation2 + $0xd8] sm:$0xff] %vm1552_vm2, %v1640_v40  ;;  %6554 = vmatprep.mubr.msk.f32.mxu0 %vm1552_vm2, %v1740_v0  ;;  %v1743_v6 = vmax.f32 %v1688_v15, 0.0  ;;  %v8270_v0 = vld [vmem:[%s8231_s22 + $0x38] sm:$0xff] }
 0x4ec   : > { %v1638_v57 = vpop.permute.xlu0 %1637  ;;  %6555 = vmatmul.mubr.msk.f32.gmra.mxu0 %vm1552_vm2, %v1741_v29  ;;  %v1687_v61 = vld [vmem:[#allocation2 + $0xb0] sm:$0xff]  ;;  %v8274_v40 = vmax.f32 %v8270_v0, 0.0  ;;  %v8277_v29 = vld [vmem:[%s8231_s22 + $0x20] sm:$0xff] }
 0x4ed   : > { %1659 = vst.msk [vmem:[#allocation2 + $0xd0] sm:$0xff] %vm1552_vm2, %v1638_v57  ;;  %v1742_v11 = vmax.f32 %v1687_v61, 0.0  ;;  %v8281_v15 = vmax.f32 %v8277_v29, 0.0  ;;  %v8284_v57 = vld [vmem:[%s8231_s22 + $0x48] sm:$0xff]  ;;  %v8287_v61 = vld [vmem:[%s8231_s22 + $0x30] sm:$0xff] }
 0x4ee   : > { %v1644_v1 = vpop.permute.xlu1 %1643  ;;  %v1690_v13 = vld [vmem:[#allocation2 + $0xc8] sm:$0xff]  ;;  %2908 = vperm.xlu0 %6874, %v8260_v51   ;;  %2893 = vperm.xlu1 %6875, %v8267_v37  }
 0x4ef   : > { %1662 = vst.msk [vmem:[#allocation2 + $0xe8] sm:$0xff] %vm1552_vm2, %v1644_v1  ;;  %6557 = vmatprep.mubr.msk.f32.mxu0 %vm1552_vm2, %v1742_v11  ;;  %v1745_v41 = vmax.f32 %v1690_v13, 0.0  ;;  %v8290_v11 = vmax.f32 %v8284_v57, 0.0  ;;  %v8293_v1 = vld [vmem:[%s8231_s22 + $0x58] sm:$0xff]  ;;  %v8300_v13 = vld [vmem:[%s8231_s22 + $0x40] sm:$0xff] }
 0x4f0   : > { %v1642_v28 = vpop.permute.xlu0 %1641  ;;  %6558 = vmatmul.mubr.msk.f32.gmra.mxu0 %vm1552_vm2, %v1743_v6  ;;  %v1689_v52 = vld [vmem:[#allocation2 + $0xc0] sm:$0xff]  ;;  %v8297_v6 = vmax.f32 %v8287_v61, 0.0 }
 0x4f1   : > { %1661 = vst.msk [vmem:[#allocation2 + $0xe0] sm:$0xff] %vm1552_vm2, %v1642_v28  ;;  %v1744_v26 = vmax.f32 %v1689_v52, 0.0  ;;  %v8304_v28 = vmax.f32 %v8293_v1, 0.0  ;;  %v8307_v52 = vld [vmem:[%s8231_s22 + $0x68] sm:$0xff] }
 0x4f2   : > { %v1648_v4 = vpop.permute.xlu1 %1647  ;;  %v1692_v44 = vld [vmem:[#allocation2 + $0xd8] sm:$0xff]  ;;  %2918 = vperm.xlu0 %6874, %v8274_v40   ;;  %2903 = vperm.xlu1 %6875, %v8281_v15  }
 0x4f3   : > { %1664 = vst.msk [vmem:[#allocation2 + $0xf8] sm:$0xff] %vm1552_vm2, %v1648_v4  ;;  %6560 = vmatprep.mubr.msk.f32.mxu0 %vm1552_vm2, %v1744_v26  ;;  %v1747_v32 = vmax.f32 %v1692_v44, 0.0  ;;  %v8311_v26 = vmax.f32 %v8300_v13, 0.0  ;;  %v8314_v4 = vld [vmem:[%s8231_s22 + $0x50] sm:$0xff]  ;;  %v8321_v44 = vld [vmem:[%s8231_s22 + $0x78] sm:$0xff] }
 0x4f4   : > { %v1646_v54 = vpop.permute.xlu0 %1645  ;;  %6561 = vmatmul.mubr.msk.f32.gmra.mxu0 %vm1552_vm2, %v1745_v41  ;;  %v1691_v36 = vld [vmem:[#allocation2 + $0xd0] sm:$0xff]  ;;  %v8318_v41 = vmax.f32 %v8307_v52, 0.0 }
 0x4f5   : > { %1663 = vst.msk [vmem:[#allocation2 + $0xf0] sm:$0xff] %vm1552_vm2, %v1646_v54  ;;  %v1746_v56 = vmax.f32 %v1691_v36, 0.0  ;;  %v8325_v54 = vmax.f32 %v8314_v4, 0.0  ;;  %v8328_v36 = vld [vmem:[%s8231_s22 + $0x60] sm:$0xff] }
 0x4f6   : > { %v1694_v10 = vld [vmem:[#allocation2 + $0xe8] sm:$0xff]  ;;  %2928 = vperm.xlu0 %6874, %v8290_v11   ;;  %2913 = vperm.xlu1 %6875, %v8297_v6  }
 0x4f7   : > { %6563 = vmatprep.mubr.msk.f32.mxu0 %vm1552_vm2, %v1746_v56  ;;  %v1749_v31 = vmax.f32 %v1694_v10, 0.0  ;;  %v8332_v56 = vmax.f32 %v8321_v44, 0.0  ;;  %v8339_v10 = vmax.f32 %v8328_v36, 0.0 }
 0x4f8   : > { %6564 = vmatmul.mubr.msk.f32.gmra.mxu0 %vm1552_vm2, %v1747_v32  ;;  %v1693_v7 = vld [vmem:[#allocation2 + $0xe0] sm:$0xff]  ;;  %v8335_v32 = vld [vmem:[%s8231_s22 + $0x88] sm:$0xff] }
 0x4f9   : > { %v1748_v33 = vmax.f32 %v1693_v7, 0.0  ;;  %v8343_v7 = vmax.f32 %v8335_v32, 0.0 }
 0x4fa   : > { %v1696_v38 = vld [vmem:[#allocation2 + $0xf8] sm:$0xff]  ;;  %2938 = vperm.xlu0 %6874, %v8304_v28   ;;  %2923 = vperm.xlu1 %6875, %v8311_v26  }
 0x4fb   : > { %6566 = vmatprep.mubr.msk.f32.mxu0 %vm1552_vm2, %v1748_v33  ;;  %v1751_v63 = vmax.f32 %v1696_v38, 0.0  ;;  %v8347_v33 = vld [vmem:[%s8231_s22 + $0x70] sm:$0xff]  ;;  %v8354_v38 = vld [vmem:[%s8231_s22 + $0x98] sm:$0xff] }
 0x4fc   : > { %6567 = vmatmul.mubr.msk.f32.gmra.mxu0 %vm1552_vm2, %v1749_v31  ;;  %v1695_v17 = vld [vmem:[#allocation2 + $0xf0] sm:$0xff]  ;;  %v8351_v31 = vmax.f32 %v8347_v33, 0.0 }
 0x4fd   : > { %v1750_v9 = vmax.f32 %v1695_v17, 0.0  ;;  %v1709_v17 = vld [vmem:[%s10360_s4 + $0x60] sm:$0xff] }
 0x4fe   : > { %2948 = vperm.xlu0 %6874, %v8318_v41   ;;  %2933 = vperm.xlu1 %6875, %v8325_v54  }
 0x4ff   : > { %6569 = vmatprep.mubr.msk.f32.mxu0 %vm1552_vm2, %v1750_v9  ;;  %v8361_v9 = vmax.f32 %v8354_v38, 0.0  ;;  %6630 = vmatprep.subr.mxu0 %v1709_v17 }
 0x500   : > { %6570 = vmatmul.mubr.msk.f32.gmra.mxu0 %vm1552_vm2, %v1751_v63  ;;  %v8364_v63 = vld [vmem:[%s8231_s22 + $0x80] sm:$0xff] }
 0x501   : > { %6631 = vmatpush3.msra.mxu0 %v1709_v17  ;;  %v8394_v17 = vld [vmem:[%s8231_s22 + $0xb8] sm:$0xff] }
 0x502   : > { %2958 = vperm.xlu0 %6874, %v8332_v56   ;;  %2943 = vperm.xlu1 %6875, %v8339_v10   ;;  %10465 = vst [vmem:[#allocation12_spill] sm:$0xff] %v8394_v17 }
 0x506   : > { %2968 = vperm.xlu0 %6874, %v8343_v7   ;;  %2953 = vperm.xlu1 %6875, %v8351_v31  }
 0x50a   : > { %2978 = vperm.xlu0 %6874, %v8361_v9  }
 0x515   : > { %v6526_v49 = vpop.f32.mrf.mxu0 }
 0x516   : > { %v8167_v23 = vadd.f32 %v6526_v49, %v8164_v39  ;;  %v1708_v49 = vld [vmem:[%s10360_s4 + $0x58] sm:$0xff] }
 0x517   : > { %v1914_v48 = vpop.f32.mrf.mxu0  ;;  %6632 = vmatprep.subr.mxu0 %v1708_v49 }
 0x518   : > { %10456 = vst [vmem:[#allocation3_spill] sm:$0xff] %v8167_v23  ;;  %v8170_v60 = vadd.f32 %v1914_v48, %v8164_v39  ;;  %v10370_v3 = vmax.f32 %v8167_v23, 0.0  ;;  %v8371_v48 = vmax.f32 %v8364_v63, 0.0  ;;  %6633 = vmatpush3.msra.mxu0 %v1708_v49  ;;  %v8398_v49 = vmax.f32 %v8394_v17, 0.0  ;;  %v8465_v23 = vld [vmem:[%s8231_s22 + $0xf0] sm:$0xff] }
 0x51a   : > { %10457 = vst [vmem:[#allocation4_spill] sm:$0xff] %v8170_v60  ;;  %v10369_v24 = vmax.f32 %v8170_v60, 0.0  ;;  %2963 = vperm.xlu1 %6875, %v8371_v48  }
 0x51c   : > { %6582 = vmatprep.mubr.msk.f32.mxu1 %vm2105_vm4, %v10369_v24  ;;  %v8429_v24 = vld [vmem:[%s8231_s22 + $0xc0] sm:$0xff] }
 0x51d   : > { %v6529_v50 = vpop.f32.mrf.mxu0  ;;  %6583 = vmatmul.mubr.msk.f32.vlgmr.msra.gmra.mxu1 %vm2105_vm4, %v10370_v3  ;;  %v8433_v3 = vmax.f32 %v8429_v24, 0.0 }
 0x51e   : > { %v8181_v14 = vadd.f32 %v6529_v50, %v8164_v39  ;;  %v8374_v50 = vld [vmem:[%s8231_s22 + $0xa8] sm:$0xff] }
 0x51f   : > { %v1924_v21 = vpop.f32.mrf.mxu0  ;;  %10464 = vst [vmem:[#allocation11_spill] sm:$0xff] %v8374_v50 }
 0x520   : > { %10458 = vst [vmem:[#allocation5_spill] sm:$0xff] %v8181_v14  ;;  %v8184_v46 = vadd.f32 %v1924_v21, %v8164_v39  ;;  %v10368_v5 = vmax.f32 %v8181_v14, 0.0  ;;  %v1707_v21 = vld [vmem:[%s10360_s4 + $0x50] sm:$0xff]  ;;  %v8457_v14 = vld [vmem:[%s8231_s22 + $0xe0] sm:$0xff] }
 0x521   : > { %6634 = vmatprep.subr.mxu0 %v1707_v21  ;;  %v8461_v60 = vmax.f32 %v8457_v14, 0.0 }
 0x522   : > { %10459 = vst [vmem:[#allocation6_spill] sm:$0xff] %v8184_v46  ;;  %v10367_v2 = vmax.f32 %v8184_v46, 0.0  ;;  %6635 = vmatpush3.msra.mxu0 %v1707_v21  ;;  %v8401_v21 = vld [vmem:[%s8231_s22 + $0xa0] sm:$0xff] }
 0x524   : > { %6585 = vmatprep.mubr.msk.f32.mxu1 %vm2105_vm4, %v10367_v2  ;;  %v8422_v2 = vld [vmem:[%s8231_s22 + $0xd8] sm:$0xff] }
 0x525   : > { %v6532_v25 = vpop.f32.mrf.mxu0  ;;  %6586 = vmatmul.mubr.msk.f32.gmra.mxu1 %vm2105_vm4, %v10368_v5  ;;  %10467 = vst [vmem:[#allocation14_spill] sm:$0xff] %v8422_v2  ;;  %v8426_v5 = vmax.f32 %v8422_v2, 0.0  ;;  %v8469_v2 = vmax.f32 %v8465_v23, 0.0 }
 0x526   : > { %v8195_v18 = vadd.f32 %v6532_v25, %v8164_v39  ;;  %v8381_v25 = vmax.f32 %v8374_v50, 0.0 }
 0x527   : > { %v1934_v34 = vpop.f32.mrf.mxu0 }
 0x528   : > { %10460 = vst [vmem:[#allocation7_spill] sm:$0xff] %v8195_v18  ;;  %v8198_v20 = vadd.f32 %v1934_v34, %v8164_v39  ;;  %v10366_v58 = vmax.f32 %v8195_v18, 0.0  ;;  %v8384_v34 = vld [vmem:[%s8231_s22 + $0x90] sm:$0xff]  ;;  %2988 = vperm.xlu0 %6874, %v8381_v25   ;;  %v8450_v18 = vld [vmem:[%s8231_s22 + $0xf8] sm:$0xff] }
 0x529   : > { %10469 = vst [vmem:[#allocation16_spill] sm:$0xff] %v8450_v18  ;;  %v8454_v46 = vmax.f32 %v8450_v18, 0.0  ;;  %v10395_v18 = vmov 1  }
 0x52a   : > { %10461 = vst [vmem:[#allocation8_spill] sm:$0xff] %v8198_v20  ;;  %v10365_v42 = vmax.f32 %v8198_v20, 0.0 }
 0x52c   : > { %6588 = vmatprep.mubr.msk.f32.mxu1 %vm2105_vm4, %v10365_v42  ;;  %2998 = vperm.xlu0 %6874, %v8398_v49  }
 0x52d   : > { %v6535_v35 = vpop.f32.mrf.mxu0  ;;  %6589 = vmatmul.mubr.msk.f32.gmra.mxu1 %vm2105_vm4, %v10366_v58 }
 0x52e   : > { %v8209_v22 = vadd.f32 %v6535_v35, %v8164_v39  ;;  %v1706_v35 = vld [vmem:[%s10360_s4 + $0x48] sm:$0xff] }
 0x52f   : > { %v1944_v12 = vpop.f32.mrf.mxu0  ;;  %6636 = vmatprep.subr.mxu0 %v1706_v35 }
 0x530   : > { %10462 = vst [vmem:[#allocation9_spill] sm:$0xff] %v8209_v22  ;;  %v8212_v8 = vadd.f32 %v1944_v12, %v8164_v39  ;;  %v10364_v16 = vmax.f32 %v8209_v22, 0.0  ;;  %v8391_v12 = vmax.f32 %v8384_v34, 0.0  ;;  %6637 = vmatpush3.msra.mxu0 %v1706_v35  ;;  %v8415_v35 = vld [vmem:[%s8231_s22 + $0xb0] sm:$0xff] }
 0x531   : > { %v8419_v58 = vmax.f32 %v8415_v35, 0.0  ;;  %v8443_v22 = vld [vmem:[%s8231_s22 + $0xd0] sm:$0xff] }
 0x532   : > { %10463 = vst [vmem:[#allocation10_spill] sm:$0xff] %v8212_v8  ;;  %v10363_v27 = vmax.f32 %v8212_v8, 0.0  ;;  %2973 = vperm.xlu1 %6875, %v8391_v12   ;;  %v8440_v8 = vmax.f32 %v8436_v43, 0.0  ;;  %v8447_v20 = vmax.f32 %v8443_v22, 0.0  ;;  %v10387_v43 = vmov 2  }
 0x534   : > { %6591 = vmatprep.mubr.msk.f32.mxu1 %vm2105_vm4, %v10363_v27  ;;  %v8405_v27 = vmax.f32 %v8401_v21, 0.0 }
 0x535   : > { %6592 = vmatmul.mubr.msk.f32.gmra.mxu1 %vm2105_vm4, %v10364_v16  ;;  %v8408_v16 = vld [vmem:[%s8231_s22 + $0xc8] sm:$0xff] }
 0x536   : > { %10466 = vst [vmem:[#allocation13_spill] sm:$0xff] %v8408_v16  ;;  %2983 = vperm.xlu1 %6875, %v8405_v27   ;;  %v8412_v42 = vmax.f32 %v8408_v16, 0.0 }
 0x538   : > { %3008 = vperm.xlu0 %6874, %v8412_v42  }
 0x53a   : > { %2993 = vperm.xlu1 %6875, %v8419_v58  }
 0x53c   : > { %3018 = vperm.xlu0 %6874, %v8426_v5  }
 0x53e   : > { %3003 = vperm.xlu1 %6875, %v8433_v3  }
 0x540   : > { %3028 = vperm.xlu0 %6874, %v8440_v8  }
 0x542   : > { %3013 = vperm.xlu1 %6875, %v8447_v20  }
 0x544   : > { %3038 = vperm.xlu0 %6874, %v8454_v46  }
 0x546   : > { %3023 = vperm.xlu1 %6875, %v8461_v60  }
 0x548   : > { %6877 = vset.pattern.permute.xlu0 %v10387_v43 }
 0x549   : > { %3308 = vperm.xlu0 %6877, %v8237_v55  }
 0x54a   : > { %3033 = vperm.xlu1 %6875, %v8469_v2  }
 0x54d   : > { %3320 = vperm.xlu0 %6877, %v8246_v62  }
 0x54e   : > { %6876 = vset.pattern.permute.xlu1 %v10395_v18 }
 0x54f   : > { %3111 = vperm.xlu1 %6876, %v8237_v55  }
 0x551   : > { %3328 = vperm.xlu0 %6877, %v8260_v51  }
 0x553   : > { %3119 = vperm.xlu1 %6876, %v8267_v37  }
 0x555   : > { %3336 = vperm.xlu0 %6877, %v8274_v40  }
 0x557   : > { %3123 = vperm.xlu1 %6876, %v8246_v62  }
 0x559   : > { %3344 = vperm.xlu0 %6877, %v8290_v11  }
 0x55b   : > { %3131 = vperm.xlu1 %6876, %v8260_v51  }
 0x55d   : > { %3352 = vperm.xlu0 %6877, %v8304_v28  }
 0x55f   : > { %3139 = vperm.xlu1 %6876, %v8274_v40  }
 0x561   : > { %3360 = vperm.xlu0 %6877, %v8318_v41  }
 0x563   : > { %3147 = vperm.xlu1 %6876, %v8290_v11  }
 0x565   : > { %3368 = vperm.xlu0 %6877, %v8332_v56  }
 0x567   : > { %3155 = vperm.xlu1 %6876, %v8304_v28  }
 0x569   : > { %3376 = vperm.xlu0 %6877, %v8343_v7  }
 0x56b   : > { %3163 = vperm.xlu1 %6876, %v8318_v41  }
 0x56d   : > { %3384 = vperm.xlu0 %6877, %v8361_v9  }
 0x56f   : > { %3171 = vperm.xlu1 %6876, %v8332_v56  }
 0x571   : > { %3396 = vperm.xlu0 %6877, %v8419_v58  }
 0x573   : > { %3179 = vperm.xlu1 %6876, %v8343_v7  }
 0x575   : > { %3412 = vperm.xlu0 %6877, %v8447_v20  }
 0x577   : > { %3187 = vperm.xlu1 %6876, %v8361_v9   ;;  %v10485_v9 = vmov 2  }
 0x57b   : > { %6878 = vset.pattern.permute.xlu1 %v10485_v9 }
 0x57c   : > { %3312 = vperm.xlu1 %6878, %v8253_v30  }
 0x580   : > { %3316 = vperm.xlu1 %6878, %v8267_v37  }
 0x584   : > { %3324 = vperm.xlu1 %6878, %v8281_v15  }
 0x588   : > { %3332 = vperm.xlu1 %6878, %v8297_v6  }
 0x58b   : > { %v6538_v43 = vpop.f32.mrf.mxu0 }
 0x58c   : > { %v8481_v16 = vadd.f32 %v6538_v43, %v8164_v39  ;;  %3340 = vperm.xlu1 %6878, %v8311_v26  }
 0x58d   : > { %v1954_v17 = vpop.f32.mrf.mxu0 }
 0x58e   : > { %10470 = vst [vmem:[#allocation17_spill] sm:$0xff] %v8481_v16  ;;  %v8485_v50 = vadd.f32 %v1954_v17, %v8164_v39  ;;  %v10402_v18 = vmax.f32 %v8481_v16, 0.0 }
 0x590   : > { %10471 = vst [vmem:[#allocation18_spill] sm:$0xff] %v8485_v50  ;;  %v10397_v55 = vmax.f32 %v8485_v50, 0.0  ;;  %3348 = vperm.xlu1 %6878, %v8325_v54  }
 0x592   : > { %6594 = vmatprep.mubr.msk.f32.mxu1 %vm2105_vm4, %v10397_v55 }
 0x593   : > { %v6541_v43 = vpop.f32.mrf.mxu0  ;;  %6595 = vmatmul.mubr.msk.f32.gmra.mxu1 %vm2105_vm4, %v10402_v18 }
 0x594   : > { %v8499_v62 = vadd.f32 %v6541_v43, %v8164_v39  ;;  %3356 = vperm.xlu1 %6878, %v8339_v10  }
 0x595   : > { %v1964_v51 = vpop.f32.mrf.mxu0 }
 0x596   : > { %10472 = vst [vmem:[#allocation19_spill] sm:$0xff] %v8499_v62  ;;  %v8503_v17 = vadd.f32 %v1964_v51, %v8164_v39  ;;  %v10401_v16 = vmax.f32 %v8499_v62, 0.0 }
 0x598   : > { %10473 = vst [vmem:[#allocation20_spill] sm:$0xff] %v8503_v17  ;;  %v10400_v55 = vmax.f32 %v8503_v17, 0.0  ;;  %v6544_v50 = vpop.f32.mrf.mxu0  ;;  %3364 = vperm.xlu1 %6878, %v8351_v31  }
 0x599   : > { %v8510_v40 = vadd.f32 %v6544_v50, %v8164_v39 }
 0x59a   : > { %v1974_v43 = vpop.f32.mrf.mxu0  ;;  %6597 = vmatprep.mubr.msk.f32.mxu1 %vm2105_vm4, %v10400_v55 }
 0x59b   : > { %10474 = vst [vmem:[#allocation21_spill] sm:$0xff] %v8510_v40  ;;  %v8516_v51 = vadd.f32 %v1974_v43, %v8164_v39  ;;  %6598 = vmatmul.mubr.msk.f32.gmra.mxu1 %vm2105_vm4, %v10401_v16  ;;  %v10404_v50 = vmax.f32 %v8510_v40, 0.0 }
 0x59c   : > { %3372 = vperm.xlu1 %6878, %v8371_v48  }
 0x59d   : > { %10475 = vst [vmem:[#allocation22_spill] sm:$0xff] %v8516_v51  ;;  %v10403_v11 = vmax.f32 %v8516_v51, 0.0 }
 0x59f   : > { %6600 = vmatprep.mubr.msk.f32.mxu1 %vm2105_vm4, %v10403_v11 }
 0x5a0   : > { %v6547_v43 = vpop.f32.mrf.mxu0  ;;  %6601 = vmatmul.mubr.msk.f32.gmra.mxu1 %vm2105_vm4, %v10404_v50  ;;  %3380 = vperm.xlu1 %6878, %v8391_v12  }
 0x5a1   : > { %v8534_v28 = vadd.f32 %v6547_v43, %v8164_v39 }
 0x5a2   : > { %v1984_v55 = vpop.f32.mrf.mxu0 }
 0x5a3   : > { %10476 = vst [vmem:[#allocation23_spill] sm:$0xff] %v8534_v28  ;;  %v8537_v16 = vadd.f32 %v1984_v55, %v8164_v39  ;;  %v10409_v41 = vmax.f32 %v8534_v28, 0.0 }
 0x5a4   : > { %v6550_v18 = vpop.f32.mrf.mxu0 }
 0x5a5   : > { %10477 = vst [vmem:[#allocation24_spill] sm:$0xff] %v8537_v16  ;;  %v10408_v11 = vmax.f32 %v8537_v16, 0.0  ;;  %v8544_v50 = vadd.f32 %v6550_v18, %v8164_v39 }
 0x5a6   : > { %v1994_v51 = vpop.f32.mrf.mxu0 }
 0x5a7   : > { %10478 = vst [vmem:[#allocation25_spill] sm:$0xff] %v8544_v50  ;;  %v8547_v43 = vadd.f32 %v1994_v51, %v8164_v39  ;;  %6603 = vmatprep.mubr.msk.f32.mxu1 %vm2105_vm4, %v10408_v11  ;;  %v10412_v18 = vmax.f32 %v8544_v50, 0.0 }
 0x5a8   : > { %v6553_v56 = vpop.f32.mrf.mxu0  ;;  %6604 = vmatmul.mubr.msk.f32.gmra.mxu1 %vm2105_vm4, %v10409_v41  ;;  %v10482_v41 = vmov 1  }
 0x5a9   : > { %10479 = vst [vmem:[#allocation26_spill] sm:$0xff] %v8547_v43  ;;  %v10411_v55 = vmax.f32 %v8547_v43, 0.0  ;;  %v8560_v51 = vadd.f32 %v6553_v56, %v8164_v39  ;;  %6886 = vset.pattern.permute.xlu0 %v10482_v41  ;;  %6879 = vset.pattern.permute.xlu1 %v10482_v41 }
 0x5aa   : > { %v2004_v40 = vpop.f32.mrf.mxu0  ;;  %3115 = vperm.xlu0 %6886, %v8253_v30   ;;  %3191 = vperm.xlu1 %6879, %v8405_v27  }
 0x5ab   : > { %10480 = vst [vmem:[#allocation27_spill] sm:$0xff] %v8560_v51  ;;  %v8563_v16 = vadd.f32 %v2004_v40, %v8164_v39  ;;  %6606 = vmatprep.mubr.msk.f32.mxu1 %vm2105_vm4, %v10411_v55  ;;  %v10416_v56 = vmax.f32 %v8560_v51, 0.0 }
 0x5ac   : > { %v6556_v7 = vpop.f32.mrf.mxu0  ;;  %6607 = vmatmul.mubr.msk.f32.gmra.mxu1 %vm2105_vm4, %v10412_v18 }
 0x5ad   : > { %10481 = vst [vmem:[#allocation28_spill] sm:$0xff] %v8563_v16  ;;  %v10415_v11 = vmax.f32 %v8563_v16, 0.0  ;;  %v8576_v40 = vadd.f32 %v6556_v7, %v8164_v39 }
 0x5ae   : > { %v2014_v28 = vpop.f32.mrf.mxu0  ;;  %3127 = vperm.xlu0 %6886, %v8281_v15   ;;  %v8637_v15 = vpop.permute.xlu0 %2883  ;;  %6880 = vset.pattern.permute.xlu1 %v10485_v9 }
 0x5af   : > { %10483 = vst [vmem:[#allocation29_spill] sm:$0xff] %v8576_v40  ;;  %v8580_v55 = vadd.f32 %v2014_v28, %v8164_v39  ;;  %6609 = vmatprep.mubr.msk.f32.mxu1 %vm2105_vm4, %v10415_v11  ;;  %v10420_v43 = vmax.f32 %v8576_v40, 0.0  ;;  %3388 = vperm.xlu1 %6880, %v8405_v27  }
 0x5b0   : > { %v6559_v18 = vpop.f32.mrf.mxu0  ;;  %6610 = vmatmul.mubr.msk.f32.gmra.mxu1 %vm2105_vm4, %v10416_v56 }
 0x5b1   : > { %10484 = vst [vmem:[#allocation30_spill] sm:$0xff] %v8580_v55  ;;  %v10419_v7 = vmax.f32 %v8580_v55, 0.0  ;;  %v8593_v28 = vadd.f32 %v6559_v18, %v8164_v39 }
 0x5b2   : > { %v2024_v50 = vpop.f32.mrf.mxu0  ;;  %3135 = vperm.xlu0 %6886, %v8297_v6  }
 0x5b3   : > { %10486 = vst [vmem:[#allocation31_spill] sm:$0xff] %v8593_v28  ;;  %v8597_v11 = vadd.f32 %v2024_v50, %v8164_v39  ;;  %6612 = vmatprep.mubr.msk.f32.mxu1 %vm2105_vm4, %v10419_v7  ;;  %v10423_v18 = vmax.f32 %v8593_v28, 0.0  ;;  %3392 = vperm.xlu1 %6880, %v8381_v25  }
 0x5b4   : > { %v6562_v56 = vpop.f32.mrf.mxu0  ;;  %6613 = vmatmul.mubr.msk.f32.gmra.mxu1 %vm2105_vm4, %v10420_v43 }
 0x5b5   : > { %10487 = vst [vmem:[#allocation32_spill] sm:$0xff] %v8597_v11  ;;  %v10422_v30 = vmax.f32 %v8597_v11, 0.0  ;;  %v8609_v16 = vadd.f32 %v6562_v56, %v8164_v39 }
 0x5b6   : > { %v2034_v50 = vpop.f32.mrf.mxu0  ;;  %3143 = vperm.xlu0 %6886, %v8311_v26   ;;  %v8670_v26 = vpop.permute.xlu1 %2888 }
 0x5b7   : > { %10488 = vst [vmem:[#allocation33_spill] sm:$0xff] %v8609_v16  ;;  %v8613_v55 = vadd.f32 %v2034_v50, %v8164_v39  ;;  %6615 = vmatprep.mubr.msk.f32.mxu1 %vm2105_vm4, %v10422_v30  ;;  %v10426_v56 = vmax.f32 %v8609_v16, 0.0  ;;  %v8661_v16 = vpop.permute.xlu0 %2898  ;;  %6881 = vset.pattern.permute.xlu1 %v10482_v41 }
 0x5b8   : > { %v6565_v7 = vpop.f32.mrf.mxu0  ;;  %6616 = vmatmul.mubr.msk.f32.gmra.mxu1 %vm2105_vm4, %v10423_v18  ;;  %3203 = vperm.xlu1 %6881, %v8398_v49  }
 0x5b9   : > { %10489 = vst [vmem:[#allocation34_spill] sm:$0xff] %v8613_v55  ;;  %v10425_v37 = vmax.f32 %v8613_v55, 0.0  ;;  %v8625_v43 = vadd.f32 %v6565_v7, %v8164_v39 }
 0x5ba   : > { %v2044_v50 = vpop.f32.mrf.mxu0  ;;  %3151 = vperm.xlu0 %6886, %v8325_v54  }
 0x5bb   : > { %10490 = vst [vmem:[#allocation35_spill] sm:$0xff] %v8625_v43  ;;  %v8629_v11 = vadd.f32 %v2044_v50, %v8164_v39  ;;  %6618 = vmatprep.mubr.msk.f32.mxu1 %vm2105_vm4, %v10425_v37  ;;  %v10430_v18 = vmax.f32 %v8625_v43, 0.0  ;;  %v7028_v43 = vld [vmem:[#allocation2] sm:$0xff] }
 0x5bc   : > { %v6568_v30 = vpop.f32.mrf.mxu0  ;;  %6619 = vmatmul.mubr.msk.f32.gmra.mxu1 %vm2105_vm4, %v10426_v56  ;;  %6882 = vset.pattern.permute.xlu1 %v10485_v9 }
 0x5bd   : > { %10491 = vst [vmem:[#allocation36_spill] sm:$0xff] %v8629_v11  ;;  %v10429_v7 = vmax.f32 %v8629_v11, 0.0  ;;  %v8643_v50 = vadd.f32 %v6568_v30, %v8164_v39  ;;  %3400 = vperm.xlu1 %6882, %v8398_v49  }
 0x5be   : > { %v2054_v28 = vpop.f32.mrf.mxu0  ;;  %3159 = vperm.xlu0 %6886, %v8339_v10  }
 0x5bf   : > { %10492 = vst [vmem:[#allocation37_spill] sm:$0xff] %v8643_v50  ;;  %v8647_v37 = vadd.f32 %v2054_v28, %v8164_v39  ;;  %6621 = vmatprep.mubr.msk.f32.mxu1 %vm2105_vm4, %v10429_v7  ;;  %v10434_v30 = vmax.f32 %v8643_v50, 0.0 }
 0x5c0   : > { %v6571_v56 = vpop.f32.mrf.mxu0  ;;  %6622 = vmatmul.mubr.msk.f32.gmra.mxu1 %vm2105_vm4, %v10430_v18 }
 0x5c1   : > { %10493 = vst [vmem:[#allocation38_spill] sm:$0xff] %v8647_v37  ;;  %v10431_v6 = vmax.f32 %v8647_v37, 0.0  ;;  %v8659_v55 = vadd.f32 %v6571_v56, %v8164_v39  ;;  %v7027_v37 = vld [vmem:[#allocation2 + $0x8] sm:$0xff]  ;;  %6883 = vset.pattern.permute.xlu1 %v10482_v41 }
 0x5c2   : > { %v2064_v28 = vpop.f32.mrf.mxu0  ;;  %3167 = vperm.xlu0 %6886, %v8351_v31   ;;  %3207 = vperm.xlu1 %6883, %v8433_v3  }
 0x5c3   : > { %10494 = vst [vmem:[#allocation39_spill] sm:$0xff] %v8659_v55  ;;  %v8665_v7 = vadd.f32 %v2064_v28, %v8164_v39  ;;  %6624 = vmatprep.mubr.msk.f32.mxu1 %vm2105_vm4, %v10431_v6  ;;  %v10433_v18 = vmax.f32 %v8659_v55, 0.0  ;;  %v8685_v39 = vpop.permute.xlu0 %2908  ;;  %v8688_v28 = vpop.permute.xlu1 %2893 }
 0x5c4   : > { %6625 = vmatmul.mubr.msk.f32.gmra.mxu1 %vm2105_vm4, %v10434_v30 }
 0x5c5   : > { %10495 = vst [vmem:[#allocation40_spill] sm:$0xff] %v8665_v7  ;;  %v10432_v56 = vmax.f32 %v8665_v7, 0.0 }
 0x5c6   : > { %3175 = vperm.xlu0 %6886, %v8371_v48   ;;  %v8713_v48 = vld [vmem:[%s10361_s5 + $0x6] ss:$0 sm:$0xff]  ;;  %6884 = vset.pattern.permute.xlu1 %v10485_v9 }
 0x5c7   : > { %6627 = vmatprep.mubr.msk.f32.mxu1 %vm2105_vm4, %v10432_v56  ;;  %v8692_v54 = vpop.permute.xlu0 %2918  ;;  %v8695_v6 = vpop.permute.xlu1 %2903  ;;  %3404 = vperm.xlu1 %6884, %v8433_v3  }
 0x5c8   : > { %6628 = vmatmul.mubr.msk.f32.gmra.mxu1 %vm2105_vm4, %v10433_v18 }
 0x5ca   : > { %3183 = vperm.xlu0 %6886, %v8391_v12  }
 0x5cb   : > { %v8699_v56 = vpop.permute.xlu0 %2928  ;;  %v8702_v10 = vpop.permute.xlu1 %2913  ;;  %3408 = vperm.xlu1 %6884, %v8412_v42  }
 0x5cc   : > { %10496 = vst [vmem:[#allocation41_spill] sm:$0xff] %v8699_v56 }
 0x5ce   : > { %3195 = vperm.xlu0 %6886, %v8381_v25  }
 0x5cf   : > { %v8707_v31 = vpop.permute.xlu0 %2938  ;;  %v8715_v18 = vpop.permute.xlu1 %2923  ;;  %6885 = vset.pattern.permute.xlu1 %v10482_v41 }
 0x5d0   : > { %10497 = vst [vmem:[#allocation42_spill] sm:$0xff] %v8707_v31  ;;  %10498 = vst [vmem:[#allocation43_spill] sm:$0xff] %v8715_v18  ;;  %3219 = vperm.xlu1 %6885, %v8426_v5   ;;  %v7048_v18 = vld [vmem:[%s8231_s22 + $0x40] sm:$0xff] }
 0x5d2   : > { %3199 = vperm.xlu0 %6886, %v8419_v58  }
 0x5d3   : > { %v8722_v55 = vpop.permute.xlu0 %2948  ;;  %v8726_v11 = vpop.permute.xlu1 %2933 }
 0x5d4   : > { %10499 = vst [vmem:[#allocation44_spill] sm:$0xff] %v8722_v55  ;;  %10500 = vst [vmem:[#allocation45_spill] sm:$0xff] %v8726_v11  ;;  %6887 = vset.pattern.permute.xlu1 %v10485_v9 }
 0x5d5   : > { %3416 = vperm.xlu1 %6887, %v8426_v5   ;;  %v8832_v5 = vld [vmem:[%s10360_s4 + $0xa8] sm:$0xff] }
 0x5d6   : > { %3211 = vperm.xlu0 %6886, %v8412_v42   ;;  %10517 = vst [vmem:[#allocation61_spill] sm:$0xff] %v8832_v5 }
 0x5d9   : > { %6888 = vset.pattern.permute.xlu1 %v10482_v41 }
 0x5da   : > { %3215 = vperm.xlu0 %6886, %v8447_v20   ;;  %3223 = vperm.xlu1 %6888, %v8461_v60  }
 0x5dd   : > { %v6584_v12 = vpop.f32.mrf.mxu1 }
 0x5de   : > { %v2278_v58 = vadd.f32 %v6584_v12, %v8713_v48  ;;  %3227 = vperm.xlu0 %6886, %v8440_v8   ;;  %6889 = vset.pattern.permute.xlu1 %v10485_v9 }
 0x5df   : > { %v2272_v30 = vpop.f32.mrf.mxu1  ;;  %3420 = vperm.xlu1 %6889, %v8461_v60   ;;  %v8852_v60 = vld [vmem:[%s10360_s4 + $0x98] sm:$0xff] }
 0x5e0   : > { %v2273_v7 = vadd.f32 %v2272_v30, %v8713_v48  ;;  %v8724_v50 = vadd.f32 %v7027_v37, %v2278_v58  ;;  %v8736_v37 = vpop.permute.xlu0 %2958  ;;  %10521 = vst [vmem:[#allocation65_spill] sm:$0xff] %v8852_v60 }
 0x5e1   : > { %10501 = vst [vmem:[#allocation46_spill] sm:$0xff] %v8736_v37 }
 0x5e2   : > { %v8728_v40 = vadd.f32 %v7028_v43, %v2273_v7  ;;  %v2528_v27 = vmax.f32 %v8724_v50, 0.0  ;;  %3231 = vperm.xlu0 %6886, %v8469_v2   ;;  %v8740_v43 = vpop.permute.xlu1 %2943  ;;  %v7029_v7 = vld [vmem:[#allocation2 + $0x18] sm:$0xff] }
 0x5e3   : > { %10502 = vst [vmem:[#allocation47_spill] sm:$0xff] %v8740_v43  ;;  %3424 = vperm.xlu1 %6889, %v8440_v8  }
 0x5e4   : > { %v2527_v20 = vmax.f32 %v8728_v40, 0.0  ;;  %v8752_v17 = vpop.permute.xlu0 %2968 }
 0x5e5   : > { %v6587_v12 = vpop.f32.mrf.mxu1  ;;  %10503 = vst [vmem:[#allocation48_spill] sm:$0xff] %v8752_v17 }
 0x5e6   : > { %v2288_v30 = vadd.f32 %v6587_v12, %v8713_v48  ;;  %6638 = vmatprep.mubr.msk.f32.mxu0 %vm1552_vm2, %v2527_v20  ;;  %v7030_v12 = vld [vmem:[#allocation2 + $0x10] sm:$0xff]  ;;  %6891 = vset.pattern.permute.xlu0 %v10485_v9  ;;  %v8756_v37 = vpop.permute.xlu1 %2953 }
 0x5e7   : > { %v2282_v58 = vpop.f32.mrf.mxu1  ;;  %6639 = vmatmul.mubr.msk.f32.vlgmr.msra.gmra.mxu0 %vm1552_vm2, %v2528_v27  ;;  %3428 = vperm.xlu0 %6891, %v8469_v2   ;;  %10504 = vst [vmem:[#allocation49_spill] sm:$0xff] %v8756_v37  ;;  %v10505_v2 = vmov 0   ;;  %v7032_v37 = vld [vmem:[#allocation2 + $0x20] sm:$0xff] }
 0x5e8   : > { %v2283_v25 = vadd.f32 %v2282_v58, %v8713_v48  ;;  %v8745_v51 = vadd.f32 %v7029_v7, %v2288_v30  ;;  %6890 = vset.pattern.permute.xlu1 %v10482_v41 }
 0x5e9   : > { %3235 = vperm.xlu1 %6890, %v8454_v46  }
 0x5ea   : > { %v8747_v20 = vadd.f32 %v7030_v12, %v2283_v25  ;;  %v2530_v58 = vmax.f32 %v8745_v51, 0.0  ;;  %v7031_v12 = vld [vmem:[#allocation2 + $0x28] sm:$0xff] }
 0x5eb   : > { %6894 = vset.pattern.permute.xlu0 %v10505_v2 }
 0x5ec   : > { %v2529_v27 = vmax.f32 %v8747_v20, 0.0  ;;  %4546 = vperm.xlu0 %6894, %v8249_v45  }
 0x5ed   : > { %v6590_v62 = vpop.f32.mrf.mxu1  ;;  %6892 = vset.pattern.permute.xlu1 %v10485_v9 }
 0x5ee   : > { %v2298_v30 = vadd.f32 %v6590_v62, %v8713_v48  ;;  %6641 = vmatprep.mubr.msk.f32.mxu0 %vm1552_vm2, %v2529_v27  ;;  %v8770_v62 = vpop.permute.xlu0 %2978  ;;  %v8773_v27 = vpop.permute.xlu1 %2963  ;;  %3432 = vperm.xlu1 %6892, %v8454_v46   ;;  %v1714_v46 = vld [vmem:[%s10360_s4 + $0x90] sm:$0x7] }
 0x5ef   : > { %v2292_v25 = vpop.f32.mrf.mxu1  ;;  %6642 = vmatmul.mubr.msk.f32.gmra.mxu0 %vm1552_vm2, %v2530_v58  ;;  %10506 = vst [vmem:[#allocation50_spill] sm:$0xff] %v8770_v62  ;;  %10507 = vst [vmem:[#allocation51_spill] sm:$0xff] %v8773_v27  ;;  %v7033_v62 = vld [vmem:[#allocation2 + $0x38] sm:$0xff]  ;;  %6686 = vmatprep.subr.msk.mxu1 %vm3632_vm5, %v1714_v46 }
 0x5f0   : > { %v2293_v7 = vadd.f32 %v2292_v25, %v8713_v48  ;;  %v8765_v17 = vadd.f32 %v7031_v12, %v2298_v30  ;;  %4561 = vperm.xlu0 %6894, %v8277_v29   ;;  %6687 = vmatpush3.msk.msra.mxu1 %vm3632_vm5, %v1714_v46  ;;  %v1711_v46 = vld [vmem:[%s10360_s4 + $0x78] sm:$0xff] }
 0x5f2   : > { %v8768_v49 = vadd.f32 %v7032_v37, %v2293_v7  ;;  %v2532_v25 = vmax.f32 %v8765_v17, 0.0  ;;  %v8784_v12 = vpop.permute.xlu0 %2988  ;;  %v8789_v55 = vpop.permute.xlu1 %2973  ;;  %6893 = vset.pattern.permute.xlu1 %v10505_v2 }
 0x5f3   : > { %10508 = vst [vmem:[#allocation52_spill] sm:$0xff] %v8784_v12  ;;  %10509 = vst [vmem:[#allocation53_spill] sm:$0xff] %v8789_v55  ;;  %4541 = vperm.xlu1 %6893, %v8234_v59  }
 0x5f4   : > { %v2531_v58 = vmax.f32 %v8768_v49, 0.0  ;;  %4571 = vperm.xlu0 %6894, %v8287_v61  }
 0x5f5   : > { %v6593_v43 = vpop.f32.mrf.mxu1 }
 0x5f6   : > { %v2308_v30 = vadd.f32 %v6593_v43, %v8713_v48  ;;  %6644 = vmatprep.mubr.msk.f32.mxu0 %vm1552_vm2, %v2531_v58  ;;  %v7034_v43 = vld [vmem:[#allocation2 + $0x30] sm:$0xff] }
 0x5f7   : > { %v2302_v37 = vpop.f32.mrf.mxu1  ;;  %6645 = vmatmul.mubr.msk.f32.gmra.mxu0 %vm1552_vm2, %v2532_v25  ;;  %4551 = vperm.xlu1 %6893, %v8263_v47  }
 0x5f8   : > { %v2303_v7 = vadd.f32 %v2302_v37, %v8713_v48  ;;  %v8787_v27 = vadd.f32 %v7033_v62, %v2308_v30  ;;  %4581 = vperm.xlu0 %6894, %v8300_v13   ;;  %v8798_v37 = vpop.permute.xlu0 %2998  ;;  %v8801_v62 = vpop.permute.xlu1 %2983 }
 0x5f9   : > { %10510 = vst [vmem:[#allocation54_spill] sm:$0xff] %v8798_v37  ;;  %10511 = vst [vmem:[#allocation55_spill] sm:$0xff] %v8801_v62  ;;  %v10541_v37 = vld [vmem:[#allocation14_spill] sm:$0xff] }
 0x5fa   : > { %v8791_v58 = vadd.f32 %v7034_v43, %v2303_v7  ;;  %v2534_v3 = vmax.f32 %v8787_v27, 0.0 }
 0x5fb   : > { %4556 = vperm.xlu1 %6893, %v8243_v53  }
 0x5fc   : > { %v2533_v25 = vmax.f32 %v8791_v58, 0.0  ;;  %4591 = vperm.xlu0 %6894, %v8314_v4   ;;  %v8806_v42 = vpop.permute.xlu0 %3008  ;;  %v8810_v13 = vpop.permute.xlu1 %2993  ;;  %v8824_v4 = vld [vmem:[%s10360_s4 + $0xb0] sm:$0xff] }
 0x5fd   : > { %10512 = vst [vmem:[#allocation56_spill] sm:$0xff] %v8806_v42  ;;  %10513 = vst [vmem:[#allocation57_spill] sm:$0xff] %v8810_v13  ;;  %6744 = vmatprep.subr.mxu0 %v8824_v4  ;;  %v10538_v13 = vld [vmem:[#allocation13_spill] sm:$0xff] }
 0x5fe   : > { %6647 = vmatprep.mubr.msk.f32.mxu0 %vm1552_vm2, %v2533_v25  ;;  %10516 = vst [vmem:[#allocation60_spill] sm:$0xff] %v8824_v4  ;;  %6745 = vmatpush3.msra.mxu0 %v8824_v4 }
 0x5ff   : > { %6648 = vmatmul.mubr.msk.f32.gmra.mxu0 %vm1552_vm2, %v2534_v3  ;;  %6746 = vmatprep.subr.mxu0 %v8832_v5 }
 0x600   : > { %4601 = vperm.xlu0 %6894, %v8328_v36   ;;  %v8815_v30 = vpop.permute.xlu0 %3018  ;;  %v8818_v7 = vpop.permute.xlu1 %3003  ;;  %6747 = vmatpush3.msra.mxu0 %v8832_v5 }
 0x601   : > { %10514 = vst [vmem:[#allocation58_spill] sm:$0xff] %v8815_v30  ;;  %10515 = vst [vmem:[#allocation59_spill] sm:$0xff] %v8818_v7  ;;  %4566 = vperm.xlu1 %6893, %v8256_v19  }
 0x604   : > { %4611 = vperm.xlu0 %6894, %v8347_v33   ;;  %v8835_v36 = vpop.permute.xlu0 %3028  ;;  %v8839_v33 = vpop.permute.xlu1 %3013 }
 0x605   : > { %10518 = vst [vmem:[#allocation62_spill] sm:$0xff] %v8835_v36  ;;  %10519 = vst [vmem:[#allocation63_spill] sm:$0xff] %v8839_v33  ;;  %4576 = vperm.xlu1 %6893, %v8270_v0  }
 0x608   : > { %4621 = vperm.xlu0 %6894, %v8364_v63   ;;  %v8845_v63 = vld [vmem:[%s10360_s4 + $0xa0] sm:$0xff]  ;;  %v8860_v43 = vpop.permute.xlu1 %3023 }
 0x609   : > { %10520 = vst [vmem:[#allocation64_spill] sm:$0xff] %v8845_v63  ;;  %6748 = vmatprep.subr.mxu0 %v8845_v63  ;;  %10523 = vst [vmem:[#allocation67_spill] sm:$0xff] %v8860_v43  ;;  %4586 = vperm.xlu1 %6893, %v8284_v57  }
 0x60a   : > { %6749 = vmatpush3.msra.mxu0 %v8845_v63  ;;  %v7053_v63 = vld [vmem:[#allocation2 + $0xb0] sm:$0xff] }
 0x60b   : > { %6750 = vmatprep.subr.mxu0 %v8852_v60 }
 0x60c   : > { %4631 = vperm.xlu0 %6894, %v8384_v34   ;;  %6751 = vmatpush3.msra.mxu0 %v8852_v60  ;;  %v8858_v34 = vpop.permute.xlu0 %3038  ;;  %v8869_v8 = vpop.permute.xlu1 %3033 }
 0x60d   : > { %10522 = vst [vmem:[#allocation66_spill] sm:$0xff] %v8858_v34  ;;  %10524 = vst [vmem:[#allocation68_spill] sm:$0xff] %v8869_v8  ;;  %4596 = vperm.xlu1 %6893, %v8293_v1   ;;  %v10536_v34 = vld [vmem:[#allocation12_spill] sm:$0xff] }
 0x610   : > { %4641 = vperm.xlu0 %6894, %v8401_v21   ;;  %v8865_v25 = vpop.permute.xlu0 %3308  ;;  %v8877_v3 = vpop.permute.xlu1 %3111 }
 0x611   : > { %4606 = vperm.xlu1 %6893, %v8307_v52  }
 0x614   : > { %4651 = vperm.xlu0 %6894, %v8415_v35   ;;  %v8874_v21 = vpop.permute.xlu0 %3320 }
 0x615   : > { %4616 = vperm.xlu1 %6893, %v8321_v44  }
 0x618   : > { %4661 = vperm.xlu0 %6894, %v8429_v24   ;;  %v8881_v35 = vpop.permute.xlu0 %3328  ;;  %v8884_v24 = vpop.permute.xlu1 %3119 }
 0x619   : > { %4626 = vperm.xlu1 %6893, %v8335_v32  }
 0x61c   : > { %4671 = vperm.xlu0 %6894, %v8443_v22   ;;  %v1712_v22 = vld [vmem:[%s10360_s4 + $0x80] sm:$0xff]  ;;  %v8903_v2 = vpop.permute.xlu1 %3123 }
 0x61d   : > { %4636 = vperm.xlu1 %6893, %v8354_v38  }
 0x620   : > { %4681 = vperm.xlu0 %6894, %v8457_v14   ;;  %v1713_v14 = vld [vmem:[%s10360_s4 + $0x88] sm:$0xff]  ;;  %v8915_v8 = vpop.permute.xlu1 %3131 }
 0x621   : > { %6688 = vmatprep.subr.mxu1 %v1713_v14 }
 0x622   : > { %6689 = vmatpush3.msra.mxu1 %v1713_v14 }
 0x623   : > { %6690 = vmatprep.subr.mxu1 %v1712_v22 }
 0x624   : > { %4691 = vperm.xlu0 %6894, %v8465_v23   ;;  %v8897_v23 = vpop.permute.xlu0 %3336  ;;  %6691 = vmatpush3.msra.mxu1 %v1712_v22  ;;  %v8923_v22 = vpop.permute.xlu1 %3139 }
 0x625   : > { %10525 = vst [vmem:[#allocation69_spill] sm:$0xff] %v8897_v23  ;;  %6692 = vmatprep.subr.mxu1 %v1711_v46 }
 0x626   : > { %6693 = vmatpush3.msra.mxu1 %v1711_v46 }
 0x628   : > { %6895 = vset.pattern.permute.xlu0 %v10482_v41  ;;  %v8913_v14 = vpop.permute.xlu0 %3344 }
 0x629   : > { %4769 = vperm.xlu0 %6895, %v8234_v59   ;;  %v1710_v59 = vld [vmem:[%s10360_s4 + $0x70] sm:$0xff]  ;;  %10526 = vst [vmem:[#allocation70_spill] sm:$0xff] %v8913_v14 }
 0x62a   : > { %6694 = vmatprep.subr.mxu1 %v1710_v59  ;;  %v7046_v14 = vld [vmem:[#allocation2 + $0x90] sm:$0xff] }
 0x62b   : > { %6695 = vmatpush3.msra.mxu1 %v1710_v59  ;;  %v8929_v59 = vpop.permute.xlu1 %3147 }
 0x62c   : > { %10529 = vst [vmem:[#allocation73_spill] sm:$0xff] %v8929_v59 }
 0x62d   : > { %4781 = vperm.xlu0 %6895, %v8243_v53   ;;  %v8920_v53 = vpop.permute.xlu0 %3352 }
 0x62e   : > { %10527 = vst [vmem:[#allocation71_spill] sm:$0xff] %v8920_v53 }
 0x631   : > { %4789 = vperm.xlu0 %6895, %v8256_v19   ;;  %v8927_v46 = vpop.permute.xlu0 %3360 }
 0x632   : > { %10528 = vst [vmem:[#allocation72_spill] sm:$0xff] %v8927_v46 }
 0x635   : > { %4797 = vperm.xlu0 %6895, %v8270_v0   ;;  %v8934_v19 = vpop.permute.xlu0 %3368  ;;  %v8937_v0 = vpop.permute.xlu1 %3155 }
 0x636   : > { %10530 = vst [vmem:[#allocation74_spill] sm:$0xff] %v8934_v19  ;;  %10531 = vst [vmem:[#allocation75_spill] sm:$0xff] %v8937_v0 }
 0x639   : > { %4805 = vperm.xlu0 %6895, %v8284_v57   ;;  %v8941_v57 = vpop.permute.xlu0 %3376  ;;  %v8943_v43 = vpop.permute.xlu1 %3163 }
 0x63a   : > { %10532 = vst [vmem:[#allocation76_spill] sm:$0xff] %v8941_v57  ;;  %10533 = vst [vmem:[#allocation77_spill] sm:$0xff] %v8943_v43 }
 0x63d   : > { %4813 = vperm.xlu0 %6895, %v8293_v1   ;;  %v10534_v1 = vld [vmem:[#allocation11_spill] sm:$0xff]  ;;  %v8951_v36 = vpop.permute.xlu1 %3171 }
 0x63e   : > { %4646 = vperm.xlu1 %6893, %v10534_v1   ;;  %10537 = vst [vmem:[#allocation12_spill] sm:$0xff] %v8951_v36 }
 0x641   : > { %4821 = vperm.xlu0 %6895, %v8307_v52   ;;  %v8948_v52 = vpop.permute.xlu0 %3384  ;;  %v8963_v62 = vpop.permute.xlu1 %3179 }
 0x642   : > { %10535 = vst [vmem:[#allocation11_spill] sm:$0xff] %v8948_v52  ;;  %4656 = vperm.xlu1 %6893, %v10536_v34   ;;  %10540 = vst [vmem:[#allocation78_spill] sm:$0xff] %v8963_v62  ;;  %v7038_v62 = vld [vmem:[#allocation2 + $0x50] sm:$0xff] }
 0x645   : > { %4829 = vperm.xlu0 %6895, %v8321_v44   ;;  %v8961_v52 = vpop.permute.xlu0 %3396  ;;  %v8979_v12 = vpop.permute.xlu1 %3187 }
 0x646   : > { %4666 = vperm.xlu1 %6893, %v10538_v13   ;;  %10539 = vst [vmem:[#allocation13_spill] sm:$0xff] %v8961_v52 }
 0x649   : > { %4837 = vperm.xlu0 %6895, %v8335_v32   ;;  %v7035_v32 = vld [vmem:[#allocation2 + $0x48] sm:$0xff] }
 0x64a   : > { %4676 = vperm.xlu1 %6893, %v10541_v37  }
 0x64d   : > { %4845 = vperm.xlu0 %6895, %v8354_v38   ;;  %v7036_v38 = vld [vmem:[#allocation2 + $0x40] sm:$0xff] }
 0x651   : > { %4853 = vperm.xlu0 %6895, %v10534_v1  }
 0x653   : > { %v6596_v33 = vpop.f32.mrf.mxu1 }
 0x654   : > { %v2318_v44 = vadd.f32 %v6596_v33, %v8713_v48 }
 0x655   : > { %v2312_v7 = vpop.f32.mrf.mxu1  ;;  %4861 = vperm.xlu0 %6895, %v10536_v34   ;;  %v10543_v34 = vld [vmem:[#allocation15_spill] sm:$0xff] }
 0x656   : > { %v2313_v30 = vadd.f32 %v2312_v7, %v8713_v48  ;;  %v8957_v42 = vadd.f32 %v7035_v32, %v2318_v44  ;;  %v8974_v32 = vpop.permute.xlu0 %3412  ;;  %4686 = vperm.xlu1 %6893, %v10543_v34   ;;  %10544 = vst [vmem:[#allocation15_spill] sm:$0xff] %v8979_v12 }
 0x657   : > { %10542 = vst [vmem:[#allocation14_spill] sm:$0xff] %v8974_v32 }
 0x658   : > { %v8959_v57 = vadd.f32 %v7036_v38, %v2313_v30  ;;  %v2536_v7 = vmax.f32 %v8957_v42, 0.0  ;;  %v7037_v38 = vld [vmem:[#allocation2 + $0x58] sm:$0xff] }
 0x659   : > { %4869 = vperm.xlu0 %6895, %v10538_v13  }
 0x65a   : > { %v2535_v33 = vmax.f32 %v8959_v57, 0.0 }
 0x65b   : > { %v6599_v1 = vpop.f32.mrf.mxu1 }
 0x65c   : > { %v2328_v55 = vadd.f32 %v6599_v1, %v8713_v48  ;;  %6650 = vmatprep.mubr.msk.f32.mxu0 %vm1552_vm2, %v2535_v33 }
 0x65d   : > { %v2322_v44 = vpop.f32.mrf.mxu1  ;;  %6651 = vmatmul.mubr.msk.f32.gmra.mxu0 %vm1552_vm2, %v2536_v7  ;;  %4877 = vperm.xlu0 %6895, %v10541_v37   ;;  %v8997_v37 = vpop.permute.xlu1 %3312 }
 0x65e   : > { %v2323_v30 = vadd.f32 %v2322_v44, %v8713_v48  ;;  %v8977_v52 = vadd.f32 %v7037_v38, %v2328_v55  ;;  %v10545_v44 = vld [vmem:[#allocation16_spill] sm:$0xff] }
 0x65f   : > { %4696 = vperm.xlu1 %6893, %v10545_v44   ;;  %v7039_v38 = vld [vmem:[#allocation2 + $0x68] sm:$0xff] }
 0x660   : > { %v8981_v1 = vadd.f32 %v7038_v62, %v2323_v30  ;;  %v6602_v33 = vpop.f32.mrf.mxu1  ;;  %v2538_v32 = vmax.f32 %v8977_v52, 0.0  ;;  %v8992_v62 = vpop.permute.xlu0 %3115  ;;  %v7040_v30 = vld [vmem:[#allocation2 + $0x60] sm:$0xff] }
 0x661   : > { %v2338_v19 = vadd.f32 %v6602_v33, %v8713_v48  ;;  %4885 = vperm.xlu0 %6895, %v10543_v34  }
 0x662   : > { %v2537_v13 = vmax.f32 %v8981_v1, 0.0  ;;  %v2332_v7 = vpop.f32.mrf.mxu1 }
 0x663   : > { %v2333_v55 = vadd.f32 %v2332_v7, %v8713_v48  ;;  %v8989_v36 = vadd.f32 %v7039_v38, %v2338_v19  ;;  %6896 = vset.pattern.permute.xlu1 %v10482_v41 }
 0x664   : > { %6653 = vmatprep.mubr.msk.f32.mxu0 %vm1552_vm2, %v2537_v13  ;;  %4773 = vperm.xlu1 %6896, %v8249_v45   ;;  %v9004_v38 = vpop.permute.xlu0 %3127 }
 0x665   : > { %v8994_v33 = vadd.f32 %v7040_v30, %v2333_v55  ;;  %6654 = vmatmul.mubr.msk.f32.gmra.mxu0 %vm1552_vm2, %v2538_v32  ;;  %v2540_v19 = vmax.f32 %v8989_v36, 0.0  ;;  %v9008_v32 = vpop.permute.xlu1 %3316  ;;  %4893 = vperm.xlu0 %6895, %v10545_v44   ;;  %v7041_v30 = vld [vmem:[#allocation2 + $0x78] sm:$0xff] }
 0x667   : > { %v2539_v7 = vmax.f32 %v8994_v33, 0.0 }
 0x668   : > { %v6605_v13 = vpop.f32.mrf.mxu1  ;;  %4777 = vperm.xlu1 %6896, %v8263_v47   ;;  %v9016_v43 = vpop.permute.xlu0 %3135 }
 0x669   : > { %v2348_v55 = vadd.f32 %v6605_v13, %v8713_v48  ;;  %6656 = vmatprep.mubr.msk.f32.mxu0 %vm1552_vm2, %v2539_v7  ;;  %v7042_v13 = vld [vmem:[#allocation2 + $0x70] sm:$0xff]  ;;  %v9021_v0 = vpop.permute.xlu1 %3324  ;;  %6898 = vset.pattern.permute.xlu0 %v10485_v9 }
 0x66a   : > { %v2342_v34 = vpop.f32.mrf.mxu1  ;;  %6657 = vmatmul.mubr.msk.f32.gmra.mxu0 %vm1552_vm2, %v2540_v19  ;;  %4970 = vperm.xlu0 %6898, %v8249_v45  }
 0x66b   : > { %v2343_v41 = vadd.f32 %v2342_v34, %v8713_v48  ;;  %v9014_v12 = vadd.f32 %v7041_v30, %v2348_v55  ;;  %v7043_v34 = vld [vmem:[#allocation2 + $0x88] sm:$0xff] }
 0x66c   : > { %v6608_v46 = vpop.f32.mrf.mxu1  ;;  %4785 = vperm.xlu1 %6896, %v8277_v29  }
 0x66d   : > { %v9018_v53 = vadd.f32 %v7042_v13, %v2343_v41  ;;  %v2358_v7 = vadd.f32 %v6608_v46, %v8713_v48  ;;  %v2542_v55 = vmax.f32 %v9014_v12, 0.0  ;;  %v9031_v46 = vpop.permute.xlu0 %3143  ;;  %v7044_v13 = vld [vmem:[#allocation2 + $0x80] sm:$0xff]  ;;  %v9037_v45 = vpop.permute.xlu1 %3332 }
 0x66e   : > { %v2352_v44 = vpop.f32.mrf.mxu1  ;;  %10546 = vst [vmem:[#allocation16_spill] sm:$0xff] %v9031_v46  ;;  %10547 = vst [vmem:[#allocation79_spill] sm:$0xff] %v9037_v45  ;;  %4982 = vperm.xlu0 %6898, %v8277_v29  }
 0x66f   : > { %v2541_v47 = vmax.f32 %v9018_v53, 0.0  ;;  %v2353_v19 = vadd.f32 %v2352_v44, %v8713_v48  ;;  %v9029_v41 = vadd.f32 %v7043_v34, %v2358_v7 }
 0x670   : > { %v6611_v30 = vpop.f32.mrf.mxu1  ;;  %4793 = vperm.xlu1 %6896, %v8287_v61  }
 0x671   : > { %v9033_v11 = vadd.f32 %v7044_v13, %v2353_v19  ;;  %v2368_v31 = vadd.f32 %v6611_v30, %v8713_v48  ;;  %6659 = vmatprep.mubr.msk.f32.mxu0 %vm1552_vm2, %v2541_v47  ;;  %v2544_v19 = vmax.f32 %v9029_v41, 0.0  ;;  %v7045_v30 = vld [vmem:[#allocation2 + $0x98] sm:$0xff]  ;;  %v9051_v29 = vpop.permute.xlu1 %3340  ;;  %v9054_v61 = vpop.permute.xlu0 %3151 }
 0x672   : > { %v2362_v44 = vpop.f32.mrf.mxu1  ;;  %6660 = vmatmul.mubr.msk.f32.gmra.mxu0 %vm1552_vm2, %v2542_v55  ;;  %10548 = vst [vmem:[#allocation80_spill] sm:$0xff] %v9051_v29  ;;  %10549 = vst [vmem:[#allocation81_spill] sm:$0xff] %v9054_v61  ;;  %v7050_v29 = vld [vmem:[#allocation2 + $0xa0] sm:$0xff] }
 0x673   : > { %v2543_v7 = vmax.f32 %v9033_v11, 0.0  ;;  %v2363_v34 = vadd.f32 %v2362_v44, %v8713_v48  ;;  %v9045_v13 = vadd.f32 %v7045_v30, %v2368_v31  ;;  %v7047_v44 = vld [vmem:[%s8231_s22 + $0x30] sm:$0xff] }
 0x674   : > { %v6614_v47 = vpop.f32.mrf.mxu1  ;;  %4990 = vperm.xlu0 %6898, %v7047_v44   ;;  %4801 = vperm.xlu1 %6896, %v7048_v18  }
 0x675   : > { %v9047_v46 = vadd.f32 %v7046_v14, %v2363_v34  ;;  %v2378_v55 = vadd.f32 %v6614_v47, %v8713_v48  ;;  %6662 = vmatprep.mubr.msk.f32.mxu0 %vm1552_vm2, %v2543_v7  ;;  %v2546_v14 = vmax.f32 %v9045_v13, 0.0  ;;  %v7049_v34 = vld [vmem:[#allocation2 + $0xa8] sm:$0xff]  ;;  %v9070_v60 = vpop.permute.xlu1 %3348 }
 0x676   : > { %v2372_v59 = vpop.f32.mrf.mxu1  ;;  %6663 = vmatmul.mubr.msk.f32.gmra.mxu0 %vm1552_vm2, %v2544_v19  ;;  %10550 = vst [vmem:[#allocation82_spill] sm:$0xff] %v9070_v60 }
 0x677   : > { %v2545_v31 = vmax.f32 %v9047_v46, 0.0  ;;  %v2373_v30 = vadd.f32 %v2372_v59, %v8713_v48  ;;  %v9061_v7 = vadd.f32 %v7049_v34, %v2378_v55  ;;  %v7051_v55 = vld [vmem:[%s8231_s22 + $0x50] sm:$0xff] }
 0x678   : > { %v6617_v47 = vpop.f32.mrf.mxu1  ;;  %4998 = vperm.xlu0 %6898, %v7048_v18   ;;  %4809 = vperm.xlu1 %6896, %v7051_v55  }
 0x679   : > { %v9063_v56 = vadd.f32 %v7050_v29, %v2373_v30  ;;  %v2388_v19 = vadd.f32 %v6617_v47, %v8713_v48  ;;  %6665 = vmatprep.mubr.msk.f32.mxu0 %vm1552_vm2, %v2545_v31  ;;  %v2548_v29 = vmax.f32 %v9061_v7, 0.0  ;;  %v7052_v30 = vld [vmem:[#allocation2 + $0xb8] sm:$0xff]  ;;  %v9076_v31 = vpop.permute.xlu0 %3159 }
 0x67a   : > { %v2382_v44 = vpop.f32.mrf.mxu1  ;;  %6666 = vmatmul.mubr.msk.f32.gmra.mxu0 %vm1552_vm2, %v2546_v14  ;;  %10551 = vst [vmem:[#allocation83_spill] sm:$0xff] %v9076_v31  ;;  %v7055_v31 = vld [vmem:[#allocation2 + $0xc8] sm:$0xff] }
 0x67b   : > { %v2547_v59 = vmax.f32 %v9063_v56, 0.0  ;;  %v2383_v61 = vadd.f32 %v2382_v44, %v8713_v48  ;;  %v9074_v34 = vadd.f32 %v7052_v30, %v2388_v19  ;;  %v7054_v19 = vld [vmem:[%s8231_s22 + $0x60] sm:$0xff] }
 0x67c   : > { %v6620_v47 = vpop.f32.mrf.mxu1  ;;  %5006 = vperm.xlu0 %6898, %v7051_v55   ;;  %4817 = vperm.xlu1 %6896, %v7054_v19   ;;  %v9093_v55 = vpop.permute.xlu1 %3356 }
 0x67d   : > { %v9078_v14 = vadd.f32 %v7053_v63, %v2383_v61  ;;  %v2398_v18 = vadd.f32 %v6620_v47, %v8713_v48  ;;  %6668 = vmatprep.mubr.msk.f32.mxu0 %vm1552_vm2, %v2547_v59  ;;  %v2550_v30 = vmax.f32 %v9074_v34, 0.0  ;;  %v7056_v47 = vld [vmem:[#allocation2 + $0xc0] sm:$0xff]  ;;  %10554 = vst [vmem:[#allocation86_spill] sm:$0xff] %v9093_v55  ;;  %v7059_v55 = vld [vmem:[#allocation2 + $0xd0] sm:$0xff] }
 0x67e   : > { %v2392_v44 = vpop.f32.mrf.mxu1  ;;  %6669 = vmatmul.mubr.msk.f32.gmra.mxu0 %vm1552_vm2, %v2548_v29 }
 0x67f   : > { %v2549_v60 = vmax.f32 %v9078_v14, 0.0  ;;  %v2393_v5 = vadd.f32 %v2392_v44, %v8713_v48  ;;  %v9087_v63 = vadd.f32 %v7055_v31, %v2398_v18  ;;  %v9096_v44 = vpop.permute.xlu0 %3167  ;;  %v7057_v18 = vld [vmem:[%s8231_s22 + $0x70] sm:$0xff] }
 0x680   : > { %v6623_v61 = vpop.f32.mrf.mxu1  ;;  %10555 = vst [vmem:[#allocation87_spill] sm:$0xff] %v9096_v44  ;;  %5014 = vperm.xlu0 %6898, %v7054_v19   ;;  %4825 = vperm.xlu1 %6896, %v7057_v18  }
 0x681   : > { %10552 = vst [vmem:[#allocation84_spill] sm:$0xff] %v9087_v63  ;;  %v9089_v4 = vadd.f32 %v7056_v47, %v2393_v5  ;;  %v2408_v59 = vadd.f32 %v6623_v61, %v8713_v48  ;;  %6671 = vmatprep.mubr.msk.f32.mxu0 %vm1552_vm2, %v2549_v60  ;;  %v2552_v5 = vmax.f32 %v9087_v63, 0.0  ;;  %v7058_v61 = vld [vmem:[#allocation2 + $0xd8] sm:$0xff]  ;;  %v9111_v63 = vpop.permute.xlu1 %3364 }
 0x682   : > { %v2402_v29 = vpop.f32.mrf.mxu1  ;;  %6672 = vmatmul.mubr.msk.f32.gmra.mxu0 %vm1552_vm2, %v2550_v30  ;;  %10557 = vst [vmem:[#allocation89_spill] sm:$0xff] %v9111_v63 }
 0x683   : > { %10553 = vst [vmem:[#allocation85_spill] sm:$0xff] %v9089_v4  ;;  %v2551_v45 = vmax.f32 %v9089_v4, 0.0  ;;  %v2403_v31 = vadd.f32 %v2402_v29, %v8713_v48  ;;  %v9102_v47 = vadd.f32 %v7058_v61, %v2408_v59  ;;  %v7060_v59 = vld [vmem:[%s8231_s22 + $0x80] sm:$0xff] }
 0x684   : > { %v6626_v60 = vpop.f32.mrf.mxu1  ;;  %5022 = vperm.xlu0 %6898, %v7057_v18   ;;  %4833 = vperm.xlu1 %6896, %v7060_v59   ;;  %v7062_v4 = vld [vmem:[#allocation2 + $0xe0] sm:$0xff] }
 0x685   : > { %10556 = vst [vmem:[#allocation88_spill] sm:$0xff] %v9102_v47  ;;  %v9104_v23 = vadd.f32 %v7059_v55, %v2403_v31  ;;  %v2418_v30 = vadd.f32 %v6626_v60, %v8713_v48  ;;  %6674 = vmatprep.mubr.msk.f32.mxu0 %vm1552_vm2, %v2551_v45  ;;  %v2554_v55 = vmax.f32 %v9102_v47, 0.0  ;;  %v7061_v31 = vld [vmem:[#allocation2 + $0xe8] sm:$0xff]  ;;  %v9117_v45 = vpop.permute.xlu0 %3175  ;;  %v7064_v47 = vld [vmem:[#allocation2 + $0xf8] sm:$0xff] }
 0x686   : > { %v2412_v19 = vpop.f32.mrf.mxu1  ;;  %6675 = vmatmul.mubr.msk.f32.gmra.mxu0 %vm1552_vm2, %v2552_v5  ;;  %10558 = vst [vmem:[#allocation90_spill] sm:$0xff] %v9117_v45 }
 0x687   : > { %v2553_v29 = vmax.f32 %v9104_v23, 0.0  ;;  %v2413_v44 = vadd.f32 %v2412_v19, %v8713_v48  ;;  %v9115_v61 = vadd.f32 %v7061_v31, %v2418_v30  ;;  %v7063_v31 = vld [vmem:[%s8231_s22 + $0x90] sm:$0xff] }
 0x688   : > { %v6629_v60 = vpop.f32.mrf.mxu1  ;;  %5030 = vperm.xlu0 %6898, %v7060_v59   ;;  %4841 = vperm.xlu1 %6896, %v7063_v31  }
 0x689   : > { %v9119_v5 = vadd.f32 %v7062_v4, %v2413_v44  ;;  %v2428_v18 = vadd.f32 %v6629_v60, %v8713_v48  ;;  %6677 = vmatprep.mubr.msk.f32.mxu0 %vm1552_vm2, %v2553_v29  ;;  %v2556_v45 = vmax.f32 %v9115_v61, 0.0  ;;  %v7065_v44 = vld [vmem:[#allocation2 + $0xf0] sm:$0xff]  ;;  %v9133_v29 = vpop.permute.xlu1 %3372  ;;  %v9136_v59 = vpop.permute.xlu0 %3183 }
 0x68a   : > { %v2422_v19 = vpop.f32.mrf.mxu1  ;;  %6678 = vmatmul.mubr.msk.f32.gmra.mxu0 %vm1552_vm2, %v2554_v55  ;;  %v7066_v55 = vld [vmem:[%s8231_s22 + $0xa0] sm:$0xff] }
 0x68b   : > { %v2555_v63 = vmax.f32 %v9119_v5, 0.0  ;;  %v2423_v30 = vadd.f32 %v2422_v19, %v8713_v48  ;;  %v9128_v4 = vadd.f32 %v7064_v47, %v2428_v18 }
 0x68c   : > { %5038 = vperm.xlu0 %6898, %v7063_v31   ;;  %4849 = vperm.xlu1 %6896, %v7066_v55  }
 0x68d   : > { %v9130_v60 = vadd.f32 %v7065_v44, %v2423_v30  ;;  %6680 = vmatprep.mubr.msk.f32.mxu0 %vm1552_vm2, %v2555_v63  ;;  %v2558_v47 = vmax.f32 %v9128_v4, 0.0  ;;  %v9145_v63 = vpop.permute.xlu1 %3380  ;;  %v9148_v18 = vpop.permute.xlu0 %3195  ;;  %v7068_v30 = vld [vmem:[%s8231_s22 + $0xc0] sm:$0xff]  ;;  %v7071_v44 = vld [vmem:[%s8231_s22 + $0xf0] sm:$0xff] }
 0x68e   : > { %6681 = vmatmul.mubr.msk.f32.gmra.mxu0 %vm1552_vm2, %v2556_v45  ;;  %v7067_v45 = vld [vmem:[%s8231_s22 + $0xb0] sm:$0xff] }
 0x68f   : > { %v2557_v48 = vmax.f32 %v9130_v60, 0.0 }
 0x690   : > { %5046 = vperm.xlu0 %6898, %v7066_v55   ;;  %4857 = vperm.xlu1 %6896, %v7067_v45  }
 0x691   : > { %6683 = vmatprep.mubr.msk.f32.mxu0 %vm1552_vm2, %v2557_v48  ;;  %v9154_v19 = vpop.permute.xlu1 %3191 }
 0x692   : > { %6684 = vmatmul.mubr.msk.f32.gmra.mxu0 %vm1552_vm2, %v2558_v47 }
 0x693   : > { %6752 = vmatprep.mubr.msk.f32.mxu0 %vm1552_vm2, %v8728_v40  ;;  %v9159_v40 = vpop.permute.xlu0 %3199 }
 0x694   : > { %5054 = vperm.xlu0 %6898, %v7067_v45   ;;  %4865 = vperm.xlu1 %6896, %v7068_v30  }
 0x695   : > { %v9164_v31 = vpop.permute.xlu1 %3388 }
 0x696   : > { %6753 = vmatmul.mubr.msk.f32.vlgmr.msra.gmra.mxu0 %vm1552_vm2, %v8724_v50  ;;  %v7069_v50 = vld [vmem:[%s8231_s22 + $0xd0] sm:$0xff] }
 0x697   : > { %6755 = vmatprep.mubr.msk.f32.mxu0 %vm1552_vm2, %v8747_v20  ;;  %v7070_v20 = vld [vmem:[%s8231_s22 + $0xe0] sm:$0xff] }
 0x698   : > { %5062 = vperm.xlu0 %6898, %v7068_v30   ;;  %4873 = vperm.xlu1 %6896, %v7069_v50  }
 0x69a   : > { %6756 = vmatmul.mubr.msk.f32.gmra.mxu0 %vm1552_vm2, %v8745_v51  ;;  %v9171_v51 = vpop.permute.xlu0 %3211 }
 0x69b   : > { %6758 = vmatprep.mubr.msk.f32.mxu0 %vm1552_vm2, %v8768_v49  ;;  %v9177_v49 = vpop.permute.xlu1 %3392 }
 0x69c   : > { %5070 = vperm.xlu0 %6898, %v7069_v50   ;;  %4881 = vperm.xlu1 %6896, %v7070_v20   ;;  %v7072_v50 = vld [vmem:[%s8231_s22] sm:$0xff] }
 0x69e   : > { %6759 = vmatmul.mubr.msk.f32.gmra.mxu0 %vm1552_vm2, %v8765_v17  ;;  %v9183_v17 = vld [vmem:[%s10360_s4 + $0x68] ss:$0 sm:$0xff] }
 0x69f   : > { %6761 = vmatprep.mubr.msk.f32.mxu0 %vm1552_vm2, %v8791_v58  ;;  %v9188_v58 = vld [vmem:[%s10360_s4 + $0x69] ss:$0 sm:$0xff]  ;;  %v9201_v55 = vpop.permute.xlu1 %3203  ;;  %v3045_v47 = vmul.f32 %v9183_v17, %v8637_v15  ;;  %v3046_v45 = vmul.f32 %v9183_v17, %v8670_v26 }
 0x6a0   : > { %5078 = vperm.xlu0 %6898, %v7070_v20   ;;  %4889 = vperm.xlu1 %6896, %v7071_v44   ;;  %v3242_v15 = vmul.f32 %v9188_v58, %v8877_v3 }
 0x6a2   : > { %6762 = vmatmul.mubr.msk.f32.gmra.mxu0 %vm1552_vm2, %v8787_v27  ;;  %v9193_v27 = vld [vmem:[%s10361_s5 + $0x7] ss:$0 sm:$0xff] }
 0x6a3   : > { %6764 = vmatprep.mubr.msk.f32.mxu0 %vm1552_vm2, %v8959_v57  ;;  %v9197_v57 = vpop.permute.xlu0 %3215  ;;  %v9229_v3 = vpop.permute.xlu1 %3400 }
 0x6a4   : > { %10559 = vst [vmem:[#allocation91_spill] sm:$0xff] %v9197_v57  ;;  %5086 = vperm.xlu0 %6898, %v7071_v44   ;;  %6897 = vset.pattern.permute.xlu1 %v10485_v9  ;;  %v7073_v57 = vld [vmem:[%s8231_s22 + $0x10] sm:$0xff] }
 0x6a5   : > { %4966 = vperm.xlu1 %6897, %v7072_v50  }
 0x6a6   : > { %6765 = vmatmul.mubr.msk.f32.gmra.mxu0 %vm1552_vm2, %v8957_v42  ;;  %v9211_v42 = vld [vmem:[%s10360_s4 + $0x6a] ss:$0 sm:$0xff] }
 0x6a7   : > { %v6640_v48 = vpop.f32.mrf.mxu0  ;;  %6767 = vmatprep.mubr.msk.f32.mxu0 %vm1552_vm2, %v8981_v1  ;;  %v3243_v1 = vmul.f32 %v9188_v58, %v8992_v62  ;;  %v3440_v44 = vmul.f32 %v9211_v42, %v8997_v37  ;;  %v3439_v62 = vmul.f32 %v9211_v42, %v8865_v25  ;;  %v3245_v25 = vmul.f32 %v9188_v58, %v8903_v2 }
 0x6a8   : > { %v2727_v30 = vadd.f32 %v6640_v48, %v9193_v27  ;;  %v3442_v2 = vmul.f32 %v9211_v42, %v8874_v21 }
 0x6a9   : > { %v2721_v9 = vpop.f32.mrf.mxu0  ;;  %4974 = vperm.xlu1 %6897, %v7073_v57  }
 0x6aa   : > { %v3078_v20 = vadd.f32 %v3046_v45, %v2727_v30  ;;  %v2722_v26 = vadd.f32 %v2721_v9, %v9193_v27  ;;  %6768 = vmatmul.mubr.msk.f32.gmra.mxu0 %vm1552_vm2, %v8977_v52 }
 0x6ab   : > { %6770 = vmatprep.mubr.msk.f32.mxu0 %vm1552_vm2, %v8994_v33  ;;  %v3048_v33 = vmul.f32 %v9183_v17, %v8661_v16 }
 0x6ac   : > { %v3275_v48 = vadd.f32 %v3243_v1, %v3078_v20  ;;  %v3077_v50 = vadd.f32 %v3045_v47, %v2722_v26  ;;  %v7074_v47 = vld [vmem:[%s8231_s22 + $0x18] sm:$0xff]  ;;  %v3047_v1 = vmul.f32 %v9183_v17, %v8688_v28  ;;  %v9252_v28 = vpop.permute.xlu1 %3207 }
 0x6ad   : > { %4978 = vperm.xlu1 %6897, %v7074_v47  }
 0x6ae   : > { %v3274_v45 = vadd.f32 %v3242_v15, %v3077_v50  ;;  %6771 = vmatmul.mubr.msk.f32.gmra.mxu0 %vm1552_vm2, %v8989_v36  ;;  %v3472_v52 = vadd.f32 %v3440_v44, %v3275_v48  ;;  %v3050_v48 = vmul.f32 %v9183_v17, %v8685_v39  ;;  %v3246_v39 = vmul.f32 %v9188_v58, %v9004_v38 }
 0x6af   : > { %v6643_v30 = vpop.f32.mrf.mxu0  ;;  %6773 = vmatprep.mubr.msk.f32.mxu0 %vm1552_vm2, %v9018_v53  ;;  %v3244_v53 = vmul.f32 %v9188_v58, %v8884_v24  ;;  %v3441_v24 = vmul.f32 %v9211_v42, %v9008_v32  ;;  %v3247_v32 = vmul.f32 %v9188_v58, %v8915_v8  ;;  %v3444_v8 = vmul.f32 %v9211_v42, %v8881_v35 }
 0x6b0   : > { %v3471_v37 = vadd.f32 %v3439_v62, %v3274_v45  ;;  %v2737_v57 = vadd.f32 %v6643_v30, %v9193_v27  ;;  %v3504_v20 = vmax.f32 %v3472_v52, 0.0  ;;  %v3049_v52 = vmul.f32 %v9183_v17, %v8695_v6 }
 0x6b1   : > { %v2731_v36 = vpop.f32.mrf.mxu0 }
 0x6b2   : > { %v3503_v9 = vmax.f32 %v3471_v37, 0.0  ;;  %v3080_v15 = vadd.f32 %v3048_v33, %v2737_v57  ;;  %v2732_v16 = vadd.f32 %v2731_v36, %v9193_v27  ;;  %6774 = vmatmul.mubr.msk.f32.gmra.mxu0 %vm1552_vm2, %v9014_v12  ;;  %v7075_v12 = vld [vmem:[%s8231_s22 + $0x28] sm:$0xff]  ;;  %v9270_v33 = vpop.permute.xlu1 %3404 }
 0x6b3   : > { %6776 = vmatprep.mubr.msk.f32.mxu0 %vm1552_vm2, %v9033_v11  ;;  %4986 = vperm.xlu1 %6897, %v7075_v12   ;;  %v10561_v12 = vld [vmem:[#allocation85_spill] sm:$0xff] }
 0x6b4   : > { %v3277_v26 = vadd.f32 %v3245_v25, %v3080_v15  ;;  %v3079_v44 = vadd.f32 %v3047_v1, %v2732_v16  ;;  %6696 = vmatprep.mubr.msk.f32.mxu1 %vm3535_vm6, %v3503_v9  ;;  %v3443_v1 = vmul.f32 %v9211_v42, %v9021_v0  ;;  %v3249_v0 = vmul.f32 %v9188_v58, %v8923_v22  ;;  %v10560_v22 = vld [vmem:[#allocation69_spill] sm:$0xff] }
 0x6b5   : > { %6697 = vmatmul.mubr.msk.f32.vlgmr.msra.gmra.mxu1 %vm3535_vm6, %v3504_v20  ;;  %v3051_v16 = vmul.f32 %v9183_v17, %v8702_v10 }
 0x6b6   : > { %v3276_v62 = vadd.f32 %v3244_v53, %v3079_v44  ;;  %6777 = vmatmul.mubr.msk.f32.gmra.mxu0 %vm1552_vm2, %v9029_v41  ;;  %v3474_v21 = vadd.f32 %v3442_v2, %v3277_v26  ;;  %v7076_v41 = vld [vmem:[%s8231_s22 + $0x38] sm:$0xff]  ;;  %v3052_v53 = vmul.f32 %v9183_v17, %v8692_v54  ;;  %v3248_v54 = vmul.f32 %v9188_v58, %v9016_v43  ;;  %v7079_v43 = vld [vmem:[%s8231_s22 + $0x68] sm:$0xff] }
 0x6b7   : > { %v6646_v11 = vpop.f32.mrf.mxu0  ;;  %6779 = vmatprep.mubr.msk.f32.mxu0 %vm1552_vm2, %v9047_v46  ;;  %4994 = vperm.xlu1 %6897, %v7076_v41   ;;  %v7078_v2 = vld [vmem:[%s8231_s22 + $0x58] sm:$0xff]  ;;  %v3446_v44 = vmul.f32 %v9211_v42, %v10560_v22 }
 0x6b8   : > { %v3473_v50 = vadd.f32 %v3441_v24, %v3276_v62  ;;  %v2747_v45 = vadd.f32 %v6646_v11, %v9193_v27  ;;  %v3506_v6 = vmax.f32 %v3474_v21, 0.0  ;;  %v10562_v11 = vld [vmem:[#allocation79_spill] sm:$0xff] }
 0x6b9   : > { %v2741_v30 = vpop.f32.mrf.mxu0 }
 0x6ba   : > { %v3505_v25 = vmax.f32 %v3473_v50, 0.0  ;;  %v3082_v46 = vadd.f32 %v3050_v48, %v2747_v45  ;;  %v2742_v37 = vadd.f32 %v2741_v30, %v9193_v27  ;;  %6780 = vmatmul.mubr.msk.f32.gmra.mxu0 %vm1552_vm2, %v9045_v13  ;;  %v7077_v13 = vld [vmem:[%s8231_s22 + $0x48] sm:$0xff]  ;;  %v7080_v30 = vld [vmem:[%s8231_s22 + $0x78] sm:$0xff] }
 0x6bb   : > { %6782 = vmatprep.mubr.msk.f32.mxu0 %vm1552_vm2, %v9063_v56  ;;  %5002 = vperm.xlu1 %6897, %v7077_v13   ;;  %v9291_v56 = vpop.permute.xlu1 %3408  ;;  %v7087_v13 = vld [vmem:[%s8231_s22 + $0xe8] sm:$0xff] }
 0x6bc   : > { %v3279_v57 = vadd.f32 %v3247_v32, %v3082_v46  ;;  %v3081_v47 = vadd.f32 %v3049_v52, %v2742_v37  ;;  %6699 = vmatprep.mubr.msk.f32.mxu1 %vm3535_vm6, %v3505_v25  ;;  %v10563_v32 = vld [vmem:[#allocation84_spill] sm:$0xff] }
 0x6bd   : > { %6700 = vmatmul.mubr.msk.f32.gmra.mxu1 %vm3535_vm6, %v3506_v6  ;;  %v10564_v25 = vld [vmem:[#allocation88_spill] sm:$0xff]  ;;  %v7084_v6 = vld [vmem:[%s8231_s22 + $0xb8] sm:$0xff] }
 0x6be   : > { %v3278_v38 = vadd.f32 %v3246_v39, %v3081_v47  ;;  %6783 = vmatmul.mubr.msk.f32.gmra.mxu0 %vm1552_vm2, %v9061_v7  ;;  %v3476_v35 = vadd.f32 %v3444_v8, %v3279_v57  ;;  %v7082_v39 = vld [vmem:[%s8231_s22 + $0x98] sm:$0xff]  ;;  %v7083_v8 = vld [vmem:[%s8231_s22 + $0xa8] sm:$0xff] }
 0x6bf   : > { %v6649_v36 = vpop.f32.mrf.mxu0  ;;  %6785 = vmatprep.mubr.msk.f32.mxu0 %vm1552_vm2, %v9078_v14  ;;  %5010 = vperm.xlu1 %6897, %v7078_v2   ;;  %v9310_v10 = vpop.permute.xlu1 %3219 }
 0x6c0   : > { %v3475_v9 = vadd.f32 %v3443_v1, %v3278_v38  ;;  %v2757_v15 = vadd.f32 %v6649_v36, %v9193_v27  ;;  %v3508_v24 = vmax.f32 %v3476_v35, 0.0  ;;  %v10565_v38 = vld [vmem:[#allocation60_spill] sm:$0xff]  ;;  %v10566_v35 = vld [vmem:[#allocation61_spill] sm:$0xff] }
 0x6c1   : > { %v2751_v7 = vpop.f32.mrf.mxu0  ;;  %v10567_v36 = vld [vmem:[#allocation64_spill] sm:$0xff] }
 0x6c2   : > { %v3507_v20 = vmax.f32 %v3475_v9, 0.0  ;;  %v3084_v14 = vadd.f32 %v3052_v53, %v2757_v15  ;;  %v2752_v26 = vadd.f32 %v2751_v7, %v9193_v27  ;;  %6786 = vmatmul.mubr.msk.f32.gmra.mxu0 %vm1552_vm2, %v9074_v34  ;;  %v3445_v34 = vmul.f32 %v9211_v42, %v10562_v11  ;;  %v10568_v53 = vld [vmem:[#allocation65_spill] sm:$0xff]  ;;  %v7088_v9 = vld [vmem:[%s8231_s22 + $0xf8] sm:$0xff] }
 0x6c3   : > { %6788 = vmatprep.mubr.msk.f32.mxu0 %vm1552_vm2, %v10561_v12  ;;  %5018 = vperm.xlu1 %6897, %v7079_v43   ;;  %v9321_v52 = vpop.permute.xlu1 %3416  ;;  %v10572_v12 = vld [vmem:[#allocation16_spill] sm:$0xff] }
 0x6c4   : > { %v3281_v62 = vadd.f32 %v3249_v0, %v3084_v14  ;;  %v3083_v21 = vadd.f32 %v3051_v16, %v2752_v26  ;;  %6702 = vmatprep.mubr.msk.f32.mxu1 %vm3535_vm6, %v3507_v20  ;;  %v10569_v16 = vld [vmem:[#allocation41_spill] sm:$0xff]  ;;  %v10570_v14 = vld [vmem:[#allocation43_spill] sm:$0xff] }
 0x6c5   : > { %6703 = vmatmul.mubr.msk.f32.gmra.mxu1 %vm3535_vm6, %v3508_v24  ;;  %v3054_v7 = vmul.f32 %v9183_v17, %v10569_v16  ;;  %v3053_v26 = vmul.f32 %v9183_v17, %v10570_v14  ;;  %v10579_v14 = vld [vmem:[#allocation44_spill] sm:$0xff] }
 0x6c6   : > { %v3280_v48 = vadd.f32 %v3248_v54, %v3083_v21  ;;  %6789 = vmatmul.mubr.msk.f32.gmra.mxu0 %vm1552_vm2, %v10563_v32  ;;  %v3478_v50 = vadd.f32 %v3446_v44, %v3281_v62  ;;  %v10571_v54 = vld [vmem:[#allocation73_spill] sm:$0xff]  ;;  %v3250_v62 = vmul.f32 %v9188_v58, %v10572_v12  ;;  %v10574_v32 = vld [vmem:[#allocation80_spill] sm:$0xff] }
 0x6c7   : > { %6791 = vmatprep.mubr.msk.f32.mxu0 %vm1552_vm2, %v9104_v23  ;;  %5026 = vperm.xlu1 %6897, %v7080_v30   ;;  %v7081_v23 = vld [vmem:[%s8231_s22 + $0x88] sm:$0xff]  ;;  %v9335_v37 = vpop.permute.xlu1 %3223  ;;  %v3251_v22 = vmul.f32 %v9188_v58, %v10571_v54  ;;  %v10580_v54 = vld [vmem:[#allocation71_spill] sm:$0xff] }
 0x6c8   : > { %v3477_v45 = vadd.f32 %v3445_v34, %v3280_v48  ;;  %v3510_v46 = vmax.f32 %v3478_v50, 0.0  ;;  %v10573_v34 = vld [vmem:[#allocation70_spill] sm:$0xff]  ;;  %v9381_v48 = vpop.permute.xlu0 %3227  ;;  %v3447_v50 = vmul.f32 %v9211_v42, %v10574_v32 }
 0x6c9   : > { %v3448_v43 = vmul.f32 %v9211_v42, %v10573_v34 }
 0x6ca   : > { %v3509_v41 = vmax.f32 %v3477_v45, 0.0  ;;  %6792 = vmatmul.mubr.msk.f32.gmra.mxu0 %vm1552_vm2, %v10564_v25  ;;  %v10575_v25 = vld [vmem:[#allocation42_spill] sm:$0xff] }
 0x6cb   : > { %6794 = vmatprep.mubr.msk.f32.mxu0 %vm1552_vm2, %v9119_v5  ;;  %5034 = vperm.xlu1 %6897, %v7081_v23   ;;  %v9340_v5 = vpop.permute.xlu1 %3420 }
 0x6cc   : > { %6705 = vmatprep.mubr.msk.f32.mxu1 %vm3535_vm6, %v3509_v41 }
 0x6cd   : > { %6706 = vmatmul.mubr.msk.f32.gmra.mxu1 %vm3535_vm6, %v3510_v46  ;;  %v3056_v46 = vmul.f32 %v9183_v17, %v10575_v25 }
 0x6ce   : > { %6795 = vmatmul.mubr.msk.f32.gmra.mxu0 %vm1552_vm2, %v9115_v61  ;;  %v7085_v61 = vld [vmem:[%s8231_s22 + $0xc8] sm:$0xff] }
 0x6cf   : > { %6797 = vmatprep.mubr.msk.f32.mxu0 %vm1552_vm2, %v9130_v60  ;;  %5042 = vperm.xlu1 %6897, %v7082_v39   ;;  %v9344_v57 = vpop.permute.xlu1 %3424  ;;  %v7086_v60 = vld [vmem:[%s8231_s22 + $0xd8] sm:$0xff] }
 0x6d2   : > { %6798 = vmatmul.mubr.msk.f32.gmra.mxu0 %vm1552_vm2, %v9128_v4  ;;  %v1719_v4 = vld [vmem:[%s10360_s4 + $0xb8] sm:$0x7] }
 0x6d3   : > { %5050 = vperm.xlu1 %6897, %v7083_v8   ;;  %v9347_v47 = vpop.permute.xlu1 %3235  ;;  %6800 = vmatprep.subr.msk.mxu1 %vm3632_vm5, %v1719_v4  ;;  %v10576_v8 = vld [vmem:[#allocation45_spill] sm:$0xff] }
 0x6d4   : > { %6801 = vmatpush3.msk.msra.mxu1 %vm3632_vm5, %v1719_v4 }
 0x6d5   : > { %6802 = vmatprep.subr.mxu1 %v10565_v38 }
 0x6d6   : > { %6803 = vmatpush3.msra.mxu1 %v10565_v38 }
 0x6d7   : > { %5058 = vperm.xlu1 %6897, %v7084_v6   ;;  %v9350_v1 = vpop.permute.xlu1 %3432  ;;  %6804 = vmatprep.subr.mxu1 %v10566_v35  ;;  %v3055_v6 = vmul.f32 %v9183_v17, %v10576_v8 }
 0x6d8   : > { %6805 = vmatpush3.msra.mxu1 %v10566_v35 }
 0x6d9   : > { %6806 = vmatprep.subr.mxu1 %v10567_v36 }
 0x6da   : > { %6807 = vmatpush3.msra.mxu1 %v10567_v36  ;;  %v9393_v36 = vpop.permute.xlu0 %3231 }
 0x6db   : > { %5066 = vperm.xlu1 %6897, %v7085_v61   ;;  %6808 = vmatprep.subr.mxu1 %v10568_v53  ;;  %v9366_v0 = vpop.permute.xlu1 %4541 }
 0x6dc   : > { %6809 = vmatpush3.msra.mxu1 %v10568_v53 }
 0x6df   : > { %5074 = vperm.xlu1 %6897, %v7086_v60   ;;  %v10577_v60 = vld [vmem:[#allocation75_spill] sm:$0xff] }
 0x6e3   : > { %5082 = vperm.xlu1 %6897, %v7087_v13   ;;  %v3253_v13 = vmul.f32 %v9188_v58, %v10577_v60 }
 0x6e7   : > { %5090 = vperm.xlu1 %6897, %v7088_v9   ;;  %v10578_v9 = vld [vmem:[#allocation81_spill] sm:$0xff] }
 0x71d   : > { %v6652_v15 = vpop.f32.mrf.mxu0 }
 0x71e   : > { %v2767_v2 = vadd.f32 %v6652_v15, %v9193_v27  ;;  %v3252_v15 = vmul.f32 %v9188_v58, %v10578_v9 }
 0x71f   : > { %v2761_v20 = vpop.f32.mrf.mxu0 }
 0x720   : > { %v3086_v44 = vadd.f32 %v3054_v7, %v2767_v2  ;;  %v2762_v24 = vadd.f32 %v2761_v20, %v9193_v27  ;;  %v9398_v20 = vpop.permute.xlu1 %4551 }
 0x722   : > { %v3283_v21 = vadd.f32 %v3251_v22, %v3086_v44  ;;  %v3085_v11 = vadd.f32 %v3053_v26, %v2762_v24  ;;  %v3058_v26 = vmul.f32 %v9183_v17, %v10579_v14  ;;  %v3450_v22 = vmul.f32 %v9211_v42, %v10580_v54  ;;  %v10581_v24 = vld [vmem:[#allocation47_spill] sm:$0xff]  ;;  %v10588_v54 = vld [vmem:[#allocation49_spill] sm:$0xff] }
 0x723   : > { %v3057_v12 = vmul.f32 %v9183_v17, %v10581_v24  ;;  %v10589_v24 = vld [vmem:[#allocation12_spill] sm:$0xff] }
 0x724   : > { %v3282_v45 = vadd.f32 %v3250_v62, %v3085_v11  ;;  %v3480_v30 = vadd.f32 %v3448_v43, %v3283_v21  ;;  %v10582_v62 = vld [vmem:[#allocation82_spill] sm:$0xff]  ;;  %v10583_v43 = vld [vmem:[#allocation77_spill] sm:$0xff] }
 0x725   : > { %v6655_v41 = vpop.f32.mrf.mxu0  ;;  %v3449_v21 = vmul.f32 %v9211_v42, %v10582_v62  ;;  %v3255_v32 = vmul.f32 %v9188_v58, %v10583_v43 }
 0x726   : > { %v3479_v23 = vadd.f32 %v3447_v50, %v3282_v45  ;;  %v2777_v39 = vadd.f32 %v6655_v41, %v9193_v27  ;;  %v3512_v53 = vmax.f32 %v3480_v30, 0.0  ;;  %v9413_v41 = vpop.permute.xlu0 %3428 }
 0x727   : > { %v2771_v61 = vpop.f32.mrf.mxu0 }
 0x728   : > { %v3511_v4 = vmax.f32 %v3479_v23, 0.0  ;;  %v3088_v38 = vadd.f32 %v3056_v46, %v2777_v39  ;;  %v2772_v35 = vadd.f32 %v2771_v61, %v9193_v27  ;;  %v10584_v46 = vld [vmem:[#allocation83_spill] sm:$0xff] }
 0x729   : > { %v3254_v23 = vmul.f32 %v9188_v58, %v10584_v46 }
 0x72a   : > { %v3285_v16 = vadd.f32 %v3253_v13, %v3088_v38  ;;  %v3087_v7 = vadd.f32 %v3055_v6, %v2772_v35  ;;  %v6658_v2 = vpop.f32.mrf.mxu0  ;;  %6708 = vmatprep.mubr.msk.f32.mxu1 %vm3535_vm6, %v3511_v4  ;;  %v10585_v6 = vld [vmem:[#allocation72_spill] sm:$0xff]  ;;  %v9419_v13 = vpop.permute.xlu1 %4556  ;;  %v10586_v4 = vld [vmem:[#allocation86_spill] sm:$0xff] }
 0x72b   : > { %v2787_v44 = vadd.f32 %v6658_v2, %v9193_v27  ;;  %6709 = vmatmul.mubr.msk.f32.gmra.mxu1 %vm3535_vm6, %v3512_v53  ;;  %v3452_v61 = vmul.f32 %v9211_v42, %v10585_v6  ;;  %v3451_v38 = vmul.f32 %v9211_v42, %v10586_v4  ;;  %v9423_v9 = vpop.permute.xlu0 %4546  ;;  %v10592_v6 = vld [vmem:[#allocation51_spill] sm:$0xff] }
 0x72c   : > { %v3284_v11 = vadd.f32 %v3252_v15, %v3087_v7  ;;  %v2781_v34 = vpop.f32.mrf.mxu0  ;;  %v3482_v50 = vadd.f32 %v3450_v22, %v3285_v16  ;;  %v10587_v7 = vld [vmem:[#allocation46_spill] sm:$0xff]  ;;  %v3059_v22 = vmul.f32 %v9183_v17, %v10588_v54 }
 0x72d   : > { %v3090_v45 = vadd.f32 %v3058_v26, %v2787_v44  ;;  %v2782_v30 = vadd.f32 %v2781_v34, %v9193_v27  ;;  %v3060_v2 = vmul.f32 %v9183_v17, %v10587_v7  ;;  %v10590_v34 = vld [vmem:[#allocation48_spill] sm:$0xff] }
 0x72e   : > { %v3481_v25 = vadd.f32 %v3449_v21, %v3284_v11  ;;  %v3514_v35 = vmax.f32 %v3482_v50, 0.0  ;;  %v3062_v43 = vmul.f32 %v9183_v17, %v10590_v34 }
 0x72f   : > { %v3287_v39 = vadd.f32 %v3255_v32, %v3090_v45  ;;  %v3089_v8 = vadd.f32 %v3057_v12, %v2782_v30  ;;  %v3257_v12 = vmul.f32 %v9188_v58, %v10589_v24  ;;  %v9437_v45 = vpop.permute.xlu1 %4566  ;;  %v10591_v30 = vld [vmem:[#allocation87_spill] sm:$0xff]  ;;  %v10598_v24 = vld [vmem:[#allocation53_spill] sm:$0xff] }
 0x730   : > { %v3513_v60 = vmax.f32 %v3481_v25, 0.0  ;;  %v3256_v25 = vmul.f32 %v9188_v58, %v10591_v30 }
 0x731   : > { %v3286_v53 = vadd.f32 %v3254_v23, %v3089_v8  ;;  %v3484_v15 = vadd.f32 %v3452_v61, %v3287_v39  ;;  %v9443_v8 = vpop.permute.xlu0 %4561  ;;  %v3061_v61 = vmul.f32 %v9183_v17, %v10592_v6  ;;  %v10602_v6 = vld [vmem:[#allocation76_spill] sm:$0xff] }
 0x732   : > { %v6661_v16 = vpop.f32.mrf.mxu0  ;;  %6711 = vmatprep.mubr.msk.f32.mxu1 %vm3535_vm6, %v3513_v60  ;;  %v10593_v60 = vld [vmem:[#allocation74_spill] sm:$0xff] }
 0x733   : > { %v3483_v14 = vadd.f32 %v3451_v38, %v3286_v53  ;;  %v2797_v26 = vadd.f32 %v6661_v16, %v9193_v27  ;;  %6712 = vmatmul.mubr.msk.f32.gmra.mxu1 %vm3535_vm6, %v3514_v35  ;;  %v3516_v32 = vmax.f32 %v3484_v15, 0.0  ;;  %v3454_v4 = vmul.f32 %v9211_v42, %v10593_v60  ;;  %v10594_v38 = vld [vmem:[#allocation78_spill] sm:$0xff]  ;;  %v10595_v15 = vld [vmem:[#allocation89_spill] sm:$0xff] }
 0x734   : > { %v2791_v44 = vpop.f32.mrf.mxu0  ;;  %v3259_v35 = vmul.f32 %v9188_v58, %v10594_v38  ;;  %v3453_v16 = vmul.f32 %v9211_v42, %v10595_v15  ;;  %v3456_v60 = vmul.f32 %v9211_v42, %v10602_v6 }
 0x735   : > { %v3515_v62 = vmax.f32 %v3483_v14, 0.0  ;;  %v3092_v21 = vadd.f32 %v3060_v2, %v2797_v26  ;;  %v2792_v11 = vadd.f32 %v2791_v44, %v9193_v27  ;;  %v10596_v26 = vld [vmem:[#allocation50_spill] sm:$0xff] }
 0x736   : > { %v6664_v50 = vpop.f32.mrf.mxu0  ;;  %v3064_v54 = vmul.f32 %v9183_v17, %v10596_v26 }
 0x737   : > { %v3289_v46 = vadd.f32 %v3257_v12, %v3092_v21  ;;  %v3091_v23 = vadd.f32 %v3059_v22, %v2792_v11  ;;  %v2807_v39 = vadd.f32 %v6664_v50, %v9193_v27  ;;  %6714 = vmatprep.mubr.msk.f32.mxu1 %vm3535_vm6, %v3515_v62  ;;  %v10597_v22 = vld [vmem:[#allocation52_spill] sm:$0xff]  ;;  %v3063_v12 = vmul.f32 %v9183_v17, %v10598_v24  ;;  %v10599_v11 = vld [vmem:[#allocation90_spill] sm:$0xff] }
 0x738   : > { %v2801_v53 = vpop.f32.mrf.mxu0  ;;  %6715 = vmatmul.mubr.msk.f32.gmra.mxu1 %vm3535_vm6, %v3516_v32  ;;  %v3066_v44 = vmul.f32 %v9183_v17, %v10597_v22  ;;  %v3258_v34 = vmul.f32 %v9188_v58, %v10599_v11 }
 0x739   : > { %v3288_v7 = vadd.f32 %v3256_v25, %v3091_v23  ;;  %v3094_v2 = vadd.f32 %v3062_v43, %v2807_v39  ;;  %v2802_v14 = vadd.f32 %v2801_v53, %v9193_v27  ;;  %v3486_v62 = vadd.f32 %v3454_v4, %v3289_v46  ;;  %v10600_v43 = vld [vmem:[#allocation54_spill] sm:$0xff]  ;;  %v10601_v23 = vld [vmem:[#allocation55_spill] sm:$0xff]  ;;  %v9470_v46 = vpop.permute.xlu1 %4576 }
 0x73a   : > { %v6667_v21 = vpop.f32.mrf.mxu0  ;;  %v3068_v25 = vmul.f32 %v9183_v17, %v10600_v43  ;;  %v3065_v39 = vmul.f32 %v9183_v17, %v10601_v23  ;;  %v3455_v4 = vmul.f32 %v9211_v42, %v9133_v29 }
 0x73b   : > { %v3485_v32 = vadd.f32 %v3453_v16, %v3288_v7  ;;  %v3291_v50 = vadd.f32 %v3259_v35, %v3094_v2  ;;  %v3093_v30 = vadd.f32 %v3061_v61, %v2802_v14  ;;  %v2817_v38 = vadd.f32 %v6667_v21, %v9193_v27  ;;  %v9475_v16 = vpop.permute.xlu0 %4571  ;;  %v10603_v7 = vld [vmem:[#allocation15_spill] sm:$0xff] }
 0x73c   : > { %v2811_v53 = vpop.f32.mrf.mxu0  ;;  %v3261_v2 = vmul.f32 %v9188_v58, %v10603_v7  ;;  %v3518_v14 = vmax.f32 %v3486_v62, 0.0  ;;  %v3260_v21 = vmul.f32 %v9188_v58, %v9136_v59  ;;  %v3263_v62 = vmul.f32 %v9188_v58, %v9148_v18 }
 0x73d   : > { %v3517_v15 = vmax.f32 %v3485_v32, 0.0  ;;  %v3290_v35 = vadd.f32 %v3258_v34, %v3093_v30  ;;  %v2812_v61 = vadd.f32 %v2811_v53, %v9193_v27  ;;  %v3488_v26 = vadd.f32 %v3456_v60, %v3291_v50  ;;  %v10604_v34 = vld [vmem:[#allocation11_spill] sm:$0xff]  ;;  %v10605_v60 = vld [vmem:[#allocation56_spill] sm:$0xff] }
 0x73e   : > { %v3096_v22 = vadd.f32 %v3064_v54, %v2817_v38  ;;  %v6670_v24 = vpop.f32.mrf.mxu0  ;;  %v3458_v32 = vmul.f32 %v9211_v42, %v10604_v34  ;;  %v3457_v30 = vmul.f32 %v9211_v42, %v9145_v63  ;;  %v3070_v38 = vmul.f32 %v9183_v17, %v10605_v60 }
 0x73f   : > { %v3487_v11 = vadd.f32 %v3455_v4, %v3290_v35  ;;  %v3095_v43 = vadd.f32 %v3063_v12, %v2812_v61  ;;  %v2827_v29 = vadd.f32 %v6670_v24, %v9193_v27  ;;  %6717 = vmatprep.mubr.msk.f32.mxu1 %vm3535_vm6, %v3517_v15  ;;  %v3262_v53 = vmul.f32 %v9188_v58, %v9154_v19  ;;  %v9495_v35 = vpop.permute.xlu1 %4586  ;;  %v10607_v24 = vld [vmem:[#allocation58_spill] sm:$0xff] }
 0x740   : > { %v3293_v54 = vadd.f32 %v3261_v2, %v3096_v22  ;;  %v2821_v50 = vpop.f32.mrf.mxu0  ;;  %6718 = vmatmul.mubr.msk.f32.gmra.mxu1 %vm3535_vm6, %v3518_v14  ;;  %v3520_v4 = vmax.f32 %v3488_v26, 0.0  ;;  %v10606_v14 = vld [vmem:[#allocation57_spill] sm:$0xff]  ;;  %v3072_v19 = vmul.f32 %v9183_v17, %v10607_v24  ;;  %v3459_v26 = vmul.f32 %v9211_v42, %v9164_v31 }
 0x741   : > { %v3519_v59 = vmax.f32 %v3487_v11, 0.0  ;;  %v3292_v23 = vadd.f32 %v3260_v21, %v3095_v43  ;;  %v3098_v12 = vadd.f32 %v3066_v44, %v2827_v29  ;;  %v2822_v6 = vadd.f32 %v2821_v50, %v9193_v27  ;;  %v9499_v44 = vpop.permute.xlu0 %4581 }
 0x742   : > { %v3490_v63 = vadd.f32 %v3458_v32, %v3293_v54  ;;  %v6673_v15 = vpop.f32.mrf.mxu0  ;;  %v3067_v22 = vmul.f32 %v9183_v17, %v10606_v14  ;;  %v3460_v21 = vmul.f32 %v9211_v42, %v9177_v49  ;;  %v10608_v32 = vld [vmem:[#allocation59_spill] sm:$0xff]  ;;  %v3462_v49 = vmul.f32 %v9211_v42, %v9229_v3 }
 0x743   : > { %v3489_v18 = vadd.f32 %v3457_v30, %v3292_v23  ;;  %v3295_v61 = vadd.f32 %v3263_v62, %v3098_v12  ;;  %v3097_v7 = vadd.f32 %v3065_v39, %v2822_v6  ;;  %v2837_v2 = vadd.f32 %v6673_v15, %v9193_v27  ;;  %6720 = vmatprep.mubr.msk.f32.mxu1 %vm3535_vm6, %v3519_v59  ;;  %v9526_v3 = vpop.permute.xlu1 %4596 }
 0x744   : > { %v2831_v11 = vpop.f32.mrf.mxu0  ;;  %6721 = vmatmul.mubr.msk.f32.gmra.mxu1 %vm3535_vm6, %v3520_v4  ;;  %v3265_v39 = vmul.f32 %v9188_v58, %v9201_v55  ;;  %v3069_v30 = vmul.f32 %v9183_v17, %v10608_v32  ;;  %v3522_v62 = vmax.f32 %v3490_v63, 0.0  ;;  %v10609_v55 = vld [vmem:[#allocation62_spill] sm:$0xff]  ;;  %v3264_v6 = vmul.f32 %v9188_v58, %v9159_v40 }
 0x745   : > { %v3521_v43 = vmax.f32 %v3489_v18, 0.0  ;;  %v3294_v29 = vadd.f32 %v3262_v53, %v3097_v7  ;;  %v3100_v34 = vadd.f32 %v3068_v25, %v2837_v2  ;;  %v3492_v54 = vadd.f32 %v3460_v21, %v3295_v61  ;;  %v9529_v7 = vpop.permute.xlu0 %4591  ;;  %v10610_v2 = vld [vmem:[#allocation13_spill] sm:$0xff] }
 0x746   : > { %v2832_v50 = vadd.f32 %v2831_v11, %v9193_v27  ;;  %v6676_v31 = vpop.f32.mrf.mxu0  ;;  %v3074_v25 = vmul.f32 %v9183_v17, %v10609_v55  ;;  %v3267_v60 = vmul.f32 %v9188_v58, %v9171_v51  ;;  %v3461_v14 = vmul.f32 %v9211_v42, %v10610_v2  ;;  %v10616_v2 = vld [vmem:[#allocation14_spill] sm:$0xff] }
 0x747   : > { %v3491_v59 = vadd.f32 %v3459_v26, %v3294_v29  ;;  %v3297_v23 = vadd.f32 %v3265_v39, %v3100_v34  ;;  %v2847_v12 = vadd.f32 %v6676_v31, %v9193_v27  ;;  %6723 = vmatprep.mubr.msk.f32.mxu1 %vm3535_vm6, %v3521_v43  ;;  %v3266_v40 = vmul.f32 %v9188_v58, %v9252_v28  ;;  %v10611_v39 = vld [vmem:[#allocation63_spill] sm:$0xff] }
 0x748   : > { %v3099_v53 = vadd.f32 %v3067_v22, %v2832_v50  ;;  %v2841_v4 = vpop.f32.mrf.mxu0  ;;  %6724 = vmatmul.mubr.msk.f32.gmra.mxu1 %vm3535_vm6, %v3522_v62  ;;  %v3524_v51 = vmax.f32 %v3492_v54, 0.0  ;;  %v3464_v26 = vmul.f32 %v9211_v42, %v9291_v56  ;;  %v3071_v43 = vmul.f32 %v9183_v17, %v10611_v39  ;;  %v10612_v50 = vld [vmem:[#allocation66_spill] sm:$0xff] }
 0x749   : > { %v3523_v63 = vmax.f32 %v3491_v59, 0.0  ;;  %v3494_v15 = vadd.f32 %v3462_v49, %v3297_v23  ;;  %v3102_v18 = vadd.f32 %v3070_v38, %v2847_v12  ;;  %v2842_v61 = vadd.f32 %v2841_v4, %v9193_v27  ;;  %v10613_v49 = vld [vmem:[#allocation91_spill] sm:$0xff]  ;;  %v9553_v12 = vpop.permute.xlu1 %4606 }
 0x74a   : > { %v3296_v22 = vadd.f32 %v3264_v6, %v3099_v53  ;;  %v6679_v24 = vpop.f32.mrf.mxu0  ;;  %v3463_v29 = vmul.f32 %v9211_v42, %v9270_v33  ;;  %v3269_v28 = vmul.f32 %v9188_v58, %v9310_v10  ;;  %v3076_v31 = vmul.f32 %v9183_v17, %v10612_v50  ;;  %v10614_v4 = vld [vmem:[#allocation67_spill] sm:$0xff] }
 0x74b   : > { %v3299_v21 = vadd.f32 %v3267_v60, %v3102_v18  ;;  %v3101_v11 = vadd.f32 %v3069_v30, %v2842_v61  ;;  %v2857_v38 = vadd.f32 %v6679_v24, %v9193_v27  ;;  %6726 = vmatprep.mubr.msk.f32.mxu1 %vm3535_vm6, %v3523_v63  ;;  %v3268_v59 = vmul.f32 %v9188_v58, %v10613_v49  ;;  %v10615_v18 = vld [vmem:[#allocation68_spill] sm:$0xff] }
 0x74c   : > { %v3493_v34 = vadd.f32 %v3461_v14, %v3296_v22  ;;  %v2851_v32 = vpop.f32.mrf.mxu0  ;;  %6727 = vmatmul.mubr.msk.f32.gmra.mxu1 %vm3535_vm6, %v3524_v51  ;;  %v3466_v33 = vmul.f32 %v9211_v42, %v9321_v52  ;;  %v3526_v55 = vmax.f32 %v3494_v15, 0.0  ;;  %v3073_v63 = vmul.f32 %v9183_v17, %v10614_v4 }
 0x74d   : > { %v3496_v56 = vadd.f32 %v3464_v26, %v3299_v21  ;;  %v3298_v62 = vadd.f32 %v3266_v40, %v3101_v11  ;;  %v3104_v30 = vadd.f32 %v3072_v19, %v2857_v38  ;;  %v2852_v54 = vadd.f32 %v2851_v32, %v9193_v27  ;;  %v9555_v19 = vpop.permute.xlu0 %4601 }
 0x74e   : > { %v3525_v23 = vmax.f32 %v3493_v34, 0.0  ;;  %v6682_v10 = vpop.f32.mrf.mxu0  ;;  %v3075_v61 = vmul.f32 %v9183_v17, %v10615_v18  ;;  %v3465_v14 = vmul.f32 %v9211_v42, %v10616_v2  ;;  %v3271_v26 = vmul.f32 %v9188_v58, %v9381_v48 }
 0x74f   : > { %v3495_v6 = vadd.f32 %v3463_v29, %v3298_v62  ;;  %v3301_v60 = vadd.f32 %v3269_v28, %v3104_v30  ;;  %v3103_v53 = vadd.f32 %v3071_v43, %v2852_v54  ;;  %v2867_v52 = vadd.f32 %v6682_v10, %v9193_v27 }
 0x750   : > { %6729 = vmatprep.mubr.msk.f32.mxu1 %vm3535_vm6, %v3525_v23  ;;  %v2861_v40 = vpop.f32.mrf.mxu0  ;;  %v3270_v17 = vmul.f32 %v9188_v58, %v9335_v37  ;;  %v3273_v11 = vmul.f32 %v9188_v58, %v9347_v47  ;;  %v3528_v39 = vmax.f32 %v3496_v56, 0.0  ;;  %v3467_v34 = vmul.f32 %v9211_v42, %v9340_v5  ;;  %v9581_v47 = vpop.permute.xlu1 %4616 }
 0x751   : > { %v3527_v15 = vmax.f32 %v3495_v6, 0.0  ;;  %v3498_v51 = vadd.f32 %v3466_v33, %v3301_v60  ;;  %v3300_v22 = vadd.f32 %v3268_v59, %v3103_v53  ;;  %v2862_v24 = vadd.f32 %v2861_v40, %v9193_v27  ;;  %6730 = vmatmul.mubr.msk.f32.gmra.mxu1 %vm3535_vm6, %v3526_v55  ;;  %v9585_v50 = vpop.permute.xlu0 %4611 }
 0x752   : > { %v3106_v21 = vadd.f32 %v3074_v25, %v2867_v52  ;;  %v6685_v38 = vpop.f32.mrf.mxu0  ;;  %v3468_v48 = vmul.f32 %v9211_v42, %v9344_v57  ;;  %v3470_v25 = vmul.f32 %v9211_v42, %v9350_v1  ;;  %v3272_v5 = vmul.f32 %v9188_v58, %v9393_v36 }
 0x753   : > { %v3497_v43 = vadd.f32 %v3465_v14, %v3300_v22  ;;  %v3105_v29 = vadd.f32 %v3073_v63, %v2862_v24  ;;  %v2877_v28 = vadd.f32 %v6685_v38, %v9193_v27  ;;  %6732 = vmatprep.mubr.msk.f32.mxu1 %vm3535_vm6, %v3527_v15  ;;  %v3530_v57 = vmax.f32 %v3498_v51, 0.0  ;;  %v9624_v51 = vld [vmem:[%s10361_s5 + $0x18] ss:$0 sm:$0xff] }
 0x754   : > { %v3303_v32 = vadd.f32 %v3271_v26, %v3106_v21  ;;  %v2871_v37 = vpop.f32.mrf.mxu0  ;;  %v3469_v49 = vmul.f32 %v9211_v42, %v9413_v41  ;;  %v9593_v55 = vpop.permute.xlu1 %4626 }
 0x755   : > { %v3529_v56 = vmax.f32 %v3497_v43, 0.0  ;;  %v3302_v62 = vadd.f32 %v3270_v17, %v3105_v29  ;;  %v3108_v30 = vadd.f32 %v3076_v31, %v2877_v28  ;;  %v2872_v54 = vadd.f32 %v2871_v37, %v9193_v27  ;;  %6733 = vmatmul.mubr.msk.f32.gmra.mxu1 %vm3535_vm6, %v3528_v39  ;;  %v9596_v58 = vpop.permute.xlu0 %4621 }
 0x756   : > { %v3500_v59 = vadd.f32 %v3468_v48, %v3303_v32 }
 0x757   : > { %v3499_v1 = vadd.f32 %v3467_v34, %v3302_v62  ;;  %v3305_v33 = vadd.f32 %v3273_v11, %v3108_v30  ;;  %v3107_v23 = vadd.f32 %v3075_v61, %v2872_v54  ;;  %6735 = vmatprep.mubr.msk.f32.mxu1 %vm3535_vm6, %v3529_v56 }
 0x758   : > { %v3532_v6 = vmax.f32 %v3500_v59, 0.0  ;;  %v9600_v41 = vpop.permute.xlu1 %4636 }
 0x759   : > { %v3531_v31 = vmax.f32 %v3499_v1, 0.0  ;;  %v3304_v10 = vadd.f32 %v3272_v5, %v3107_v23  ;;  %v3502_v27 = vadd.f32 %v3470_v25, %v3305_v33  ;;  %6736 = vmatmul.mubr.msk.f32.gmra.mxu1 %vm3535_vm6, %v3530_v57  ;;  %v9603_v53 = vpop.permute.xlu0 %4631 }
 0x75b   : > { %v3501_v60 = vadd.f32 %v3469_v49, %v3304_v10  ;;  %6738 = vmatprep.mubr.msk.f32.mxu1 %vm3535_vm6, %v3531_v31  ;;  %v3534_v36 = vmax.f32 %v3502_v27, 0.0  ;;  %v9668_v31 = vld [vmem:[%s10360_s4 + $0xb9] ss:$0 sm:$0xff] }
 0x75c   : > { %v9605_v4 = vpop.permute.xlu1 %4646 }
 0x75d   : > { %v3533_v42 = vmax.f32 %v3501_v60, 0.0  ;;  %6739 = vmatmul.mubr.msk.f32.gmra.mxu1 %vm3535_vm6, %v3532_v6  ;;  %v9607_v63 = vpop.permute.xlu0 %4641 }
 0x75f   : > { %6741 = vmatprep.mubr.msk.f32.mxu1 %vm3535_vm6, %v3533_v42 }
 0x760   : > { %v9609_v18 = vpop.permute.xlu1 %4656 }
 0x761   : > { %6742 = vmatmul.mubr.msk.f32.gmra.mxu1 %vm3535_vm6, %v3534_v36  ;;  %v9611_v61 = vpop.permute.xlu0 %4651 }
 0x764   : > { %v9613_v2 = vpop.permute.xlu1 %4666 }
 0x765   : > { %v9615_v14 = vpop.permute.xlu0 %4661 }
 0x768   : > { %v9617_v52 = vpop.permute.xlu1 %4676 }
 0x769   : > { %v9619_v15 = vpop.permute.xlu0 %4671 }
 0x76c   : > { %v9628_v17 = vpop.permute.xlu1 %4686 }
 0x76d   : > { %10617 = vst [vmem:[#allocation69_spill] sm:$0xff] %v9628_v17  ;;  %v9630_v21 = vpop.permute.xlu0 %4681 }
 0x76e   : > { %10618 = vst [vmem:[#allocation85_spill] sm:$0xff] %v9630_v21 }
 0x770   : > { %v9634_v38 = vpop.permute.xlu1 %4696 }
 0x771   : > { %10619 = vst [vmem:[#allocation79_spill] sm:$0xff] %v9634_v38  ;;  %v9636_v39 = vpop.permute.xlu0 %4691 }
 0x772   : > { %10620 = vst [vmem:[#allocation84_spill] sm:$0xff] %v9636_v39 }
 0x774   : > { %v9640_v34 = vpop.permute.xlu1 %4773 }
 0x775   : > { %v6698_v40 = vpop.f32.mrf.mxu1  ;;  %v9643_v48 = vpop.permute.xlu0 %4769 }
 0x776   : > { %v3708_v26 = vadd.f32 %v6698_v40, %v9624_v51 }
 0x777   : > { %v3702_v22 = vpop.f32.mrf.mxu1 }
 0x778   : > { %v3703_v24 = vadd.f32 %v3702_v22, %v9624_v51  ;;  %v9646_v37 = vpop.permute.xlu1 %4777 }
 0x779   : > { %v9648_v25 = vpop.permute.xlu0 %4781 }
 0x77a   : > { %6810 = vmatprep.mubr.msk.f32.mxu1 %vm3535_vm6, %v3703_v24 }
 0x77b   : > { %6811 = vmatmul.mubr.msk.f32.vlgmr.msra.gmra.mxu1 %vm3535_vm6, %v3708_v26 }
 0x77c   : > { %v9652_v54 = vpop.permute.xlu1 %4785 }
 0x77d   : > { %v6701_v11 = vpop.f32.mrf.mxu1  ;;  %v9655_v5 = vpop.permute.xlu0 %4789 }
 0x77e   : > { %v3718_v28 = vadd.f32 %v6701_v11, %v9624_v51 }
 0x77f   : > { %v3712_v43 = vpop.f32.mrf.mxu1 }
 0x780   : > { %v3713_v29 = vadd.f32 %v3712_v43, %v9624_v51  ;;  %v9658_v49 = vpop.permute.xlu1 %4793 }
 0x781   : > { %v9660_v59 = vpop.permute.xlu0 %4797 }
 0x782   : > { %6813 = vmatprep.mubr.msk.f32.mxu1 %vm3535_vm6, %v3713_v29 }
 0x783   : > { %6814 = vmatmul.mubr.msk.f32.gmra.mxu1 %vm3535_vm6, %v3718_v28 }
 0x784   : > { %v4802_v10 = vpop.permute.xlu1 %4801 }
 0x785   : > { %v6704_v32 = vpop.f32.mrf.mxu1  ;;  %v9672_v27 = vmul.f32 %v9668_v31, %v4802_v10  ;;  %v4806_v6 = vpop.permute.xlu0 %4805 }
 0x786   : > { %v3728_v30 = vadd.f32 %v6704_v32, %v9624_v51  ;;  %v9675_v60 = vmul.f32 %v9668_v31, %v4806_v6 }
 0x787   : > { %v3722_v56 = vpop.f32.mrf.mxu1 }
 0x788   : > { %v3723_v62 = vadd.f32 %v3722_v56, %v9624_v51  ;;  %v4810_v42 = vpop.permute.xlu1 %4809 }
 0x789   : > { %v9678_v36 = vmul.f32 %v9668_v31, %v4810_v42  ;;  %v4814_v40 = vpop.permute.xlu0 %4813 }
 0x78a   : > { %6816 = vmatprep.mubr.msk.f32.mxu1 %vm3535_vm6, %v3723_v62  ;;  %v9681_v22 = vmul.f32 %v9668_v31, %v4814_v40 }
 0x78b   : > { %6817 = vmatmul.mubr.msk.f32.gmra.mxu1 %vm3535_vm6, %v3728_v30 }
 0x78c   : > { %v4818_v24 = vpop.permute.xlu1 %4817 }
 0x78d   : > { %v6707_v57 = vpop.f32.mrf.mxu1  ;;  %v9684_v26 = vmul.f32 %v9668_v31, %v4818_v24  ;;  %v4822_v11 = vpop.permute.xlu0 %4821 }
 0x78e   : > { %v3738_v23 = vadd.f32 %v6707_v57, %v9624_v51  ;;  %v9687_v43 = vmul.f32 %v9668_v31, %v4822_v11 }
 0x78f   : > { %v3732_v1 = vpop.f32.mrf.mxu1  ;;  %10621 = vst [vmem:[#allocation88_spill] sm:$0xff] %v9684_v26 }
 0x790   : > { %v3733_v33 = vadd.f32 %v3732_v1, %v9624_v51  ;;  %10622 = vst [vmem:[#allocation60_spill] sm:$0xff] %v9687_v43  ;;  %v4826_v29 = vpop.permute.xlu1 %4825 }
 0x791   : > { %v9690_v28 = vmul.f32 %v9668_v31, %v4826_v29  ;;  %v4830_v32 = vpop.permute.xlu0 %4829 }
 0x792   : > { %6819 = vmatprep.mubr.msk.f32.mxu1 %vm3535_vm6, %v3733_v33  ;;  %v9693_v56 = vmul.f32 %v9668_v31, %v4830_v32 }
 0x793   : > { %6820 = vmatmul.mubr.msk.f32.gmra.mxu1 %vm3535_vm6, %v3738_v23  ;;  %10623 = vst [vmem:[#allocation61_spill] sm:$0xff] %v9690_v28 }
 0x794   : > { %10624 = vst [vmem:[#allocation64_spill] sm:$0xff] %v9693_v56  ;;  %v4834_v62 = vpop.permute.xlu1 %4833 }
 0x795   : > { %v9696_v30 = vmul.f32 %v9668_v31, %v4834_v62  ;;  %v4838_v57 = vpop.permute.xlu0 %4837 }
 0x796   : > { %v9699_v1 = vmul.f32 %v9668_v31, %v4838_v57 }
 0x797   : > { %10625 = vst [vmem:[#allocation65_spill] sm:$0xff] %v9696_v30 }
 0x798   : > { %10626 = vst [vmem:[#allocation41_spill] sm:$0xff] %v9699_v1  ;;  %v4842_v33 = vpop.permute.xlu1 %4841 }
 0x799   : > { %v9702_v23 = vmul.f32 %v9668_v31, %v4842_v33  ;;  %v4846_v10 = vpop.permute.xlu0 %4845 }
 0x79a   : > { %v9705_v6 = vmul.f32 %v9668_v31, %v4846_v10 }
 0x79b   : > { %10627 = vst [vmem:[#allocation43_spill] sm:$0xff] %v9702_v23 }
 0x79c   : > { %10628 = vst [vmem:[#allocation73_spill] sm:$0xff] %v9705_v6  ;;  %v4850_v42 = vpop.permute.xlu1 %4849 }
 0x79d   : > { %v9708_v40 = vmul.f32 %v9668_v31, %v4850_v42  ;;  %v4854_v24 = vpop.permute.xlu0 %4853 }
 0x79e   : > { %v9711_v11 = vmul.f32 %v9668_v31, %v4854_v24 }
 0x79f   : > { %10629 = vst [vmem:[#allocation16_spill] sm:$0xff] %v9708_v40 }
 0x7a0   : > { %10630 = vst [vmem:[#allocation70_spill] sm:$0xff] %v9711_v11  ;;  %v4858_v29 = vpop.permute.xlu1 %4857 }
 0x7a1   : > { %v9714_v32 = vmul.f32 %v9668_v31, %v4858_v29  ;;  %v4862_v62 = vpop.permute.xlu0 %4861 }
 0x7a2   : > { %v9717_v57 = vmul.f32 %v9668_v31, %v4862_v62 }
 0x7a3   : > { %10631 = vst [vmem:[#allocation80_spill] sm:$0xff] %v9714_v32 }
 0x7a4   : > { %10632 = vst [vmem:[#allocation42_spill] sm:$0xff] %v9717_v57  ;;  %v4866_v33 = vpop.permute.xlu1 %4865 }
 0x7a5   : > { %v9720_v10 = vmul.f32 %v9668_v31, %v4866_v33  ;;  %v4870_v39 = vpop.permute.xlu0 %4869 }
 0x7a6   : > { %v9723_v42 = vmul.f32 %v9668_v31, %v4870_v39 }
 0x7a7   : > { %10633 = vst [vmem:[#allocation45_spill] sm:$0xff] %v9720_v10 }
 0x7a8   : > { %10634 = vst [vmem:[#allocation75_spill] sm:$0xff] %v9723_v42  ;;  %v4874_v40 = vpop.permute.xlu1 %4873 }
 0x7a9   : > { %v9726_v24 = vmul.f32 %v9668_v31, %v4874_v40  ;;  %v4878_v11 = vpop.permute.xlu0 %4877 }
 0x7aa   : > { %v9729_v29 = vmul.f32 %v9668_v31, %v4878_v11 }
 0x7ab   : > { %10635 = vst [vmem:[#allocation81_spill] sm:$0xff] %v9726_v24 }
 0x7ac   : > { %10636 = vst [vmem:[#allocation44_spill] sm:$0xff] %v9729_v29  ;;  %v4882_v32 = vpop.permute.xlu1 %4881 }
 0x7ad   : > { %v9732_v62 = vmul.f32 %v9668_v31, %v4882_v32  ;;  %v4886_v57 = vpop.permute.xlu0 %4885 }
 0x7ae   : > { %v9735_v33 = vmul.f32 %v9668_v31, %v4886_v57 }
 0x7af   : > { %10637 = vst [vmem:[#allocation71_spill] sm:$0xff] %v9732_v62 }
 0x7b0   : > { %10638 = vst [vmem:[#allocation47_spill] sm:$0xff] %v9735_v33  ;;  %v4890_v10 = vpop.permute.xlu1 %4889 }
 0x7b1   : > { %v4894_v23 = vpop.permute.xlu0 %4893  ;;  %v9738_v39 = vmul.f32 %v9668_v31, %v4890_v10 }
 0x7b2   : > { %v9741_v40 = vmul.f32 %v9668_v31, %v4894_v23 }
 0x7b3   : > { %10639 = vst [vmem:[#allocation82_spill] sm:$0xff] %v9738_v39 }
 0x7b4   : > { %10640 = vst [vmem:[#allocation77_spill] sm:$0xff] %v9741_v40 }
 0x7eb   : > { %v6710_v24 = vpop.f32.mrf.mxu1 }
 0x7ec   : > { %v3748_v29 = vadd.f32 %v6710_v24, %v9624_v51 }
 0x7ed   : > { %v3742_v42 = vpop.f32.mrf.mxu1 }
 0x7ee   : > { %v3743_v11 = vadd.f32 %v3742_v42, %v9624_v51 }
 0x7f0   : > { %6822 = vmatprep.mubr.msk.f32.mxu1 %vm3535_vm6, %v3743_v11 }
 0x7f1   : > { %6823 = vmatmul.mubr.msk.f32.gmra.mxu1 %vm3535_vm6, %v3748_v29 }
 0x7f3   : > { %v6713_v32 = vpop.f32.mrf.mxu1 }
 0x7f4   : > { %v3758_v10 = vadd.f32 %v6713_v32, %v9624_v51 }
 0x7f5   : > { %v3752_v57 = vpop.f32.mrf.mxu1 }
 0x7f6   : > { %v3753_v62 = vadd.f32 %v3752_v57, %v9624_v51 }
 0x7f8   : > { %v6716_v39 = vpop.f32.mrf.mxu1  ;;  %6825 = vmatprep.mubr.msk.f32.mxu1 %vm3535_vm6, %v3753_v62 }
 0x7f9   : > { %6826 = vmatmul.mubr.msk.f32.gmra.mxu1 %vm3535_vm6, %v3758_v10  ;;  %v3768_v24 = vadd.f32 %v6716_v39, %v9624_v51 }
 0x7fa   : > { %v3762_v23 = vpop.f32.mrf.mxu1 }
 0x7fb   : > { %v3763_v42 = vadd.f32 %v3762_v23, %v9624_v51 }
 0x7fd   : > { %6828 = vmatprep.mubr.msk.f32.mxu1 %vm3535_vm6, %v3763_v42 }
 0x7fe   : > { %6829 = vmatmul.mubr.msk.f32.gmra.mxu1 %vm3535_vm6, %v3768_v24 }
 0x800   : > { %v6719_v29 = vpop.f32.mrf.mxu1 }
 0x801   : > { %v3778_v32 = vadd.f32 %v6719_v29, %v9624_v51 }
 0x802   : > { %v3772_v11 = vpop.f32.mrf.mxu1 }
 0x803   : > { %v3773_v57 = vadd.f32 %v3772_v11, %v9624_v51 }
 0x804   : > { %v6722_v40 = vpop.f32.mrf.mxu1 }
 0x805   : > { %6831 = vmatprep.mubr.msk.f32.mxu1 %vm3535_vm6, %v3773_v57  ;;  %v3788_v39 = vadd.f32 %v6722_v40, %v9624_v51 }
 0x806   : > { %v3782_v62 = vpop.f32.mrf.mxu1  ;;  %6832 = vmatmul.mubr.msk.f32.gmra.mxu1 %vm3535_vm6, %v3778_v32 }
 0x807   : > { %v3783_v10 = vadd.f32 %v3782_v62, %v9624_v51 }
 0x808   : > { %v6725_v23 = vpop.f32.mrf.mxu1 }
 0x809   : > { %6834 = vmatprep.mubr.msk.f32.mxu1 %vm3535_vm6, %v3783_v10  ;;  %v3798_v29 = vadd.f32 %v6725_v23, %v9624_v51 }
 0x80a   : > { %v3792_v42 = vpop.f32.mrf.mxu1  ;;  %6835 = vmatmul.mubr.msk.f32.gmra.mxu1 %vm3535_vm6, %v3788_v39 }
 0x80b   : > { %v3793_v24 = vadd.f32 %v3792_v42, %v9624_v51 }
 0x80c   : > { %v6728_v11 = vpop.f32.mrf.mxu1 }
 0x80d   : > { %6837 = vmatprep.mubr.msk.f32.mxu1 %vm3535_vm6, %v3793_v24  ;;  %v3808_v40 = vadd.f32 %v6728_v11, %v9624_v51 }
 0x80e   : > { %v3802_v57 = vpop.f32.mrf.mxu1  ;;  %6838 = vmatmul.mubr.msk.f32.gmra.mxu1 %vm3535_vm6, %v3798_v29 }
 0x80f   : > { %v3803_v32 = vadd.f32 %v3802_v57, %v9624_v51 }
 0x811   : > { %v6731_v62 = vpop.f32.mrf.mxu1  ;;  %6840 = vmatprep.mubr.msk.f32.mxu1 %vm3535_vm6, %v3803_v32 }
 0x812   : > { %6841 = vmatmul.mubr.msk.f32.gmra.mxu1 %vm3535_vm6, %v3808_v40  ;;  %v3818_v23 = vadd.f32 %v6731_v62, %v9624_v51 }
 0x813   : > { %v3812_v10 = vpop.f32.mrf.mxu1 }
 0x814   : > { %v3813_v39 = vadd.f32 %v3812_v10, %v9624_v51 }
 0x815   : > { %v6734_v42 = vpop.f32.mrf.mxu1 }
 0x816   : > { %6843 = vmatprep.mubr.msk.f32.mxu1 %vm3535_vm6, %v3813_v39  ;;  %v3828_v11 = vadd.f32 %v6734_v42, %v9624_v51 }
 0x817   : > { %v3822_v24 = vpop.f32.mrf.mxu1  ;;  %6844 = vmatmul.mubr.msk.f32.gmra.mxu1 %vm3535_vm6, %v3818_v23 }
 0x818   : > { %v3823_v29 = vadd.f32 %v3822_v24, %v9624_v51 }
 0x819   : > { %v6737_v57 = vpop.f32.mrf.mxu1 }
 0x81a   : > { %6846 = vmatprep.mubr.msk.f32.mxu1 %vm3535_vm6, %v3823_v29  ;;  %v3838_v62 = vadd.f32 %v6737_v57, %v9624_v51 }
 0x81b   : > { %v3832_v32 = vpop.f32.mrf.mxu1  ;;  %6847 = vmatmul.mubr.msk.f32.gmra.mxu1 %vm3535_vm6, %v3828_v11 }
 0x81c   : > { %v3833_v40 = vadd.f32 %v3832_v32, %v9624_v51  ;;  %v6754_v32 = vpop.f32.mrf.mxu0 }
 0x81d   : > { %v6740_v10 = vpop.f32.mrf.mxu1 }
 0x81e   : > { %6849 = vmatprep.mubr.msk.f32.mxu1 %vm3535_vm6, %v3833_v40  ;;  %v3848_v42 = vadd.f32 %v6740_v10, %v9624_v51  ;;  %v4967_v40 = vpop.permute.xlu1 %4966 }
 0x81f   : > { %v3842_v39 = vpop.f32.mrf.mxu1  ;;  %6850 = vmatmul.mubr.msk.f32.gmra.mxu1 %vm3535_vm6, %v3838_v62  ;;  %v9794_v62 = vld [vmem:[%s10361_s5 + $0x19] ss:$0 sm:$0xff] }
 0x820   : > { %v3843_v23 = vadd.f32 %v3842_v39, %v9624_v51  ;;  %v4023_v39 = vpop.f32.mrf.mxu0 }
 0x821   : > { %v6743_v24 = vpop.f32.mrf.mxu1 }
 0x822   : > { %6852 = vmatprep.mubr.msk.f32.mxu1 %vm3535_vm6, %v3843_v23  ;;  %v3858_v57 = vadd.f32 %v6743_v24, %v9624_v51  ;;  %v9799_v23 = vld [vmem:[%s10360_s4 + $0xb8] ss:$0 sm:$0xff]  ;;  %v9804_v24 = vld [vmem:[%s10360_s4 + $0xba] ss:$0 sm:$0xff]  ;;  %v4975_v30 = vpop.permute.xlu1 %4974  ;;  %v6757_v26 = vpop.f32.mrf.mxu0 }
 0x823   : > { %v3852_v29 = vpop.f32.mrf.mxu1  ;;  %6853 = vmatmul.mubr.msk.f32.gmra.mxu1 %vm3535_vm6, %v3848_v42  ;;  %v5097_v43 = vmul.f32 %v9804_v24, %v4967_v40 }
 0x824   : > { %v3853_v11 = vadd.f32 %v3852_v29, %v9624_v51  ;;  %v4971_v29 = vpop.permute.xlu0 %4970  ;;  %v4033_v17 = vpop.f32.mrf.mxu0 }
 0x825   : > { %v5098_v56 = vmul.f32 %v9804_v24, %v4971_v29 }
 0x826   : > { %6855 = vmatprep.mubr.msk.f32.mxu1 %vm3535_vm6, %v3853_v11  ;;  %v4704_v11 = vmul.f32 %v9799_v23, %v9423_v9  ;;  %v4979_v21 = vpop.permute.xlu1 %4978 }
 0x827   : > { %6856 = vmatmul.mubr.msk.f32.gmra.mxu1 %vm3535_vm6, %v3858_v57  ;;  %v4901_v57 = vmul.f32 %v9668_v31, %v9640_v34 }
 0x83b   : > { %v6812_v10 = vpop.f32.mrf.mxu1 }
 0x83c   : > { %v4353_v42 = vadd.f32 %v6812_v10, %v6754_v32  ;;  %v4703_v32 = vmul.f32 %v9799_v23, %v9366_v0  ;;  %v4900_v10 = vmul.f32 %v9668_v31, %v9643_v48  ;;  %v4706_v0 = vmul.f32 %v9799_v23, %v9419_v13 }
 0x83d   : > { %v4347_v51 = vpop.f32.mrf.mxu1  ;;  %v4903_v48 = vmul.f32 %v9668_v31, %v9648_v25  ;;  %v6760_v25 = vpop.f32.mrf.mxu0 }
 0x83e   : > { %v4507_v33 = vadd.f32 %v4353_v42, %v9794_v62  ;;  %v4348_v6 = vadd.f32 %v4347_v51, %v4023_v39 }
 0x840   : > { %v4736_v1 = vadd.f32 %v4704_v11, %v4507_v33  ;;  %v4506_v28 = vadd.f32 %v4348_v6, %v9794_v62 }
 0x842   : > { %v4735_v9 = vadd.f32 %v4703_v32, %v4506_v28  ;;  %v4933_v34 = vadd.f32 %v4901_v57, %v4736_v1  ;;  %v4705_v1 = vmul.f32 %v9799_v23, %v9398_v20 }
 0x843   : > { %v6815_v38 = vpop.f32.mrf.mxu1 }
 0x844   : > { %v4932_v42 = vadd.f32 %v4900_v10, %v4735_v9  ;;  %v5130_v39 = vadd.f32 %v5098_v56, %v4933_v34  ;;  %v4363_v51 = vadd.f32 %v6815_v38, %v6757_v26  ;;  %v4902_v38 = vmul.f32 %v9668_v31, %v9646_v37  ;;  %v4987_v34 = vpop.permute.xlu1 %4986 }
 0x845   : > { %v4357_v6 = vpop.f32.mrf.mxu1  ;;  %v5100_v26 = vmul.f32 %v9804_v24, %v4979_v21  ;;  %v4708_v21 = vmul.f32 %v9799_v23, %v9437_v45  ;;  %v4905_v37 = vmul.f32 %v9668_v31, %v9655_v5 }
 0x846   : > { %v5129_v33 = vadd.f32 %v5097_v43, %v4932_v42  ;;  %v5911_v29 = vmul.f32 -1.442695, %v5130_v39  ;;  %v4509_v28 = vadd.f32 %v4363_v51, %v9794_v62  ;;  %v4358_v11 = vadd.f32 %v4357_v6, %v4033_v17  ;;  %v4043_v42 = vpop.f32.mrf.mxu0 }
 0x847   : > { %v5099_v43 = vmul.f32 %v9804_v24, %v4975_v30 }
 0x848   : > { %v5910_v56 = vmul.f32 -1.442695, %v5129_v33  ;;  %6899 = vpow2.f32 %v5911_v29  ;;  %v4738_v13 = vadd.f32 %v4706_v0, %v4509_v28  ;;  %v4508_v40 = vadd.f32 %v4358_v11, %v9794_v62  ;;  %v4983_v28 = vpop.permute.xlu0 %4982 }
 0x849   : > { %v4904_v33 = vmul.f32 %v9668_v31, %v9652_v54  ;;  %v5102_v29 = vmul.f32 %v9804_v24, %v4987_v34 }
 0x84a   : > { %6901 = vpow2.f32 %v5910_v56  ;;  %v4737_v57 = vadd.f32 %v4705_v1, %v4508_v40  ;;  %v4935_v32 = vadd.f32 %v4903_v48, %v4738_v13  ;;  %v4707_v48 = vmul.f32 %v9799_v23, %v9443_v8  ;;  %v6763_v1 = vpop.f32.mrf.mxu0 }
 0x84b   : > { %v6818_v17 = vpop.f32.mrf.mxu1  ;;  %v5101_v56 = vmul.f32 %v9804_v24, %v4983_v28 }
 0x84c   : > { %v4934_v10 = vadd.f32 %v4902_v38, %v4737_v57  ;;  %v5132_v9 = vadd.f32 %v5100_v26, %v4935_v32  ;;  %v4373_v20 = vadd.f32 %v6818_v17, %v6760_v25  ;;  %v4710_v57 = vmul.f32 %v9799_v23, %v9470_v46 }
 0x84d   : > { %v4367_v39 = vpop.f32.mrf.mxu1  ;;  %v4907_v32 = vmul.f32 %v9668_v31, %v9660_v59  ;;  %v4709_v46 = vmul.f32 %v9799_v23, %v9475_v16  ;;  %v4906_v59 = vmul.f32 %v9668_v31, %v9658_v49 }
 0x84e   : > { %v5131_v51 = vadd.f32 %v5099_v43, %v4934_v10  ;;  %v5913_v0 = vmul.f32 -1.442695, %v5132_v9  ;;  %v4511_v6 = vadd.f32 %v4373_v20, %v9794_v62  ;;  %v4368_v30 = vadd.f32 %v4367_v39, %v4043_v42  ;;  %v4995_v43 = vpop.permute.xlu1 %4994  ;;  %v4053_v10 = vpop.f32.mrf.mxu0 }
 0x84f   : > { %v5104_v39 = vmul.f32 %v9804_v24, %v4995_v43 }
 0x850   : > { %v5912_v11 = vmul.f32 -1.442695, %v5131_v51  ;;  %6903 = vpow2.f32 %v5913_v0  ;;  %v4740_v45 = vadd.f32 %v4708_v21, %v4511_v6  ;;  %v4510_v5 = vadd.f32 %v4368_v30, %v9794_v62  ;;  %v4991_v30 = vpop.permute.xlu0 %4990 }
 0x851   : > { %v5103_v28 = vmul.f32 %v9804_v24, %v4991_v30 }
 0x852   : > { %6905 = vpow2.f32 %v5912_v11  ;;  %v4739_v38 = vadd.f32 %v4707_v48, %v4510_v5  ;;  %v4937_v26 = vadd.f32 %v4905_v37, %v4740_v45 }
 0x853   : > { %v6821_v13 = vpop.f32.mrf.mxu1 }
 0x854   : > { %v5134_v40 = vadd.f32 %v5102_v29, %v4937_v26  ;;  %v4936_v8 = vadd.f32 %v4904_v33, %v4739_v38  ;;  %v4383_v25 = vadd.f32 %v6821_v13, %v6763_v1 }
 0x855   : > { %v6900_v54 = vpop.eup %6899  ;;  %v4377_v17 = vpop.f32.mrf.mxu1 }
 0x856   : > { %v5258_v9 = vadd.f32 1.0, %v6900_v54  ;;  %v5915_v20 = vmul.f32 -1.442695, %v5134_v40  ;;  %v5133_v34 = vadd.f32 %v5101_v56, %v4936_v8  ;;  %v4513_v42 = vadd.f32 %v4383_v25, %v9794_v62 }
 0x857   : > { %v6902_v21 = vpop.eup %6901  ;;  %v4378_v37 = vadd.f32 %v4377_v17, %v4053_v10 }
 0x858   : > { %v5257_v51 = vadd.f32 1.0, %v6902_v21  ;;  %6907 = vrcp.f32 %v5258_v9  ;;  %v5914_v0 = vmul.f32 -1.442695, %v5133_v34  ;;  %v4742_v6 = vadd.f32 %v4710_v57, %v4513_v42 }
 0x859   : > { %6909 = vpow2.f32 %v5915_v20  ;;  %v4512_v48 = vadd.f32 %v4378_v37, %v9794_v62  ;;  %v6766_v37 = vpop.f32.mrf.mxu0 }
 0x85a   : > { %6911 = vrcp.f32 %v5257_v51  ;;  %v4939_v33 = vadd.f32 %v4907_v32, %v4742_v6  ;;  %v5003_v51 = vpop.permute.xlu1 %5002 }
 0x85b   : > { %6913 = vpow2.f32 %v5914_v0  ;;  %v4741_v29 = vadd.f32 %v4709_v46, %v4512_v48  ;;  %v4999_v0 = vpop.permute.xlu0 %4998 }
 0x85c   : > { %v5136_v11 = vadd.f32 %v5104_v39, %v4939_v33  ;;  %v4063_v39 = vpop.f32.mrf.mxu0 }
 0x85d   : > { %v6904_v45 = vpop.eup %6903  ;;  %v4938_v5 = vadd.f32 %v4906_v59, %v4741_v29 }
 0x85e   : > { %v5260_v1 = vadd.f32 1.0, %v6904_v45  ;;  %v5917_v38 = vmul.f32 -1.442695, %v5136_v11  ;;  %v6769_v6 = vpop.f32.mrf.mxu0  ;;  %v9862_v30 = vpop.permute.xlu1 %5010 }
 0x85f   : > { %v6906_v26 = vpop.eup %6905  ;;  %v5135_v56 = vadd.f32 %v5103_v28, %v4938_v5  ;;  %v9864_v59 = vpop.permute.xlu0 %5006 }
 0x860   : > { %v5259_v16 = vadd.f32 1.0, %v6906_v26  ;;  %6915 = vrcp.f32 %v5260_v1  ;;  %v4073_v46 = vpop.f32.mrf.mxu0 }
 0x861   : > { %6917 = vpow2.f32 %v5917_v38  ;;  %v5916_v49 = vmul.f32 -1.442695, %v5135_v56 }
 0x862   : > { %6919 = vrcp.f32 %v5259_v16  ;;  %v6772_v48 = vpop.f32.mrf.mxu0  ;;  %v9866_v33 = vpop.permute.xlu1 %5018 }
 0x863   : > { %6921 = vpow2.f32 %v5916_v49  ;;  %v9868_v29 = vpop.permute.xlu0 %5014 }
 0x864   : > { %v9870_v28 = vpop.f32.mrf.mxu0 }
 0x865   : > { %v6908_v31 = vpop.eup %6907 }
 0x866   : > { %v6910_v13 = vpop.eup %6909  ;;  %5387 = vrot.lane.b32.xlu1 %v6908_v31, %s7104_s19  ;;  %v9872_v11 = vpop.permute.xlu1 %5026 }
 0x867   : > { %v6912_v40 = vpop.eup %6911  ;;  %v5262_v8 = vadd.f32 1.0, %v6910_v13  ;;  %v9874_v45 = vpop.f32.mrf.mxu0 }
 0x868   : > { %v6914_v25 = vpop.eup %6913  ;;  %5385 = vrot.lane.b32.xlu0 %v6912_v40, %s7104_s19  ;;  %v9876_v5 = vpop.permute.xlu0 %5022 }
 0x869   : > { %6923 = vrcp.f32 %v5262_v8  ;;  %v5261_v43 = vadd.f32 1.0, %v6914_v25  ;;  %v9878_v1 = vpop.f32.mrf.mxu0  ;;  %v4712_v25 = vmul.f32 %v9799_v23, %v9495_v35  ;;  %v4714_v35 = vmul.f32 %v9799_v23, %v9526_v3 }
 0x86a   : > { %v9880_v38 = vpop.permute.xlu1 %5034  ;;  %v4716_v3 = vmul.f32 %v9799_v23, %v9553_v12 }
 0x86b   : > { %6925 = vrcp.f32 %v5261_v43  ;;  %v9884_v56 = vpop.f32.mrf.mxu0 }
 0x86c   : > { %v9882_v26 = vpop.permute.xlu0 %5030 }
 0x86d   : > { %v6916_v54 = vpop.eup %6915  ;;  %v9888_v31 = vpop.f32.mrf.mxu0 }
 0x86e   : > { %v6918_v57 = vpop.eup %6917  ;;  %5391 = vrot.lane.b32.xlu1 %v6916_v54, %s7104_s19  ;;  %v9886_v16 = vpop.permute.xlu1 %5042 }
 0x86f   : > { %v6920_v32 = vpop.eup %6919  ;;  %v5264_v17 = vadd.f32 1.0, %v6918_v57  ;;  %v4711_v57 = vmul.f32 %v9799_v23, %v9499_v44  ;;  %v4715_v44 = vmul.f32 %v9799_v23, %v9555_v19  ;;  %v9924_v19 = vmul.f32 %v9799_v23, %v9585_v50 }
 0x870   : > { %v6922_v10 = vpop.eup %6921  ;;  %5389 = vrot.lane.b32.xlu0 %v6920_v32, %s7104_s19  ;;  %v9890_v40 = vpop.permute.xlu0 %5038  ;;  %v9939_v50 = vmul.f32 %v9799_v23, %v9600_v41  ;;  %v9954_v41 = vmul.f32 %v9799_v23, %v9605_v4  ;;  %v9969_v4 = vmul.f32 %v9799_v23, %v9613_v2 }
 0x871   : > { %6927 = vrcp.f32 %v5264_v17  ;;  %v5263_v9 = vadd.f32 1.0, %v6922_v10 }
 0x872   : > { %v9897_v32 = vpop.permute.xlu1 %5050 }
 0x873   : > { %6929 = vrcp.f32 %v5263_v9  ;;  %v9900_v9 = vpop.f32.mrf.mxu0 }
 0x876   : > { %v6924_v20 = vpop.eup %6923 }
 0x877   : > { %5395 = vrot.lane.b32.xlu1 %v6924_v20, %s7104_s19  ;;  %v5106_v20 = vmul.f32 %v9804_v24, %v5003_v51 }
 0x878   : > { %v6926_v34 = vpop.eup %6925 }
 0x879   : > { %5393 = vrot.lane.b32.xlu0 %v6926_v34, %s7104_s19 }
 0x87e   : > { %v6928_v42 = vpop.eup %6927 }
 0x87f   : > { %5399 = vrot.lane.b32.xlu1 %v6928_v42, %s7104_s19 }
 0x880   : > { %v6930_v21 = vpop.eup %6929 }
 0x881   : > { %5397 = vrot.lane.b32.xlu0 %v6930_v21, %s7104_s19  ;;  %v4713_v21 = vmul.f32 %v9799_v23, %v9529_v7  ;;  %v9920_v7 = vmul.f32 %v9799_v23, %v9581_v47  ;;  %v9935_v47 = vmul.f32 %v9799_v23, %v9593_v55 }
 0x8b1   : > { %v6824_v49 = vpop.f32.mrf.mxu1 }
 0x8b2   : > { %v4393_v13 = vadd.f32 %v6824_v49, %v6766_v37  ;;  %v9910_v37 = vpop.permute.xlu0 %5046  ;;  %v5105_v49 = vmul.f32 %v9804_v24, %v4999_v0  ;;  %v9928_v0 = vmul.f32 %v9799_v23, %v9596_v58  ;;  %v9943_v58 = vmul.f32 %v9799_v23, %v9603_v53 }
 0x8b3   : > { %v4387_v8 = vpop.f32.mrf.mxu1  ;;  %v9958_v53 = vmul.f32 %v9799_v23, %v9609_v18  ;;  %v9973_v18 = vmul.f32 %v9799_v23, %v9615_v14  ;;  %v9988_v14 = vmul.f32 %v9799_v23, %v9619_v15  ;;  %v5110_v15 = vmul.f32 %v9804_v24, %v9866_v33 }
 0x8b4   : > { %v4515_v43 = vadd.f32 %v4393_v13, %v9794_v62  ;;  %v4388_v54 = vadd.f32 %v4387_v8, %v4063_v39  ;;  %v10016_v33 = vmul.f32 %v9804_v24, %v9880_v38 }
 0x8b6   : > { %v4744_v17 = vadd.f32 %v4712_v25, %v4515_v43  ;;  %v4514_v10 = vadd.f32 %v4388_v54, %v9794_v62 }
 0x8b8   : > { %v4941_v34 = vadd.f32 %v9675_v60, %v4744_v17  ;;  %v4743_v42 = vadd.f32 %v4711_v57, %v4514_v10  ;;  %v9914_v60 = vpop.f32.mrf.mxu0  ;;  %v9947_v57 = vmul.f32 %v9799_v23, %v9607_v63  ;;  %v9962_v63 = vmul.f32 %v9799_v23, %v9611_v61 }
 0x8b9   : > { %v6827_v39 = vpop.f32.mrf.mxu1 }
 0x8ba   : > { %v5138_v13 = vadd.f32 %v5106_v20, %v4941_v34  ;;  %v4940_v51 = vadd.f32 %v9672_v27, %v4743_v42  ;;  %v4403_v8 = vadd.f32 %v6827_v39, %v6769_v6  ;;  %v9930_v27 = vpop.permute.xlu1 %5058  ;;  %v9950_v55 = vpop.f32.mrf.mxu0 }
 0x8bb   : > { %v4397_v25 = vpop.f32.mrf.mxu1  ;;  %v5055_v34 = vpop.permute.xlu0 %5054 }
 0x8bc   : > { %v5919_v6 = vmul.f32 -1.442695, %v5138_v13  ;;  %v5137_v43 = vadd.f32 %v5105_v49, %v4940_v51  ;;  %v4517_v54 = vadd.f32 %v4403_v8, %v9794_v62  ;;  %v4398_v12 = vadd.f32 %v4397_v25, %v4073_v46  ;;  %v9984_v8 = vpop.f32.mrf.mxu0  ;;  %v10641_v25 = vld [vmem:[#allocation69_spill] sm:$0xff] }
 0x8be   : > { %6931 = vpow2.f32 %v5919_v6  ;;  %v5918_v17 = vmul.f32 -1.442695, %v5137_v43  ;;  %v4746_v10 = vadd.f32 %v4714_v35, %v4517_v54  ;;  %v4516_v46 = vadd.f32 %v4398_v12, %v9794_v62  ;;  %v6830_v20 = vpop.f32.mrf.mxu1  ;;  %v10642_v43 = vld [vmem:[#allocation85_spill] sm:$0xff]  ;;  %v10643_v54 = vld [vmem:[#allocation79_spill] sm:$0xff] }
 0x8bf   : > { %v4413_v42 = vadd.f32 %v6830_v20, %v6772_v48  ;;  %v5108_v35 = vmul.f32 %v9804_v24, %v9862_v30  ;;  %v9979_v30 = vmul.f32 %v9799_v23, %v9617_v52 }
 0x8c0   : > { %6933 = vpow2.f32 %v5918_v17  ;;  %v4943_v39 = vadd.f32 %v9681_v22, %v4746_v10  ;;  %v4745_v49 = vadd.f32 %v4713_v21, %v4516_v46  ;;  %v4407_v13 = vpop.f32.mrf.mxu1  ;;  %v5107_v22 = vmul.f32 %v9804_v24, %v9864_v59  ;;  %v5067_v21 = vpop.permute.xlu1 %5066 }
 0x8c1   : > { %v4519_v61 = vadd.f32 %v4413_v42, %v9794_v62  ;;  %v4408_v48 = vadd.f32 %v4407_v13, %v9870_v28  ;;  %v9992_v28 = vmul.f32 %v9799_v23, %v10641_v25  ;;  %v9997_v59 = vmul.f32 %v9799_v23, %v10642_v43  ;;  %v5063_v46 = vpop.permute.xlu0 %5062 }
 0x8c2   : > { %v5140_v51 = vadd.f32 %v5108_v35, %v4943_v39  ;;  %v4942_v2 = vadd.f32 %v9678_v36, %v4745_v49  ;;  %v10001_v36 = vmul.f32 %v9799_v23, %v10643_v54  ;;  %v5109_v10 = vmul.f32 %v9804_v24, %v9868_v29 }
 0x8c3   : > { %v4748_v6 = vadd.f32 %v4716_v3, %v4519_v61  ;;  %v4518_v52 = vadd.f32 %v4408_v48, %v9794_v62  ;;  %v10644_v3 = vld [vmem:[#allocation60_spill] sm:$0xff]  ;;  %v5112_v35 = vmul.f32 %v9804_v24, %v9872_v11  ;;  %v5111_v39 = vmul.f32 %v9804_v24, %v9876_v5  ;;  %v10012_v61 = vpop.f32.mrf.mxu0 }
 0x8c4   : > { %v5921_v12 = vmul.f32 -1.442695, %v5140_v51  ;;  %v5139_v17 = vadd.f32 %v5107_v22, %v4942_v2  ;;  %v10645_v48 = vld [vmem:[#allocation88_spill] sm:$0xff]  ;;  %v10022_v11 = vmul.f32 %v9804_v24, %v9886_v16  ;;  %v10026_v5 = vmul.f32 %v9804_v24, %v9882_v26  ;;  %v5075_v2 = vpop.permute.xlu1 %5074 }
 0x8c5   : > { %v4945_v20 = vadd.f32 %v10644_v3, %v4748_v6  ;;  %v4747_v42 = vadd.f32 %v4715_v44, %v4518_v52  ;;  %v10030_v51 = vmul.f32 %v9804_v24, %v9890_v40  ;;  %v10036_v16 = vmul.f32 %v9804_v24, %v9897_v32 }
 0x8c6   : > { %6935 = vpow2.f32 %v5921_v12  ;;  %v5920_v49 = vmul.f32 -1.442695, %v5139_v17  ;;  %v6833_v13 = vpop.f32.mrf.mxu1  ;;  %v10040_v26 = vmul.f32 %v9804_v24, %v9930_v27  ;;  %v10044_v40 = vmul.f32 %v9804_v24, %v9910_v37  ;;  %v10049_v17 = vpop.f32.mrf.mxu0 }
 0x8c7   : > { %v5142_v29 = vadd.f32 %v5110_v15, %v4945_v20  ;;  %v4944_v22 = vadd.f32 %v10645_v48, %v4747_v42  ;;  %v4423_v44 = vadd.f32 %v6833_v13, %v9874_v45  ;;  %v10047_v43 = vmul.f32 %v9804_v24, %v5055_v34 }
 0x8c8   : > { %6937 = vpow2.f32 %v5920_v49  ;;  %v4417_v38 = vpop.f32.mrf.mxu1  ;;  %v10054_v27 = vmul.f32 %v9804_v24, %v5067_v21  ;;  %v10057_v37 = vmul.f32 %v9804_v24, %v5063_v46  ;;  %v10646_v49 = vld [vmem:[#allocation64_spill] sm:$0xff]  ;;  %v10064_v48 = vmul.f32 %v9804_v24, %v5075_v2  ;;  %v5083_v21 = vpop.permute.xlu1 %5082 }
 0x8c9   : > { %v5923_v25 = vmul.f32 -1.442695, %v5142_v29  ;;  %v5141_v6 = vadd.f32 %v5109_v10, %v4944_v22  ;;  %v4521_v52 = vadd.f32 %v4423_v44, %v9794_v62  ;;  %v4418_v45 = vadd.f32 %v4417_v38, %v9878_v1  ;;  %v5071_v1 = vpop.permute.xlu0 %5070  ;;  %v10067_v38 = vpop.f32.mrf.mxu0 }
 0x8ca   : > { %v6836_v54 = vpop.f32.mrf.mxu1  ;;  %v10076_v2 = vmul.f32 %v9804_v24, %v5071_v1 }
 0x8cb   : > { %v6932_v12 = vpop.eup %6931  ;;  %6939 = vpow2.f32 %v5923_v25  ;;  %v5922_v15 = vmul.f32 -1.442695, %v5141_v6  ;;  %v4750_v32 = vadd.f32 %v9920_v7, %v4521_v52  ;;  %v4520_v10 = vadd.f32 %v4418_v45, %v9794_v62  ;;  %v10647_v25 = vld [vmem:[#allocation61_spill] sm:$0xff] }
 0x8cc   : > { %v5266_v3 = vadd.f32 1.0, %v6932_v12  ;;  %v4433_v34 = vadd.f32 %v6836_v54, %v9884_v56  ;;  %v4427_v20 = vpop.f32.mrf.mxu1 }
 0x8cd   : > { %v6934_v42 = vpop.eup %6933  ;;  %6941 = vpow2.f32 %v5922_v15  ;;  %v4947_v13 = vadd.f32 %v10646_v49, %v4750_v32  ;;  %v4749_v29 = vadd.f32 %v9924_v19, %v4520_v10  ;;  %v4428_v7 = vadd.f32 %v4427_v20, %v9888_v31  ;;  %v5079_v12 = vpop.permute.xlu0 %5078 }
 0x8ce   : > { %6943 = vrcp.f32 %v5266_v3  ;;  %v5265_v22 = vadd.f32 1.0, %v6934_v42  ;;  %v4523_v46 = vadd.f32 %v4433_v34, %v9794_v62  ;;  %v6839_v44 = vpop.f32.mrf.mxu1  ;;  %v10073_v31 = vmul.f32 %v9804_v24, %v5083_v21  ;;  %v10086_v49 = vpop.f32.mrf.mxu0 }
 0x8cf   : > { %v5144_v56 = vadd.f32 %v5112_v35, %v4947_v13  ;;  %v4946_v6 = vadd.f32 %v10647_v25, %v4749_v29  ;;  %v4522_v52 = vadd.f32 %v4428_v7, %v9794_v62  ;;  %v4443_v19 = vadd.f32 %v6839_v44, %v9900_v9  ;;  %v10648_v9 = vld [vmem:[#allocation41_spill] sm:$0xff]  ;;  %v10090_v29 = vpop.permute.xlu1 %5090 }
 0x8d0   : > { %6945 = vrcp.f32 %v5265_v22  ;;  %v4752_v45 = vadd.f32 %v9935_v47, %v4523_v46  ;;  %v4437_v54 = vpop.f32.mrf.mxu1  ;;  %v10082_v3 = vmul.f32 %v9804_v24, %v5079_v12  ;;  %v10649_v13 = vld [vmem:[#allocation65_spill] sm:$0xff] }
 0x8d1   : > { %v5925_v15 = vmul.f32 -1.442695, %v5144_v56  ;;  %v5143_v32 = vadd.f32 %v5111_v39, %v4946_v6  ;;  %v4751_v35 = vadd.f32 %v9928_v0, %v4522_v52  ;;  %v4525_v10 = vadd.f32 %v4443_v19, %v9794_v62  ;;  %v10650_v25 = vld [vmem:[#allocation73_spill] sm:$0xff] }
 0x8d2   : > { %v4949_v34 = vadd.f32 %v10648_v9, %v4752_v45  ;;  %v4438_v20 = vadd.f32 %v4437_v54, %v9914_v60  ;;  %v6842_v1 = vpop.f32.mrf.mxu1  ;;  %v10099_v54 = vpop.permute.xlu0 %5086 }
 0x8d3   : > { %v6936_v42 = vpop.eup %6935  ;;  %6947 = vpow2.f32 %v5925_v15  ;;  %v5924_v47 = vmul.f32 -1.442695, %v5143_v32  ;;  %v4948_v39 = vadd.f32 %v10649_v13, %v4751_v35  ;;  %v4754_v0 = vadd.f32 %v9939_v50, %v4525_v10  ;;  %v6793_v35 = vpop.f32.mrf.mxu0 }
 0x8d4   : > { %v5268_v7 = vadd.f32 1.0, %v6936_v42  ;;  %v5146_v21 = vadd.f32 %v10016_v33, %v4949_v34  ;;  %v4524_v22 = vadd.f32 %v4438_v20, %v9794_v62  ;;  %v4453_v60 = vadd.f32 %v6842_v1, %v9950_v55  ;;  %v4447_v46 = vpop.f32.mrf.mxu1 }
 0x8d5   : > { %v6938_v44 = vpop.eup %6937  ;;  %6949 = vpow2.f32 %v5924_v47  ;;  %v5145_v56 = vadd.f32 %v10026_v5, %v4948_v39  ;;  %v4951_v6 = vadd.f32 %v10650_v25, %v4754_v0  ;;  %v4448_v52 = vadd.f32 %v4447_v46, %v9984_v8  ;;  %v10651_v8 = vld [vmem:[#allocation43_spill] sm:$0xff] }
 0x8d6   : > { %6951 = vrcp.f32 %v5268_v7  ;;  %v5267_v50 = vadd.f32 1.0, %v6938_v44  ;;  %v5927_v19 = vmul.f32 -1.442695, %v5146_v21  ;;  %v4753_v45 = vadd.f32 %v9943_v58, %v4524_v22  ;;  %v10653_v21 = vld [vmem:[#allocation3_spill] sm:$0xff] }
 0x8d7   : > { %v5926_v33 = vmul.f32 -1.442695, %v5145_v56  ;;  %v5148_v55 = vadd.f32 %v10022_v11, %v4951_v6  ;;  %v4527_v12 = vadd.f32 %v4453_v60, %v9794_v62  ;;  %v4526_v15 = vadd.f32 %v4448_v52, %v9794_v62  ;;  %v6845_v5 = vpop.f32.mrf.mxu1  ;;  %v4153_v56 = vpop.f32.mrf.mxu0  ;;  %v10655_v6 = vld [vmem:[#allocation16_spill] sm:$0xff] }
 0x8d8   : > { %v6940_v32 = vpop.eup %6939  ;;  %6953 = vrcp.f32 %v5267_v50  ;;  %v4950_v10 = vadd.f32 %v10651_v8, %v4753_v45  ;;  %v4463_v9 = vadd.f32 %v6845_v5, %v10012_v61  ;;  %v5388_v58 = vpop.permute.xlu1 %5387  ;;  %v10654_v22 = vmax.f32 %v10653_v21, 0.0  ;;  %v10660_v21 = vld [vmem:[#allocation75_spill] sm:$0xff] }
 0x8d9   : > { %v5270_v34 = vadd.f32 1.0, %v6940_v32  ;;  %6955 = vpow2.f32 %v5927_v19  ;;  %v5929_v20 = vmul.f32 -1.442695, %v5148_v55  ;;  %v4756_v1 = vadd.f32 %v9954_v41, %v4527_v12  ;;  %v4457_v11 = vpop.f32.mrf.mxu1  ;;  %v10652_v41 = vld [vmem:[#allocation70_spill] sm:$0xff] }
 0x8da   : > { %v6942_v42 = vpop.eup %6941  ;;  %6957 = vpow2.f32 %v5926_v33  ;;  %v5147_v47 = vadd.f32 %v10030_v51, %v4950_v10  ;;  %v4755_v61 = vadd.f32 %v9947_v57, %v4526_v15  ;;  %v4529_v13 = vadd.f32 %v4463_v9, %v9794_v62  ;;  %v5386_v44 = vpop.permute.xlu0 %5385  ;;  %v10656_v12 = vld [vmem:[#allocation42_spill] sm:$0xff] }
 0x8db   : > { %v6944_v39 = vpop.eup %6943  ;;  %6959 = vrcp.f32 %v5270_v34  ;;  %v5269_v0 = vadd.f32 1.0, %v6942_v42  ;;  %v4953_v7 = vadd.f32 %v10652_v41, %v4756_v1  ;;  %v5483_v60 = vsel %vm5481_vm7, %v10654_v22, %v5388_v58  ;;  %v6848_v46 = vpop.f32.mrf.mxu1 }
 0x8dc   : > { %6961 = vpow2.f32 %v5929_v20  ;;  %v5928_v25 = vmul.f32 -1.442695, %v5147_v47  ;;  %v4952_v51 = vadd.f32 %v10655_v6, %v4755_v61  ;;  %v4758_v57 = vadd.f32 %v9958_v53, %v4529_v13  ;;  %5516 = vst.msk [vmem:[%s10112_s24 + $0x8] sm:$0xff] %vm5514_vm8, %v5483_v60  ;;  %5403 = vrot.lane.b32.xlu1 %v6944_v39, %s7104_s19  ;;  %v10657_v53 = vld [vmem:[#allocation4_spill] sm:$0xff] }
 0x8dd   : > { %v6946_v52 = vpop.eup %6945  ;;  %6963 = vrcp.f32 %v5269_v0  ;;  %v5150_v50 = vadd.f32 %v10036_v16, %v4953_v7  ;;  %v4458_v19 = vadd.f32 %v4457_v11, %v10049_v17  ;;  %v4473_v45 = vadd.f32 %v6848_v46, %v10067_v38  ;;  %v4467_v33 = vpop.f32.mrf.mxu1 }
 0x8de   : > { %6965 = vpow2.f32 %v5928_v25  ;;  %v5149_v55 = vadd.f32 %v10044_v40, %v4952_v51  ;;  %v4955_v15 = vadd.f32 %v10656_v12, %v4758_v57  ;;  %v10658_v5 = vmax.f32 %v10657_v53, 0.0  ;;  %5401 = vrot.lane.b32.xlu0 %v6946_v52, %s7104_s19  ;;  %v6796_v40 = vpop.f32.mrf.mxu0  ;;  %v10661_v25 = vld [vmem:[#allocation5_spill] sm:$0xff]  ;;  %v10665_v53 = vld [vmem:[#allocation6_spill] sm:$0xff] }
 0x8df   : > { %v5931_v8 = vmul.f32 -1.442695, %v5150_v50  ;;  %v4528_v10 = vadd.f32 %v4458_v19, %v9794_v62  ;;  %v4531_v16 = vadd.f32 %v4473_v45, %v9794_v62  ;;  %v4468_v17 = vadd.f32 %v4467_v33, %v10086_v49  ;;  %v6851_v38 = vpop.f32.mrf.mxu1  ;;  %v10663_v33 = vld [vmem:[#allocation45_spill] sm:$0xff] }
 0x8e0   : > { %v5482_v32 = vsel %vm5481_vm7, %v10658_v5, %v5386_v44  ;;  %v6948_v9 = vpop.eup %6947  ;;  %v10142_v58 = vmul.f32 %v9804_v24, %v10090_v29  ;;  %v5930_v34 = vmul.f32 -1.442695, %v5149_v55  ;;  %v5152_v20 = vadd.f32 %v10040_v26, %v4955_v15  ;;  %v5392_v61 = vpop.permute.xlu1 %5391  ;;  %v10664_v55 = vld [vmem:[#allocation44_spill] sm:$0xff] }
 0x8e1   : > { %5515 = vst.msk [vmem:[%s10112_s24] sm:$0xff] %vm5514_vm8, %v5482_v32  ;;  %v4483_v1 = vadd.f32 %v6851_v38, %v6793_v35  ;;  %v5272_v11 = vadd.f32 1.0, %v6948_v9  ;;  %6967 = vpow2.f32 %v5931_v8  ;;  %v4757_v42 = vadd.f32 %v9962_v63, %v4528_v10  ;;  %v4477_v13 = vpop.f32.mrf.mxu1  ;;  %v10659_v35 = vld [vmem:[#allocation80_spill] sm:$0xff] }
 0x8e2   : > { %v4760_v47 = vadd.f32 %v9969_v4, %v4531_v16  ;;  %v6950_v49 = vpop.eup %6949  ;;  %6969 = vpow2.f32 %v5930_v34  ;;  %v5933_v39 = vmul.f32 -1.442695, %v5152_v20  ;;  %v4530_v0 = vadd.f32 %v4468_v17, %v9794_v62  ;;  %v5390_v60 = vpop.permute.xlu0 %5389 }
 0x8e3   : > { %v4533_v29 = vadd.f32 %v4483_v1, %v9794_v62  ;;  %v6952_v41 = vpop.eup %6951  ;;  %6971 = vrcp.f32 %v5272_v11  ;;  %v5271_v26 = vadd.f32 1.0, %v6950_v49  ;;  %v4954_v7 = vadd.f32 %v10659_v35, %v4757_v42  ;;  %v6854_v63 = vpop.f32.mrf.mxu1 }
 0x8e4   : > { %v4957_v22 = vadd.f32 %v10660_v21, %v4760_v47  ;;  %v4163_v4 = vpop.f32.mrf.mxu0  ;;  %6973 = vpow2.f32 %v5933_v39  ;;  %v4759_v46 = vadd.f32 %v9973_v18, %v4530_v0  ;;  %v10662_v6 = vmax.f32 %v10661_v25, 0.0  ;;  %5407 = vrot.lane.b32.xlu1 %v6952_v41, %s7104_s19 }
 0x8e5   : > { %v4762_v44 = vadd.f32 %v9979_v30, %v4533_v29  ;;  %v6954_v57 = vpop.eup %6953  ;;  %6975 = vrcp.f32 %v5271_v26  ;;  %v5151_v52 = vadd.f32 %v10047_v43, %v4954_v7  ;;  %v4478_v19 = vadd.f32 %v4477_v13, %v4153_v56  ;;  %v4487_v45 = vpop.f32.mrf.mxu1 }
 0x8e6   : > { %v5485_v51 = vsel %vm5481_vm7, %v10662_v6, %v5392_v61  ;;  %v5154_v50 = vadd.f32 %v10054_v27, %v4957_v22  ;;  %v6956_v18 = vpop.eup %6955  ;;  %v4956_v30 = vadd.f32 %v10663_v33, %v4759_v46  ;;  %v4493_v15 = vadd.f32 %v6854_v63, %v6796_v40  ;;  %5405 = vrot.lane.b32.xlu0 %v6954_v57, %s7104_s19  ;;  %v6799_v38 = vpop.f32.mrf.mxu0  ;;  %v10668_v22 = vld [vmem:[#allocation7_spill] sm:$0xff] }
 0x8e7   : > { %5518 = vst.msk [vmem:[%s10112_s24 + $0x18] sm:$0xff] %vm5514_vm8, %v5485_v51  ;;  %v4959_v12 = vadd.f32 %v10664_v55, %v4762_v44  ;;  %v10666_v5 = vmax.f32 %v10665_v53, 0.0  ;;  %v6958_v43 = vpop.eup %6957  ;;  %v5274_v8 = vadd.f32 1.0, %v6956_v18  ;;  %v5932_v10 = vmul.f32 -1.442695, %v5151_v52  ;;  %v6857_v56 = vpop.f32.mrf.mxu1  ;;  %v10671_v52 = vld [vmem:[#allocation8_spill] sm:$0xff] }
 0x8e8   : > { %v5935_v27 = vmul.f32 -1.442695, %v5154_v50  ;;  %v4532_v16 = vadd.f32 %v4478_v19, %v9794_v62  ;;  %v6960_v17 = vpop.eup %6959  ;;  %v5273_v9 = vadd.f32 1.0, %v6958_v43  ;;  %v5153_v40 = vadd.f32 %v10057_v37, %v4956_v30  ;;  %v10667_v37 = vld [vmem:[#allocation81_spill] sm:$0xff]  ;;  %v10673_v55 = vld [vmem:[#allocation71_spill] sm:$0xff] }
 0x8e9   : > { %v5484_v32 = vsel %vm5481_vm7, %v10666_v5, %v5390_v60  ;;  %v5156_v34 = vadd.f32 %v10064_v48, %v4959_v12  ;;  %v4535_v20 = vadd.f32 %v4493_v15, %v9794_v62  ;;  %v6962_v1 = vpop.eup %6961  ;;  %6977 = vrcp.f32 %v5274_v8  ;;  %v5396_v61 = vpop.permute.xlu1 %5395  ;;  %5411 = vrot.lane.b32.xlu1 %v6960_v17, %s7104_s19  ;;  %v10674_v15 = vld [vmem:[#allocation77_spill] sm:$0xff]  ;;  %v10675_v5 = vld [vmem:[#allocation84_spill] sm:$0xff] }
 0x8ea   : > { %5517 = vst.msk [vmem:[%s10112_s24 + $0x10] sm:$0xff] %vm5514_vm8, %v5484_v32  ;;  %v4761_v11 = vadd.f32 %v9988_v14, %v4532_v16  ;;  %v4488_v42 = vadd.f32 %v4487_v45, %v4163_v4  ;;  %v4503_v47 = vadd.f32 %v6857_v56, %v6799_v38  ;;  %v6964_v13 = vpop.eup %6963  ;;  %6979 = vrcp.f32 %v5273_v9  ;;  %v4497_v14 = vpop.f32.mrf.mxu1  ;;  %v10676_v38 = vld [vmem:[#allocation9_spill] sm:$0xff] }
 0x8eb   : > { %v5276_v49 = vadd.f32 1.0, %v6962_v1  ;;  %v5934_v39 = vmul.f32 -1.442695, %v5153_v40  ;;  %v5937_v0 = vmul.f32 -1.442695, %v5156_v34  ;;  %v6966_v29 = vpop.eup %6965  ;;  %6981 = vpow2.f32 %v5932_v10  ;;  %v5394_v35 = vpop.permute.xlu0 %5393  ;;  %5409 = vrot.lane.b32.xlu0 %v6964_v13, %s7104_s19 }
 0x8ec   : > { %v4958_v48 = vadd.f32 %v10667_v37, %v4761_v11  ;;  %v4764_v41 = vadd.f32 %v9992_v28, %v4535_v20  ;;  %v4534_v26 = vadd.f32 %v4488_v42, %v9794_v62  ;;  %v5275_v7 = vadd.f32 1.0, %v6966_v29  ;;  %v4173_v4 = vpop.f32.mrf.mxu0  ;;  %v10670_v28 = vld [vmem:[#allocation47_spill] sm:$0xff]  ;;  %v10678_v20 = vld [vmem:[#allocation10_spill] sm:$0xff] }
 0x8ed   : > { %6983 = vrcp.f32 %v5276_v49  ;;  %v4537_v21 = vadd.f32 %v4503_v47, %v9794_v62  ;;  %v10669_v63 = vmax.f32 %v10668_v22, 0.0  ;;  %v4498_v57 = vadd.f32 %v4497_v14, %v4173_v4  ;;  %v10680_v11 = vld [vmem:[#allocation82_spill] sm:$0xff] }
 0x8ee   : > { %6985 = vpow2.f32 %v5935_v27  ;;  %v5155_v46 = vadd.f32 %v10076_v2, %v4958_v48  ;;  %v4961_v44 = vadd.f32 %v10670_v28, %v4764_v41  ;;  %v4763_v25 = vadd.f32 %v9997_v59, %v4534_v26  ;;  %v6968_v6 = vpop.eup %6967 }
 0x8ef   : > { %v5487_v60 = vsel %vm5481_vm7, %v10669_v63, %v5396_v61  ;;  %6987 = vrcp.f32 %v5275_v7  ;;  %v4766_v51 = vadd.f32 %v10001_v36, %v4537_v21  ;;  %v10672_v50 = vmax.f32 %v10671_v52, 0.0  ;;  %v6970_v45 = vpop.eup %6969 }
 0x8f0   : > { %5520 = vst.msk [vmem:[%s10112_s24 + $0x28] sm:$0xff] %vm5514_vm8, %v5487_v60  ;;  %v5278_v18 = vadd.f32 1.0, %v6968_v6  ;;  %6989 = vpow2.f32 %v5934_v39  ;;  %v5936_v33 = vmul.f32 -1.442695, %v5155_v46  ;;  %v5158_v2 = vadd.f32 %v10073_v31, %v4961_v44  ;;  %v6972_v59 = vpop.eup %6971 }
 0x8f1   : > { %v5486_v19 = vsel %vm5481_vm7, %v10672_v50, %v5394_v35  ;;  %v5277_v30 = vadd.f32 1.0, %v6970_v45  ;;  %6991 = vpow2.f32 %v5937_v0  ;;  %v4960_v12 = vadd.f32 %v10673_v55, %v4763_v25  ;;  %v6974_v53 = vpop.eup %6973  ;;  %v5400_v10 = vpop.permute.xlu1 %5399  ;;  %5415 = vrot.lane.b32.xlu1 %v6972_v59, %s7104_s19  ;;  %v10681_v55 = vld [vmem:[#allocation17_spill] sm:$0xff] }
 0x8f2   : > { %5519 = vst.msk [vmem:[%s10112_s24 + $0x20] sm:$0xff] %vm5514_vm8, %v5486_v19  ;;  %v4963_v36 = vadd.f32 %v10674_v15, %v4766_v51  ;;  %v4733_v32 = vmul.f32 %v9799_v23, %v10675_v5  ;;  %6993 = vrcp.f32 %v5278_v18  ;;  %v5939_v43 = vmul.f32 -1.442695, %v5158_v2  ;;  %v6976_v31 = vpop.eup %6975 }
 0x8f3   : > { %v4536_v8 = vadd.f32 %v4498_v57, %v9794_v62  ;;  %6995 = vrcp.f32 %v5277_v30  ;;  %v5280_v27 = vadd.f32 1.0, %v6974_v53  ;;  %v5157_v16 = vadd.f32 %v10082_v3, %v4960_v12  ;;  %v5398_v40 = vpop.permute.xlu0 %5397  ;;  %5413 = vrot.lane.b32.xlu0 %v6976_v31, %s7104_s19  ;;  %v10683_v53 = vld [vmem:[#allocation18_spill] sm:$0xff] }
 0x8f4   : > { %v5160_v56 = vadd.f32 %v10142_v58, %v4963_v36  ;;  %6997 = vpow2.f32 %v5936_v33  ;;  %v10677_v23 = vmax.f32 %v10676_v38, 0.0  ;;  %v10679_v1 = vmax.f32 %v10678_v20, 0.0 }
 0x8f5   : > { %v4765_v17 = vadd.f32 %v4733_v32, %v4536_v8  ;;  %6999 = vrcp.f32 %v5280_v27  ;;  %v5938_v62 = vmul.f32 -1.442695, %v5157_v16  ;;  %v5127_v58 = vmul.f32 %v9804_v24, %v10099_v54  ;;  %v10685_v8 = vld [vmem:[#allocation19_spill] sm:$0xff]  ;;  %v10687_v16 = vld [vmem:[#allocation20_spill] sm:$0xff] }
 0x8f6   : > { %v5489_v9 = vsel %vm5481_vm7, %v10677_v23, %v5400_v10  ;;  %v5941_v34 = vmul.f32 -1.442695, %v5160_v56  ;;  %v5488_v3 = vsel %vm5481_vm7, %v10679_v1, %v5398_v40  ;;  %7001 = vpow2.f32 %v5939_v43  ;;  %v6978_v47 = vpop.eup %6977  ;;  %v10689_v23 = vld [vmem:[#allocation21_spill] sm:$0xff] }
 0x8f7   : > { %5522 = vst.msk [vmem:[%s10112_s24 + $0x38] sm:$0xff] %vm5514_vm8, %v5489_v9  ;;  %v4962_v42 = vadd.f32 %v10680_v11, %v4765_v17  ;;  %5521 = vst.msk [vmem:[%s10112_s24 + $0x30] sm:$0xff] %vm5514_vm8, %v5488_v3  ;;  %7003 = vpow2.f32 %v5938_v62  ;;  %v6980_v61 = vpop.eup %6979  ;;  %5419 = vrot.lane.b32.xlu1 %v6978_v47, %s7104_s19  ;;  %v10682_v12 = vmax.f32 %v10681_v55, 0.0  ;;  %v10684_v5 = vmax.f32 %v10683_v53, 0.0  ;;  %v10713_v55 = vld [vmem:[#allocation33_spill] sm:$0xff]  ;;  %v10715_v53 = vld [vmem:[#allocation34_spill] sm:$0xff] }
 0x8f8   : > { %7005 = vpow2.f32 %v5941_v34  ;;  %v6982_v49 = vpop.eup %6981  ;;  %5417 = vrot.lane.b32.xlu0 %v6980_v61, %s7104_s19  ;;  %v10686_v10 = vmax.f32 %v10685_v8, 0.0  ;;  %v10688_v56 = vmax.f32 %v10687_v16, 0.0  ;;  %v10690_v9 = vmax.f32 %v10689_v23, 0.0  ;;  %v10691_v34 = vld [vmem:[#allocation22_spill] sm:$0xff]  ;;  %v10695_v61 = vld [vmem:[#allocation24_spill] sm:$0xff]  ;;  %v10717_v8 = vld [vmem:[#allocation35_spill] sm:$0xff] }
 0x8f9   : > { %v5159_v13 = vadd.f32 %v5127_v58, %v4962_v42  ;;  %v5279_v0 = vadd.f32 1.0, %v6982_v49  ;;  %v10692_v20 = vmax.f32 %v10691_v34, 0.0  ;;  %v10693_v58 = vld [vmem:[#allocation23_spill] sm:$0xff]  ;;  %v10719_v16 = vld [vmem:[#allocation36_spill] sm:$0xff]  ;;  %v10721_v23 = vld [vmem:[#allocation37_spill] sm:$0xff] }
 0x8fa   : > { %v6984_v39 = vpop.eup %6983  ;;  %v10694_v11 = vmax.f32 %v10693_v58, 0.0  ;;  %v10723_v34 = vld [vmem:[#allocation38_spill] sm:$0xff]  ;;  %v10725_v58 = vld [vmem:[#allocation39_spill] sm:$0xff] }
 0x8fb   : > { %v5940_v29 = vmul.f32 -1.442695, %v5159_v13  ;;  %v6986_v37 = vpop.eup %6985  ;;  %7007 = vrcp.f32 %v5279_v0  ;;  %5423 = vrot.lane.b32.xlu1 %v6984_v39, %s7104_s19  ;;  %v10696_v13 = vmax.f32 %v10695_v61, 0.0  ;;  %v10697_v0 = vld [vmem:[#allocation25_spill] sm:$0xff]  ;;  %v10727_v61 = vld [vmem:[#allocation40_spill] sm:$0xff] }
 0x8fc   : > { %v6988_v24 = vpop.eup %6987  ;;  %v5282_v54 = vadd.f32 1.0, %v6986_v37 }
 0x8fd   : > { %v6990_v48 = vpop.eup %6989  ;;  %7009 = vpow2.f32 %v5940_v29  ;;  %5421 = vrot.lane.b32.xlu0 %v6988_v24, %s7104_s19  ;;  %v10698_v29 = vmax.f32 %v10697_v0, 0.0 }
 0x8fe   : > { %v6992_v41 = vpop.eup %6991  ;;  %7011 = vrcp.f32 %v5282_v54  ;;  %v5281_v26 = vadd.f32 1.0, %v6990_v48  ;;  %v10699_v54 = vld [vmem:[#allocation26_spill] sm:$0xff] }
 0x8ff   : > { %v6994_v14 = vpop.eup %6993  ;;  %v5284_v35 = vadd.f32 1.0, %v6992_v41  ;;  %v10700_v48 = vmax.f32 %v10699_v54, 0.0 }
 0x900   : > { %v6996_v7 = vpop.eup %6995  ;;  %7013 = vrcp.f32 %v5281_v26  ;;  %5427 = vrot.lane.b32.xlu1 %v6994_v14, %s7104_s19  ;;  %v10701_v14 = vld [vmem:[#allocation27_spill] sm:$0xff] }
 0x901   : > { %v6998_v21 = vpop.eup %6997  ;;  %7015 = vrcp.f32 %v5284_v35  ;;  %5425 = vrot.lane.b32.xlu0 %v6996_v7, %s7104_s19  ;;  %v10702_v35 = vmax.f32 %v10701_v14, 0.0 }
 0x902   : > { %v7000_v22 = vpop.eup %6999  ;;  %v5283_v63 = vadd.f32 1.0, %v6998_v21 }
 0x903   : > { %v7002_v60 = vpop.eup %7001 }
 0x904   : > { %v7004_v4 = vpop.eup %7003  ;;  %7017 = vrcp.f32 %v5283_v63  ;;  %v5286_v46 = vadd.f32 1.0, %v7002_v60  ;;  %5431 = vrot.lane.b32.xlu1 %v7000_v22, %s7104_s19  ;;  %v10703_v22 = vld [vmem:[#allocation28_spill] sm:$0xff] }
 0x905   : > { %v7006_v28 = vpop.eup %7005  ;;  %v5285_v44 = vadd.f32 1.0, %v7004_v4  ;;  %v10704_v63 = vmax.f32 %v10703_v22, 0.0 }
 0x906   : > { %7019 = vrcp.f32 %v5286_v46  ;;  %v5288_v25 = vadd.f32 1.0, %v7006_v28  ;;  %v10705_v46 = vld [vmem:[#allocation29_spill] sm:$0xff] }
 0x907   : > { %7021 = vrcp.f32 %v5285_v44  ;;  %v10706_v28 = vmax.f32 %v10705_v46, 0.0 }
 0x908   : > { %7023 = vrcp.f32 %v5288_v25  ;;  %v7008_v6 = vpop.eup %7007 }
 0x909   : > { %5429 = vrot.lane.b32.xlu0 %v7008_v6, %s7104_s19  ;;  %v10707_v6 = vld [vmem:[#allocation30_spill] sm:$0xff] }
 0x90a   : > { %v7010_v51 = vpop.eup %7009 }
 0x90b   : > { %v7012_v57 = vpop.eup %7011  ;;  %v5287_v52 = vadd.f32 1.0, %v7010_v51  ;;  %v10708_v51 = vmax.f32 %v10707_v6, 0.0 }
 0x90c   : > { %5435 = vrot.lane.b32.xlu1 %v7012_v57, %s7104_s19 }
 0x90d   : > { %v7014_v50 = vpop.eup %7013  ;;  %7025 = vrcp.f32 %v5287_v52 }
 0x90e   : > { %v7016_v19 = vpop.eup %7015  ;;  %5433 = vrot.lane.b32.xlu0 %v7014_v50, %s7104_s19  ;;  %v10709_v50 = vld [vmem:[#allocation31_spill] sm:$0xff] }
 0x910   : > { %5439 = vrot.lane.b32.xlu1 %v7016_v19, %s7104_s19  ;;  %v10710_v19 = vmax.f32 %v10709_v50, 0.0 }
 0x911   : > { %v7018_v45 = vpop.eup %7017 }
 0x912   : > { %5437 = vrot.lane.b32.xlu0 %v7018_v45, %s7104_s19 }
 0x913   : > { %v7020_v18 = vpop.eup %7019 }
 0x914   : > { %v7022_v33 = vpop.eup %7021  ;;  %5443 = vrot.lane.b32.xlu1 %v7020_v18, %s7104_s19 }
 0x915   : > { %v7024_v2 = vpop.eup %7023 }
 0x916   : > { %5441 = vrot.lane.b32.xlu0 %v7022_v33, %s7104_s19  ;;  %v10711_v33 = vld [vmem:[#allocation32_spill] sm:$0xff] }
 0x918   : > { %5447 = vrot.lane.b32.xlu1 %v7024_v2, %s7104_s19  ;;  %v10712_v2 = vmax.f32 %v10711_v33, 0.0 }
 0x91a   : > { %v7026_v59 = vpop.eup %7025 }
 0x91b   : > { %5445 = vrot.lane.b32.xlu0 %v7026_v59, %s7104_s19 }
 0x94e   : > { %v5404_v30 = vpop.permute.xlu1 %5403 }
 0x94f   : > { %v5491_v15 = vsel %vm5481_vm7, %v10682_v12, %v5404_v30  ;;  %v10714_v12 = vmax.f32 %v10713_v55, 0.0 }
 0x950   : > { %5524 = vst.msk [vmem:[%s10112_s24 + $0x48] sm:$0xff] %vm5514_vm8, %v5491_v15  ;;  %v5402_v36 = vpop.permute.xlu0 %5401 }
 0x951   : > { %v5490_v32 = vsel %vm5481_vm7, %v10684_v5, %v5402_v36  ;;  %v10716_v5 = vmax.f32 %v10715_v53, 0.0 }
 0x952   : > { %5523 = vst.msk [vmem:[%s10112_s24 + $0x40] sm:$0xff] %vm5514_vm8, %v5490_v32 }
 0x956   : > { %v5408_v43 = vpop.permute.xlu1 %5407 }
 0x957   : > { %v5493_v31 = vsel %vm5481_vm7, %v10686_v10, %v5408_v43  ;;  %v10718_v10 = vmax.f32 %v10717_v8, 0.0 }
 0x958   : > { %5526 = vst.msk [vmem:[%s10112_s24 + $0x58] sm:$0xff] %vm5514_vm8, %v5493_v31  ;;  %v5406_v27 = vpop.permute.xlu0 %5405 }
 0x959   : > { %v5492_v17 = vsel %vm5481_vm7, %v10688_v56, %v5406_v27  ;;  %v10720_v56 = vmax.f32 %v10719_v16, 0.0 }
 0x95a   : > { %5525 = vst.msk [vmem:[%s10112_s24 + $0x50] sm:$0xff] %vm5514_vm8, %v5492_v17 }
 0x95b   : > { %v5412_v38 = vpop.permute.xlu1 %5411 }
 0x95c   : > { %v5495_v40 = vsel %vm5481_vm7, %v10690_v9, %v5412_v38  ;;  %v10722_v9 = vmax.f32 %v10721_v23, 0.0 }
 0x95d   : > { %5528 = vst.msk [vmem:[%s10112_s24 + $0x68] sm:$0xff] %vm5514_vm8, %v5495_v40  ;;  %v5410_v62 = vpop.permute.xlu0 %5409 }
 0x95e   : > { %v5494_v1 = vsel %vm5481_vm7, %v10692_v20, %v5410_v62  ;;  %v10724_v20 = vmax.f32 %v10723_v34, 0.0 }
 0x95f   : > { %5527 = vst.msk [vmem:[%s10112_s24 + $0x60] sm:$0xff] %vm5514_vm8, %v5494_v1 }
 0x963   : > { %v5416_v3 = vpop.permute.xlu1 %5415 }
 0x964   : > { %v5497_v42 = vsel %vm5481_vm7, %v10694_v11, %v5416_v3  ;;  %v10726_v11 = vmax.f32 %v10725_v58, 0.0 }
 0x965   : > { %5530 = vst.msk [vmem:[%s10112_s24 + $0x78] sm:$0xff] %vm5514_vm8, %v5497_v42  ;;  %v5414_v47 = vpop.permute.xlu0 %5413 }
 0x966   : > { %v5496_v49 = vsel %vm5481_vm7, %v10696_v13, %v5414_v47  ;;  %v10728_v13 = vmax.f32 %v10727_v61, 0.0 }
 0x967   : > { %5529 = vst.msk [vmem:[%s10112_s24 + $0x70] sm:$0xff] %vm5514_vm8, %v5496_v49 }
 0x969   : > { %v5420_v39 = vpop.permute.xlu1 %5419 }
 0x96a   : > { %v5499_v37 = vsel %vm5481_vm7, %v10698_v29, %v5420_v39  ;;  %v5418_v24 = vpop.permute.xlu0 %5417 }
 0x96b   : > { %5532 = vst.msk [vmem:[%s10112_s24 + $0x88] sm:$0xff] %vm5514_vm8, %v5499_v37  ;;  %v5498_v41 = vsel %vm5481_vm7, %v10700_v48, %v5418_v24 }
 0x96c   : > { %5531 = vst.msk [vmem:[%s10112_s24 + $0x80] sm:$0xff] %vm5514_vm8, %v5498_v41 }
 0x96d   : > { %v5424_v26 = vpop.permute.xlu1 %5423 }
 0x96e   : > { %v5501_v7 = vsel %vm5481_vm7, %v10702_v35, %v5424_v26 }
 0x96f   : > { %v5422_v21 = vpop.permute.xlu0 %5421  ;;  %5534 = vst.msk [vmem:[%s10112_s24 + $0x98] sm:$0xff] %vm5514_vm8, %v5501_v7 }
 0x970   : > { %v5500_v60 = vsel %vm5481_vm7, %v10704_v63, %v5422_v21 }
 0x971   : > { %5533 = vst.msk [vmem:[%s10112_s24 + $0x90] sm:$0xff] %vm5514_vm8, %v5500_v60 }
 0x972   : > { %v5428_v4 = vpop.permute.xlu1 %5427 }
 0x973   : > { %v5503_v44 = vsel %vm5481_vm7, %v10706_v28, %v5428_v4  ;;  %v5426_v25 = vpop.permute.xlu0 %5425 }
 0x974   : > { %5536 = vst.msk [vmem:[%s10112_s24 + $0xa8] sm:$0xff] %vm5514_vm8, %v5503_v44  ;;  %v5502_v57 = vsel %vm5481_vm7, %v10708_v51, %v5426_v25 }
 0x975   : > { %5535 = vst.msk [vmem:[%s10112_s24 + $0xa0] sm:$0xff] %vm5514_vm8, %v5502_v57 }
 0x976   : > { %v5432_v52 = vpop.permute.xlu1 %5431 }
 0x977   : > { %v5505_v45 = vsel %vm5481_vm7, %v10710_v19, %v5432_v52 }
 0x978   : > { %5538 = vst.msk [vmem:[%s10112_s24 + $0xb8] sm:$0xff] %vm5514_vm8, %v5505_v45 }
 0x97b   : > { %v5430_v18 = vpop.permute.xlu0 %5429 }
 0x97c   : > { %v5504_v59 = vsel %vm5481_vm7, %v10712_v2, %v5430_v18 }
 0x97d   : > { %5537 = vst.msk [vmem:[%s10112_s24 + $0xb0] sm:$0xff] %vm5514_vm8, %v5504_v59 }
 0x97e   : > { %v5436_v30 = vpop.permute.xlu1 %5435 }
 0x97f   : > { %v5507_v15 = vsel %vm5481_vm7, %v10714_v12, %v5436_v30 }
 0x980   : > { %5540 = vst.msk [vmem:[%s10112_s24 + $0xc8] sm:$0xff] %vm5514_vm8, %v5507_v15  ;;  %v5434_v36 = vpop.permute.xlu0 %5433 }
 0x981   : > { %v5506_v32 = vsel %vm5481_vm7, %v10716_v5, %v5434_v36 }
 0x982   : > { %5539 = vst.msk [vmem:[%s10112_s24 + $0xc0] sm:$0xff] %vm5514_vm8, %v5506_v32  ;;  %v5440_v43 = vpop.permute.xlu1 %5439 }
 0x983   : > { %v5509_v31 = vsel %vm5481_vm7, %v10718_v10, %v5440_v43 }
 0x984   : > { %5542 = vst.msk [vmem:[%s10112_s24 + $0xd8] sm:$0xff] %vm5514_vm8, %v5509_v31  ;;  %v5438_v27 = vpop.permute.xlu0 %5437 }
 0x985   : > { %v5508_v17 = vsel %vm5481_vm7, %v10720_v56, %v5438_v27 }
 0x986   : > { %5541 = vst.msk [vmem:[%s10112_s24 + $0xd0] sm:$0xff] %vm5514_vm8, %v5508_v17  ;;  %v5444_v38 = vpop.permute.xlu1 %5443 }
 0x987   : > { %v5511_v40 = vsel %vm5481_vm7, %v10722_v9, %v5444_v38 }
 0x988   : > { %5544 = vst.msk [vmem:[%s10112_s24 + $0xe8] sm:$0xff] %vm5514_vm8, %v5511_v40  ;;  %v5442_v62 = vpop.permute.xlu0 %5441 }
 0x989   : > { %v5510_v1 = vsel %vm5481_vm7, %v10724_v20, %v5442_v62 }
 0x98a   : > { %5543 = vst.msk [vmem:[%s10112_s24 + $0xe0] sm:$0xff] %vm5514_vm8, %v5510_v1  ;;  %v5448_v3 = vpop.permute.xlu1 %5447 }
 0x98b   : > { %v5513_v42 = vsel %vm5481_vm7, %v10726_v11, %v5448_v3 }
 0x98c   : > { %5546 = vst.msk [vmem:[%s10112_s24 + $0xf8] sm:$0xff] %vm5514_vm8, %v5513_v42 }
 0x98d   : > { %v5446_v47 = vpop.permute.xlu0 %5445 }
 0x98e   : > { %v5512_v49 = vsel %vm5481_vm7, %v10728_v13, %v5446_v47 }
 0x98f   : > { %5545 = vst.msk [vmem:[%s10112_s24 + $0xf0] sm:$0xff] %vm5514_vm8, %v5512_v49 }
 0x990 PF: > { %s16_s21 = sadd.s32 1, %s7095_s21  }
 0x991   : > { %p13_p5 = scmp.ge.s32.totalorder %s16_s21, 6  }
 0x993   :  { %15 = sbr.rel (!%p13_p5) target bundleno = 1 (0x1), region = 80 }

</bundles_post_ra>
